<compile_context>
chip_gen: v6e
topology: v6e:2x2x1
jax: 0.10.0
libtpu: 0.0.40
codegen_flags: <defaults>
</compile_context>

<pallas_src>
import functools

import jax
import jax.numpy as jnp
from jax.experimental import pallas as pl
from jax.experimental.pallas import tpu as pltpu


def _round_up(a, b):
    return (a + b - 1) // b * b


_VMEM_LIMIT = None


def _vmem_limit():
    """Generation-aware scoped-VMEM limit: ~3/4 of physical, capped at 100 MiB."""
    global _VMEM_LIMIT
    if _VMEM_LIMIT is None:
        cap = 64 * 1024 * 1024  # safe fallback (v7x physical)
        try:
            cap = int(getattr(pltpu.get_tpu_info(), "vmem_capacity_bytes", cap))
        except Exception:
            pass
        _VMEM_LIMIT = min(max((cap * 3) // 4, 32 * 1024 * 1024), 100 * 1024 * 1024)
    return _VMEM_LIMIT


def _cparams(dims):
    return pltpu.CompilerParams(dimension_semantics=dims,
                                vmem_limit_bytes=_vmem_limit())


# ----------------------------------------------------------------------------
# Kernel 1: row-tiled matmul + folded-BN bias + optional ReLU (stem)
# ----------------------------------------------------------------------------
def _matmul_bias_act_kernel(x_ref, w_ref, shift_ref, o_ref, *, relu):
    acc = jnp.dot(x_ref[...], w_ref[...], preferred_element_type=jnp.float32)
    out = acc + shift_ref[...]
    if relu:
        out = jnp.maximum(out, 0.0)
    o_ref[...] = out.astype(o_ref.dtype)


def matmul_bn_act(x, w, scale, shift, *, relu=True, tm=512, out_dtype=jnp.bfloat16):
    """out = act(x @ (w*scale) + shift); bf16 MXU inputs, f32 epilogue.

    BN scale is folded into the weights in f32 before the bf16 cast; the
    contraction dim is passed at its natural size (full-K block, no HBM pad).
    """
    M, K = x.shape
    Kw, N = w.shape
    assert K == Kw and N % 128 == 0  # lane-dense outputs by construction
    tm = min(tm, _round_up(M, 8))
    Mp = _round_up(M, tm)

    xb = x.astype(jnp.bfloat16)
    if Mp != M:
        xb = jnp.pad(xb, ((0, Mp - M), (0, 0)))
    wb = (w.astype(jnp.float32) * scale.reshape(1, N)).astype(jnp.bfloat16)

    kern = functools.partial(_matmul_bias_act_kernel, relu=relu)
    out = pl.pallas_call(
        kern,
        out_shape=jax.ShapeDtypeStruct((Mp, N), out_dtype),
        grid=(Mp // tm,),
        in_specs=[
            pl.BlockSpec((tm, K), lambda i: (i, 0)),
            pl.BlockSpec((K, N), lambda i: (0, 0)),
            pl.BlockSpec((1, N), lambda i: (0, 0)),
        ],
        out_specs=pl.BlockSpec((tm, N), lambda i: (i, 0)),
        compiler_params=_cparams(("parallel",)),
    )(xb, wb, shift.reshape(1, N).astype(jnp.float32))
    return out[:M] if Mp != M else out


# ----------------------------------------------------------------------------
# Kernel 2: fused maxpool 3x3/s2/p1 (taps folded in-kernel) + b1 1x1 conv + BN + ReLU
# ----------------------------------------------------------------------------
def _maxpool_b1_kernel(p_ref, w_ref, shift_ref, xblk_ref, y1_ref, *, OH, OW):
    res = None
    for di in range(3):
        for dj in range(3):
            ph = (di % 2) * 2 + (dj % 2)
            v = p_ref[ph, di // 2:di // 2 + OH, dj // 2:dj // 2 + OW, :]
            res = v if res is None else jnp.maximum(res, v)
    xblk_ref[...] = res.reshape(xblk_ref.shape)
    x2 = res.reshape(OH * OW, res.shape[-1]).astype(jnp.bfloat16)
    acc = jnp.dot(x2, w_ref[...], preferred_element_type=jnp.float32)
    out = jnp.maximum(acc + shift_ref[...], 0.0)
    y1_ref[...] = out.reshape(y1_ref.shape).astype(y1_ref.dtype)


def maxpool_b1(x, w1, scale1, shift1):
    """x: (N, H, W, C) with even H, W. Returns (pooled (N,H/2,W/2,C), b1 out)."""
    N, H, W, C = x.shape
    Cmid = w1.shape[-1]
    OH, OW = H // 2, W // 2
    neg = jnp.asarray(-jnp.inf, x.dtype)
    xp = jnp.pad(x, ((0, 0), (1, 1), (1, 1), (0, 0)), constant_values=neg)
    # Four stride-2 phase views (JAX glue = ~1x traffic, vs 9x for im2col patches).
    Hh, Wh = OH + 1, OW + 1
    ph = jnp.stack([xp[:, a::2, b::2, :] for a in (0, 1) for b in (0, 1)], axis=1)
    ph = ph.reshape(N * 4, Hh, Wh, C)
    w_eff = (w1.astype(jnp.float32) * scale1.reshape(1, Cmid)).astype(jnp.bfloat16)
    kern = functools.partial(_maxpool_b1_kernel, OH=OH, OW=OW)
    xblk, y1 = pl.pallas_call(
        kern,
        out_shape=(jax.ShapeDtypeStruct((N, OH, OW, C), x.dtype),
                   jax.ShapeDtypeStruct((N, OH, OW, Cmid), jnp.bfloat16)),
        grid=(N,),
        in_specs=[
            pl.BlockSpec((4, Hh, Wh, C), lambda n: (n, 0, 0, 0)),
            pl.BlockSpec((C, Cmid), lambda n: (0, 0)),
            pl.BlockSpec((1, Cmid), lambda n: (0, 0)),
        ],
        out_specs=(pl.BlockSpec((1, OH, OW, C), lambda n: (n, 0, 0, 0)),
                   pl.BlockSpec((1, OH, OW, Cmid), lambda n: (n, 0, 0, 0))),
        compiler_params=_cparams(("parallel",)),
    )(ph, w_eff, shift1.reshape(1, Cmid).astype(jnp.float32))
    return xblk, y1


# ----------------------------------------------------------------------------
# Kernel 3: 3x3/s1/p1 conv + BN + ReLU, taps folded in-kernel, strip accumulators
# ----------------------------------------------------------------------------
def _pick_strip(H):
    for s in (8, 7, 6, 5, 4, 3, 2, 1):
        if s <= H and H % s == 0:
            return s
    return H


def _conv3x3_bn_relu_kernel(x_ref, w_ref, shift_ref, o_ref, *, H, W, strip):
    cout = o_ref.shape[-1]
    shift = shift_ref[...]
    for s0 in range(0, H, strip):
        # Build the 9 shifted views first, then keep the 9 dot+accumulate pairs
        # adjacent (v7x MRB in-place accumulate; small strip acc on v5e/v6e).
        taps = []
        for di in range(3):
            for dj in range(3):
                xt = x_ref[0, s0 + di:s0 + di + strip, dj:dj + W, :]
                taps.append(xt.reshape(strip * W, xt.shape[-1]))
        acc = jnp.dot(taps[0], w_ref[0], preferred_element_type=jnp.float32)
        for k in range(1, 9):
            acc = acc + jnp.dot(taps[k], w_ref[k], preferred_element_type=jnp.float32)
        out = jnp.maximum(acc + shift, 0.0)
        o_ref[0, s0:s0 + strip, :, :] = out.reshape(strip, W, cout).astype(o_ref.dtype)


def conv3x3_bn_relu(x, w, scale, shift):
    """x: (N, H, W, Cin); w: (3, 3, Cin, Cout); stride 1, pad 1. BN scale folded."""
    N, H, W, Cin = x.shape
    Cout = w.shape[-1]
    w_eff = (w.astype(jnp.float32) * scale.reshape(1, 1, 1, Cout)).astype(jnp.bfloat16)
    wk = w_eff.reshape(9, Cin, Cout)
    xp = jnp.pad(x.astype(jnp.bfloat16), ((0, 0), (1, 1), (1, 1), (0, 0)))
    strip = _pick_strip(H)
    kern = functools.partial(_conv3x3_bn_relu_kernel, H=H, W=W, strip=strip)
    return pl.pallas_call(
        kern,
        out_shape=jax.ShapeDtypeStruct((N, H, W, Cout), jnp.bfloat16),
        grid=(N,),
        in_specs=[
            pl.BlockSpec((1, H + 2, W + 2, Cin), lambda n: (n, 0, 0, 0)),
            pl.BlockSpec((9, Cin, Cout), lambda n: (0, 0, 0)),
            pl.BlockSpec((1, Cout), lambda n: (0, 0)),
        ],
        out_specs=pl.BlockSpec((1, H, W, Cout), lambda n: (n, 0, 0, 0)),
        compiler_params=_cparams(("parallel",)),
    )(xp, wk, shift.reshape(1, Cout).astype(jnp.float32))


# ----------------------------------------------------------------------------
# Kernel 4: fused tail = [b3 1x1 || downsample 1x1] as ONE K-concat matmul
#           + add + ReLU + global average pool (resident accumulator)
# ----------------------------------------------------------------------------
def _tail_kernel(y_ref, x_ref, wc_ref, shift_ref, o_ref, acc_ref, *, hw, n_pad):
    t = pl.program_id(1)

    @pl.when(t == 0)
    def _():
        acc_ref[...] = jnp.zeros_like(acc_ref)

    # Concat along the lane axis in VMEM -> single K=Cmid+Cin matmul (fills the
    # 256-deep MXU on v6e/v7x), BN scales already folded into wc.
    lhs = jnp.concatenate([y_ref[0], x_ref[0]], axis=-1)          # (tr, Cmid+Cin) bf16
    z = jnp.dot(lhs, wc_ref[...], preferred_element_type=jnp.float32)
    z = jnp.maximum(z + shift_ref[...], 0.0)                      # (tr, Cout) f32
    acc_ref[...] += jnp.sum(z, axis=0, keepdims=True)

    @pl.when(t == pl.num_programs(1) - 1)
    def _():
        total = acc_ref[...]
        if n_pad:  # padded (zero) rows each contributed relu(shift); remove once
            total = total - float(n_pad) * jnp.maximum(shift_ref[...], 0.0)
        o_ref[...] = (total * (1.0 / hw)).reshape(o_ref.shape).astype(o_ref.dtype)


def fused_tail(y, xs, w3, s3, sh3, wd, sd, shd, *, tr=512):
    """y: (N, HW, Cmid), xs: (N, HW, Cin) -> (N, Cout) pooled features (f32)."""
    N, HW, Cmid = y.shape
    Cin = xs.shape[-1]
    Cout = w3.shape[-1]
    tr = min(tr, _round_up(HW, 8))
    HWp = _round_up(HW, tr)
    n_pad = HWp - HW
    yb = y.astype(jnp.bfloat16)
    xb = xs.astype(jnp.bfloat16)
    if n_pad:
        yb = jnp.pad(yb, ((0, 0), (0, n_pad), (0, 0)))
        xb = jnp.pad(xb, ((0, 0), (0, n_pad), (0, 0)))
    T = HWp // tr

    # Fold BN scales into weights in f32 (before bf16 cast), concat along K.
    w3e = w3.astype(jnp.float32) * s3.reshape(1, Cout)
    wde = wd.astype(jnp.float32) * sd.reshape(1, Cout)
    wc = jnp.concatenate([w3e, wde], axis=0).astype(jnp.bfloat16)  # (Cmid+Cin, Cout)
    shift = (sh3 + shd).reshape(1, Cout).astype(jnp.float32)

    kern = functools.partial(_tail_kernel, hw=HW, n_pad=n_pad)
    out = pl.pallas_call(
        kern,
        out_shape=jax.ShapeDtypeStruct((N, 1, Cout), jnp.float32),
        grid=(N, T),
        in_specs=[
            pl.BlockSpec((1, tr, Cmid), lambda b, t: (b, t, 0)),
            pl.BlockSpec((1, tr, Cin), lambda b, t: (b, t, 0)),
            pl.BlockSpec((Cmid + Cin, Cout), lambda b, t: (0, 0)),
            pl.BlockSpec((1, Cout), lambda b, t: (0, 0)),
        ],
        out_specs=pl.BlockSpec((1, 1, Cout), lambda b, t: (b, 0, 0)),
        scratch_shapes=[pltpu.VMEM((1, Cout), jnp.float32)],
        compiler_params=_cparams(("parallel", "arbitrary")),
    )(yb, xb, wc, shift)
    return out.reshape(N, Cout)


# ----------------------------------------------------------------------------
# JAX glue: im2col only for the 3-channel 7x7 stem (tiny patch tensor, bf16)
# ----------------------------------------------------------------------------
def im2col(x_nhwc, kh, kw, stride, pad, pad_value=0.0):
    N, H, W, C = x_nhwc.shape
    xp = jnp.pad(x_nhwc, ((0, 0), (pad, pad), (pad, pad), (0, 0)),
                 constant_values=pad_value)
    OH = (H + 2 * pad - kh) // stride + 1
    OW = (W + 2 * pad - kw) // stride + 1
    views = []
    for i in range(kh):
        for j in range(kw):
            views.append(
                xp[:, i:i + stride * OH:stride, j:j + stride * OW:stride, :])
    p = jnp.stack(views, axis=3)  # (N, OH, OW, kh*kw, C)
    return p, OH, OW


# ----------------------------------------------------------------------------
# Parameters (deterministic synthetic, folded eval-style BN) and forward pass
# ----------------------------------------------------------------------------
def _fold_bn(gamma, beta, mean, var, eps=1e-5):
    scale = gamma / jnp.sqrt(var + eps)
    shift = beta - mean * scale
    return scale, shift


def make_params():
    keys = jax.random.split(jax.random.PRNGKey(42), 10)
    C_IN, C_STEM, C_MID, C_OUT = 3, 128, 128, 256  # lane-dense (multiples of 128)

    def conv_w(key, kh, kw, cin, cout):
        return 0.05 * jax.random.normal(key, (kh, kw, cin, cout), jnp.float32)

    def bn(key, c):
        g = 1.0 + 0.1 * jax.random.normal(key, (c,), jnp.float32)
        b = 0.05 * jax.random.normal(jax.random.fold_in(key, 1), (c,), jnp.float32)
        m = 0.02 * jax.random.normal(jax.random.fold_in(key, 2), (c,), jnp.float32)
        v = 1.0 + 0.1 * jnp.abs(jax.random.normal(jax.random.fold_in(key, 3), (c,)))
        return _fold_bn(g, b, m, v)

    p = {}
    p["stem_w"] = conv_w(keys[0], 7, 7, C_IN, C_STEM)
    p["stem_bn"] = bn(keys[1], C_STEM)
    p["b1_w"] = conv_w(keys[2], 1, 1, C_STEM, C_MID)
    p["b1_bn"] = bn(keys[3], C_MID)
    p["b2_w"] = conv_w(keys[4], 3, 3, C_MID, C_MID)
    p["b2_bn"] = bn(keys[5], C_MID)
    p["b3_w"] = conv_w(keys[6], 1, 1, C_MID, C_OUT)
    p["b3_bn"] = bn(keys[7], C_OUT)
    p["ds_w"] = conv_w(keys[8], 1, 1, C_STEM, C_OUT)
    p["ds_bn"] = bn(keys[9], C_OUT)
    return p


def timm_encoder_forward(x_nchw, params):
    """x: (N, 3, H, W) float32 -> pooled features (N, C_OUT) float32."""
    # NCHW -> NHWC, cast to bf16 BEFORE im2col (halves stem glue HBM traffic).
    x = jnp.transpose(x_nchw, (0, 2, 3, 1)).astype(jnp.bfloat16)
    N = x.shape[0]

    # Stem: conv7x7/s2 + BN + ReLU (im2col glue; 3-channel input, patches are tiny).
    kh, kw, cin, cstem = params["stem_w"].shape
    p, OH, OW = im2col(x, kh, kw, stride=2, pad=3)
    cols = p.reshape(N * OH * OW, kh * kw * cin)
    wmat = params["stem_w"].reshape(kh * kw * cin, cstem)
    s = matmul_bn_act(cols, wmat, *params["stem_bn"], relu=True, tm=512)
    s = s.reshape(N, OH, OW, cstem)

    # Fused MaxPool 3x3/s2 + b1 1x1 conv + BN + ReLU (pooled output kept for shortcut).
    cmid = params["b1_w"].shape[-1]
    xblk, y1 = maxpool_b1(s, params["b1_w"].reshape(cstem, cmid), *params["b1_bn"])
    Nb, Hb, Wb, _ = xblk.shape

    # 3x3 conv + BN + ReLU (strip accumulators, BN scale folded into weights).
    y2 = conv3x3_bn_relu(y1, params["b2_w"], *params["b2_bn"])

    # Fused tail: [b3 1x1 || downsample 1x1] K-concat matmul + add + ReLU + GAP.
    cout = params["b3_w"].shape[-1]
    feats = fused_tail(
        y2.reshape(Nb, Hb * Wb, cmid),
        xblk.reshape(Nb, Hb * Wb, cstem),
        params["b3_w"].reshape(cmid, cout), *params["b3_bn"],
        params["ds_w"].reshape(cstem, cout), *params["ds_bn"],
    )
    return feats  # (N, C_OUT) float32 pooled features (timm num_classes=0 head)


# ----------------------------------------------------------------------------
# Pure-JAX reference (same bf16 casting / BN folding points as the Pallas path)
# ----------------------------------------------------------------------------
def reference_forward(x_nchw, params):
    x = jnp.transpose(x_nchw, (0, 2, 3, 1)).astype(jnp.bfloat16)

    def conv_bn_relu_ref(xx, w, scale, shift, stride, pad):
        kh, kw, cin, cout = w.shape
        w_eff = (w.astype(jnp.float32) * scale.reshape(1, 1, 1, cout)).astype(jnp.bfloat16)
        p, OH, OW = im2col(xx, kh, kw, stride, pad)
        cols = p.reshape(xx.shape[0], OH, OW, kh * kw * cin)
        out = jnp.einsum("nhwk,kc->nhwc", cols, w_eff.reshape(kh * kw * cin, cout),
                         preferred_element_type=jnp.float32)
        return jnp.maximum(out + shift.reshape(1, 1, 1, cout), 0.0).astype(jnp.bfloat16)

    s = conv_bn_relu_ref(x, params["stem_w"], *params["stem_bn"], stride=2, pad=3)

    neg = jnp.asarray(-jnp.inf, s.dtype)
    sp = jnp.pad(s, ((0, 0), (1, 1), (1, 1), (0, 0)), constant_values=neg)
    OH, OW = s.shape[1] // 2, s.shape[2] // 2
    pooled = None
    for di in range(3):
        for dj in range(3):
            v = sp[:, di:di + 2 * OH:2, dj:dj + 2 * OW:2, :]
            pooled = v if pooled is None else jnp.maximum(pooled, v)

    cstem = pooled.shape[-1]
    cmid = params["b1_w"].shape[-1]
    sc1, sh1 = params["b1_bn"]
    w1e = (params["b1_w"].reshape(cstem, cmid).astype(jnp.float32)
           * sc1.reshape(1, cmid)).astype(jnp.bfloat16)
    y1 = jnp.einsum("nhwc,cd->nhwd", pooled, w1e, preferred_element_type=jnp.float32)
    y1 = jnp.maximum(y1 + sh1.reshape(1, 1, 1, cmid), 0.0).astype(jnp.bfloat16)

    y2 = conv_bn_relu_ref(y1, params["b2_w"], *params["b2_bn"], stride=1, pad=1)

    cout = params["b3_w"].shape[-1]
    s3, sh3 = params["b3_bn"]
    sd, shd = params["ds_bn"]
    w3e = (params["b3_w"].reshape(cmid, cout).astype(jnp.float32)
           * s3.reshape(1, cout)).astype(jnp.bfloat16)
    wde = (params["ds_w"].reshape(cstem, cout).astype(jnp.float32)
           * sd.reshape(1, cout)).astype(jnp.bfloat16)
    a = jnp.einsum("nhwc,cd->nhwd", y2, w3e, preferred_element_type=jnp.float32)
    b = jnp.einsum("nhwc,cd->nhwd", pooled, wde, preferred_element_type=jnp.float32)
    z = jnp.maximum(a + b + (sh3 + shd).reshape(1, 1, 1, cout), 0.0)
    return jnp.mean(z, axis=(1, 2))


if __name__ == "__main__":
    key = jax.random.PRNGKey(0)
    x = jax.random.normal(key, (2, 3, 32, 32), jnp.float32)  # NCHW, in_chans=3
    params = make_params()

    fwd = jax.jit(timm_encoder_forward)
    feats = jax.block_until_ready(fwd(x, params))

    assert feats.shape == (2, 256), feats.shape
    assert feats.dtype == jnp.float32
    assert bool(jnp.all(jnp.isfinite(feats)))

    ref = jax.block_until_ready(jax.jit(reference_forward)(x, params))
    assert bool(jnp.allclose(feats, ref, atol=2e-2, rtol=2e-2)), (
        "max abs err", float(jnp.max(jnp.abs(feats - ref))))

    print("KERNEL_OK")
</pallas_src>

<mosaic_0001>
module attributes {stable_mosaic.version = 11 : i64} {
  func.func @_matmul_bias_act_kernel(%arg0: i32, %arg1: memref<512x147xbf16, #tpu.memory_space<vmem>>, %arg2: memref<147x128xbf16, #tpu.memory_space<vmem>>, %arg3: memref<1x128xf32, #tpu.memory_space<vmem>>, %arg4: memref<512x128xbf16, #tpu.memory_space<vmem>>) attributes {dimension_semantics = [#tpu.dimension_semantics<parallel>], iteration_bounds = array<i64: 1>, scalar_prefetch = 0 : i64, scratch_operands = 0 : i64, tpu.core_type = #tpu.core_type<tc>, window_params = [{transform_indices = @transform_0, window_bounds = array<i64: 512, 147>}, {pipeline_mode = #tpu.pipeline_mode<synchronous>, transform_indices = @transform_1, window_bounds = array<i64: 147, 128>}, {pipeline_mode = #tpu.pipeline_mode<synchronous>, transform_indices = @transform_2, window_bounds = array<i64: 1, 128>}, {transform_indices = @transform_3, window_bounds = array<i64: 512, 128>}]} {
    %c0 = arith.constant 0 : index
    %c0_0 = arith.constant 0 : index
    %0 = vector.load %arg1[%c0, %c0_0] : memref<512x147xbf16, #tpu.memory_space<vmem>>, vector<512x147xbf16>
    %c0_1 = arith.constant 0 : index
    %c0_2 = arith.constant 0 : index
    %1 = vector.load %arg2[%c0_1, %c0_2] : memref<147x128xbf16, #tpu.memory_space<vmem>>, vector<147x128xbf16>
    %cst = arith.constant dense<0.000000e+00> : vector<512x128xf32>
    %2 = tpu.matmul %0, %1, %cst {dimension_numbers = #tpu.dot_dimension_numbers<[1], [0], [0], [1], [0, 0, 1, 1], [], []>} : vector<512x147xbf16>, vector<147x128xbf16>, vector<512x128xf32> -> vector<512x128xf32>
    %c0_3 = arith.constant 0 : index
    %c0_4 = arith.constant 0 : index
    %3 = vector.load %arg3[%c0_3, %c0_4] : memref<1x128xf32, #tpu.memory_space<vmem>>, vector<1x128xf32>
    %4 = vector.broadcast %3 : vector<1x128xf32> to vector<512x128xf32>
    %5 = arith.addf %2, %4 : vector<512x128xf32>
    %cst_5 = arith.constant 0.000000e+00 : f32
    %6 = vector.broadcast %cst_5 : f32 to vector<512x128xf32>
    %7 = arith.maximumf %5, %6 : vector<512x128xf32>
    %8 = arith.truncf %7 : vector<512x128xf32> to vector<512x128xbf16>
    %c0_6 = arith.constant 0 : index
    %c0_7 = arith.constant 0 : index
    %9 = vector.load %arg4[%c0_6, %c0_7] : memref<512x128xbf16, #tpu.memory_space<vmem>>, vector<512x128xbf16>
    tpu.vector_store %arg4[%c0_6, %c0_7], %8 {strides = array<i32>} : memref<512x128xbf16, #tpu.memory_space<vmem>>, vector<512x128xbf16>,
    return
  }
  func.func @transform_0(%arg0: i32) -> (i32, i32) {
    %c0_i32 = arith.constant 0 : i32
    %c0_i32_0 = arith.constant 0 : i32
    return %arg0, %c0_i32 : i32, i32
  }
  func.func @transform_1(%arg0: i32) -> (i32, i32) {
    %c0_i32 = arith.constant 0 : i32
    %c0_i32_0 = arith.constant 0 : i32
    %c0_i32_1 = arith.constant 0 : i32
    return %c0_i32, %c0_i32_0 : i32, i32
  }
  func.func @transform_2(%arg0: i32) -> (i32, i32) {
    %c0_i32 = arith.constant 0 : i32
    %c0_i32_0 = arith.constant 0 : i32
    %c0_i32_1 = arith.constant 0 : i32
    return %c0_i32, %c0_i32_0 : i32, i32
  }
  func.func @transform_3(%arg0: i32) -> (i32, i32) {
    %c0_i32 = arith.constant 0 : i32
    %c0_i32_0 = arith.constant 0 : i32
    return %arg0, %c0_i32 : i32, i32
  }
}

module attributes {stable_mosaic.version = 11 : i64} {
  func.func @_maxpool_b1_kernel(%arg0: i32, %arg1: memref<4x9x9x128xbf16, #tpu.memory_space<vmem>>, %arg2: memref<128x128xbf16, #tpu.memory_space<vmem>>, %arg3: memref<1x128xf32, #tpu.memory_space<vmem>>, %arg4: memref<1x8x8x128xbf16, #tpu.memory_space<vmem>>, %arg5: memref<1x8x8x128xbf16, #tpu.memory_space<vmem>>) attributes {dimension_semantics = [#tpu.dimension_semantics<parallel>], iteration_bounds = array<i64: 2>, scalar_prefetch = 0 : i64, scratch_operands = 0 : i64, tpu.core_type = #tpu.core_type<tc>, window_params = [{transform_indices = @transform_0, window_bounds = array<i64: 4, 9, 9, 128>}, {pipeline_mode = #tpu.pipeline_mode<synchronous>, transform_indices = @transform_1, window_bounds = array<i64: 128, 128>}, {pipeline_mode = #tpu.pipeline_mode<synchronous>, transform_indices = @transform_2, window_bounds = array<i64: 1, 128>}, {transform_indices = @transform_3, window_bounds = array<i64: 1, 8, 8, 128>}, {transform_indices = @transform_4, window_bounds = array<i64: 1, 8, 8, 128>}]} {
    %c0 = arith.constant 0 : index
    %c0_0 = arith.constant 0 : index
    %c0_1 = arith.constant 0 : index
    %c0_2 = arith.constant 0 : index
    %0 = vector.load %arg1[%c0, %c0_0, %c0_1, %c0_2] : memref<4x9x9x128xbf16, #tpu.memory_space<vmem>>, vector<1x8x8x128xbf16>
    %1 = vector.shape_cast %0 : vector<1x8x8x128xbf16> to vector<8x8x128xbf16>
    %c1 = arith.constant 1 : index
    %c0_3 = arith.constant 0 : index
    %c0_4 = arith.constant 0 : index
    %c0_5 = arith.constant 0 : index
    %2 = vector.load %arg1[%c1, %c0_3, %c0_4, %c0_5] : memref<4x9x9x128xbf16, #tpu.memory_space<vmem>>, vector<1x8x8x128xbf16>
    %3 = vector.shape_cast %2 : vector<1x8x8x128xbf16> to vector<8x8x128xbf16>
    %4 = arith.maximumf %1, %3 : vector<8x8x128xbf16>
    %c0_6 = arith.constant 0 : index
    %c0_7 = arith.constant 0 : index
    %c1_8 = arith.constant 1 : index
    %c0_9 = arith.constant 0 : index
    %5 = vector.load %arg1[%c0_6, %c0_7, %c1_8, %c0_9] : memref<4x9x9x128xbf16, #tpu.memory_space<vmem>>, vector<1x8x8x128xbf16>
    %6 = vector.shape_cast %5 : vector<1x8x8x128xbf16> to vector<8x8x128xbf16>
    %7 = arith.maximumf %4, %6 : vector<8x8x128xbf16>
    %c2 = arith.constant 2 : index
    %c0_10 = arith.constant 0 : index
    %c0_11 = arith.constant 0 : index
    %c0_12 = arith.constant 0 : index
    %8 = vector.load %arg1[%c2, %c0_10, %c0_11, %c0_12] : memref<4x9x9x128xbf16, #tpu.memory_space<vmem>>, vector<1x8x8x128xbf16>
    %9 = vector.shape_cast %8 : vector<1x8x8x128xbf16> to vector<8x8x128xbf16>
    %10 = arith.maximumf %7, %9 : vector<8x8x128xbf16>
    %c3 = arith.constant 3 : index
    %c0_13 = arith.constant 0 : index
    %c0_14 = arith.constant 0 : index
    %c0_15 = arith.constant 0 : index
    %11 = vector.load %arg1[%c3, %c0_13, %c0_14, %c0_15] : memref<4x9x9x128xbf16, #tpu.memory_space<vmem>>, vector<1x8x8x128xbf16>
    %12 = vector.shape_cast %11 : vector<1x8x8x128xbf16> to vector<8x8x128xbf16>
    %13 = arith.maximumf %10, %12 : vector<8x8x128xbf16>
    %c2_16 = arith.constant 2 : index
    %c0_17 = arith.constant 0 : index
    %c1_18 = arith.constant 1 : index
    %c0_19 = arith.constant 0 : index
    %14 = vector.load %arg1[%c2_16, %c0_17, %c1_18, %c0_19] : memref<4x9x9x128xbf16, #tpu.memory_space<vmem>>, vector<1x8x8x128xbf16>
    %15 = vector.shape_cast %14 : vector<1x8x8x128xbf16> to vector<8x8x128xbf16>
    %16 = arith.maximumf %13, %15 : vector<8x8x128xbf16>
    %c0_20 = arith.constant 0 : index
    %c1_21 = arith.constant 1 : index
    %c0_22 = arith.constant 0 : index
    %c0_23 = arith.constant 0 : index
    %17 = vector.load %arg1[%c0_20, %c1_21, %c0_22, %c0_23] : memref<4x9x9x128xbf16, #tpu.memory_space<vmem>>, vector<1x8x8x128xbf16>
    %18 = vector.shape_cast %17 : vector<1x8x8x128xbf16> to vector<8x8x128xbf16>
    %19 = arith.maximumf %16, %18 : vector<8x8x128xbf16>
    %c1_24 = arith.constant 1 : index
    %c1_25 = arith.constant 1 : index
    %c0_26 = arith.constant 0 : index
    %c0_27 = arith.constant 0 : index
    %20 = vector.load %arg1[%c1_24, %c1_25, %c0_26, %c0_27] : memref<4x9x9x128xbf16, #tpu.memory_space<vmem>>, vector<1x8x8x128xbf16>
    %21 = vector.shape_cast %20 : vector<1x8x8x128xbf16> to vector<8x8x128xbf16>
    %22 = arith.maximumf %19, %21 : vector<8x8x128xbf16>
    %c0_28 = arith.constant 0 : index
    %c1_29 = arith.constant 1 : index
    %c1_30 = arith.constant 1 : index
    %c0_31 = arith.constant 0 : index
    %23 = vector.load %arg1[%c0_28, %c1_29, %c1_30, %c0_31] : memref<4x9x9x128xbf16, #tpu.memory_space<vmem>>, vector<1x8x8x128xbf16>
    %24 = vector.shape_cast %23 : vector<1x8x8x128xbf16> to vector<8x8x128xbf16>
    %25 = arith.maximumf %22, %24 : vector<8x8x128xbf16>
    %26 = vector.shape_cast %25 : vector<8x8x128xbf16> to vector<1x8x8x128xbf16>
    %c0_32 = arith.constant 0 : index
    %c0_33 = arith.constant 0 : index
    %c0_34 = arith.constant 0 : index
    %c0_35 = arith.constant 0 : index
    %27 = vector.load %arg4[%c0_32, %c0_33, %c0_34, %c0_35] : memref<1x8x8x128xbf16, #tpu.memory_space<vmem>>, vector<1x8x8x128xbf16>
    tpu.vector_store %arg4[%c0_32, %c0_33, %c0_34, %c0_35], %26 {strides = array<i32>} : memref<1x8x8x128xbf16, #tpu.memory_space<vmem>>, vector<1x8x8x128xbf16>,
    %28 = vector.shape_cast %25 : vector<8x8x128xbf16> to vector<64x128xbf16>
    %c0_36 = arith.constant 0 : index
    %c0_37 = arith.constant 0 : index
    %29 = vector.load %arg2[%c0_36, %c0_37] : memref<128x128xbf16, #tpu.memory_space<vmem>>, vector<128x128xbf16>
    %cst = arith.constant dense<0.000000e+00> : vector<64x128xf32>
    %30 = tpu.matmul %28, %29, %cst {dimension_numbers = #tpu.dot_dimension_numbers<[1], [0], [0], [1], [0, 0, 1, 1], [], []>} : vector<64x128xbf16>, vector<128x128xbf16>, vector<64x128xf32> -> vector<64x128xf32>
    %c0_38 = arith.constant 0 : index
    %c0_39 = arith.constant 0 : index
    %31 = vector.load %arg3[%c0_38, %c0_39] : memref<1x128xf32, #tpu.memory_space<vmem>>, vector<1x128xf32>
    %32 = vector.broadcast %31 : vector<1x128xf32> to vector<64x128xf32>
    %33 = arith.addf %30, %32 : vector<64x128xf32>
    %cst_40 = arith.constant 0.000000e+00 : f32
    %34 = vector.broadcast %cst_40 : f32 to vector<64x128xf32>
    %35 = arith.maximumf %33, %34 : vector<64x128xf32>
    %36 = vector.shape_cast %35 : vector<64x128xf32> to vector<1x8x8x128xf32>
    %37 = arith.truncf %36 : vector<1x8x8x128xf32> to vector<1x8x8x128xbf16>
    %c0_41 = arith.constant 0 : index
    %c0_42 = arith.constant 0 : index
    %c0_43 = arith.constant 0 : index
    %c0_44 = arith.constant 0 : index
    %38 = vector.load %arg5[%c0_41, %c0_42, %c0_43, %c0_44] : memref<1x8x8x128xbf16, #tpu.memory_space<vmem>>, vector<1x8x8x128xbf16>
    tpu.vector_store %arg5[%c0_41, %c0_42, %c0_43, %c0_44], %37 {strides = array<i32>} : memref<1x8x8x128xbf16, #tpu.memory_space<vmem>>, vector<1x8x8x128xbf16>,
    return
  }
  func.func @transform_0(%arg0: i32) -> (i32, i32, i32, i32) {
    %c0_i32 = arith.constant 0 : i32
    %c0_i32_0 = arith.constant 0 : i32
    %c0_i32_1 = arith.constant 0 : i32
    %c0_i32_2 = arith.constant 0 : i32
    return %arg0, %c0_i32, %c0_i32_0, %c0_i32_1 : i32, i32, i32, i32
  }
  func.func @transform_1(%arg0: i32) -> (i32, i32) {
    %c0_i32 = arith.constant 0 : i32
    %c0_i32_0 = arith.constant 0 : i32
    %c0_i32_1 = arith.constant 0 : i32
    return %c0_i32, %c0_i32_0 : i32, i32
  }
  func.func @transform_2(%arg0: i32) -> (i32, i32) {
    %c0_i32 = arith.constant 0 : i32
    %c0_i32_0 = arith.constant 0 : i32
    %c0_i32_1 = arith.constant 0 : i32
    return %c0_i32, %c0_i32_0 : i32, i32
  }
  func.func @transform_3(%arg0: i32) -> (i32, i32, i32, i32) {
    %c0_i32 = arith.constant 0 : i32
    %c0_i32_0 = arith.constant 0 : i32
    %c0_i32_1 = arith.constant 0 : i32
    %c0_i32_2 = arith.constant 0 : i32
    return %arg0, %c0_i32, %c0_i32_0, %c0_i32_1 : i32, i32, i32, i32
  }
  func.func @transform_4(%arg0: i32) -> (i32, i32, i32, i32) {
    %c0_i32 = arith.constant 0 : i32
    %c0_i32_0 = arith.constant 0 : i32
    %c0_i32_1 = arith.constant 0 : i32
    %c0_i32_2 = arith.constant 0 : i32
    return %arg0, %c0_i32, %c0_i32_0, %c0_i32_1 : i32, i32, i32, i32
  }
}

module attributes {stable_mosaic.version = 11 : i64} {
  func.func @_conv3x3_bn_relu_kernel(%arg0: i32, %arg1: memref<1x10x10x128xbf16, #tpu.memory_space<vmem>>, %arg2: memref<9x128x128xbf16, #tpu.memory_space<vmem>>, %arg3: memref<1x128xf32, #tpu.memory_space<vmem>>, %arg4: memref<1x8x8x128xbf16, #tpu.memory_space<vmem>>) attributes {dimension_semantics = [#tpu.dimension_semantics<parallel>], iteration_bounds = array<i64: 2>, scalar_prefetch = 0 : i64, scratch_operands = 0 : i64, tpu.core_type = #tpu.core_type<tc>, window_params = [{transform_indices = @transform_0, window_bounds = array<i64: 1, 10, 10, 128>}, {pipeline_mode = #tpu.pipeline_mode<synchronous>, transform_indices = @transform_1, window_bounds = array<i64: 9, 128, 128>}, {pipeline_mode = #tpu.pipeline_mode<synchronous>, transform_indices = @transform_2, window_bounds = array<i64: 1, 128>}, {transform_indices = @transform_3, window_bounds = array<i64: 1, 8, 8, 128>}]} {
    %c0 = arith.constant 0 : index
    %c0_0 = arith.constant 0 : index
    %0 = vector.load %arg3[%c0, %c0_0] : memref<1x128xf32, #tpu.memory_space<vmem>>, vector<1x128xf32>
    %c0_1 = arith.constant 0 : index
    %c0_2 = arith.constant 0 : index
    %c0_3 = arith.constant 0 : index
    %c0_4 = arith.constant 0 : index
    %1 = vector.load %arg1[%c0_1, %c0_2, %c0_3, %c0_4] : memref<1x10x10x128xbf16, #tpu.memory_space<vmem>>, vector<1x8x8x128xbf16>
    %2 = vector.shape_cast %1 : vector<1x8x8x128xbf16> to vector<8x8x128xbf16>
    %3 = vector.shape_cast %2 : vector<8x8x128xbf16> to vector<64x128xbf16>
    %c0_5 = arith.constant 0 : index
    %c0_6 = arith.constant 0 : index
    %c1 = arith.constant 1 : index
    %c0_7 = arith.constant 0 : index
    %4 = vector.load %arg1[%c0_5, %c0_6, %c1, %c0_7] : memref<1x10x10x128xbf16, #tpu.memory_space<vmem>>, vector<1x8x8x128xbf16>
    %5 = vector.shape_cast %4 : vector<1x8x8x128xbf16> to vector<8x8x128xbf16>
    %6 = vector.shape_cast %5 : vector<8x8x128xbf16> to vector<64x128xbf16>
    %c0_8 = arith.constant 0 : index
    %c0_9 = arith.constant 0 : index
    %c2 = arith.constant 2 : index
    %c0_10 = arith.constant 0 : index
    %7 = vector.load %arg1[%c0_8, %c0_9, %c2, %c0_10] : memref<1x10x10x128xbf16, #tpu.memory_space<vmem>>, vector<1x8x8x128xbf16>
    %8 = vector.shape_cast %7 : vector<1x8x8x128xbf16> to vector<8x8x128xbf16>
    %9 = vector.shape_cast %8 : vector<8x8x128xbf16> to vector<64x128xbf16>
    %c0_11 = arith.constant 0 : index
    %c1_12 = arith.constant 1 : index
    %c0_13 = arith.constant 0 : index
    %c0_14 = arith.constant 0 : index
    %10 = vector.load %arg1[%c0_11, %c1_12, %c0_13, %c0_14] : memref<1x10x10x128xbf16, #tpu.memory_space<vmem>>, vector<1x8x8x128xbf16>
    %11 = vector.shape_cast %10 : vector<1x8x8x128xbf16> to vector<8x8x128xbf16>
    %12 = vector.shape_cast %11 : vector<8x8x128xbf16> to vector<64x128xbf16>
    %c0_15 = arith.constant 0 : index
    %c1_16 = arith.constant 1 : index
    %c1_17 = arith.constant 1 : index
    %c0_18 = arith.constant 0 : index
    %13 = vector.load %arg1[%c0_15, %c1_16, %c1_17, %c0_18] : memref<1x10x10x128xbf16, #tpu.memory_space<vmem>>, vector<1x8x8x128xbf16>
    %14 = vector.shape_cast %13 : vector<1x8x8x128xbf16> to vector<8x8x128xbf16>
    %15 = vector.shape_cast %14 : vector<8x8x128xbf16> to vector<64x128xbf16>
    %c0_19 = arith.constant 0 : index
    %c1_20 = arith.constant 1 : index
    %c2_21 = arith.constant 2 : index
    %c0_22 = arith.constant 0 : index
    %16 = vector.load %arg1[%c0_19, %c1_20, %c2_21, %c0_22] : memref<1x10x10x128xbf16, #tpu.memory_space<vmem>>, vector<1x8x8x128xbf16>
    %17 = vector.shape_cast %16 : vector<1x8x8x128xbf16> to vector<8x8x128xbf16>
    %18 = vector.shape_cast %17 : vector<8x8x128xbf16> to vector<64x128xbf16>
    %c0_23 = arith.constant 0 : index
    %c2_24 = arith.constant 2 : index
    %c0_25 = arith.constant 0 : index
    %c0_26 = arith.constant 0 : index
    %19 = vector.load %arg1[%c0_23, %c2_24, %c0_25, %c0_26] : memref<1x10x10x128xbf16, #tpu.memory_space<vmem>>, vector<1x8x8x128xbf16>
    %20 = vector.shape_cast %19 : vector<1x8x8x128xbf16> to vector<8x8x128xbf16>
    %21 = vector.shape_cast %20 : vector<8x8x128xbf16> to vector<64x128xbf16>
    %c0_27 = arith.constant 0 : index
    %c2_28 = arith.constant 2 : index
    %c1_29 = arith.constant 1 : index
    %c0_30 = arith.constant 0 : index
    %22 = vector.load %arg1[%c0_27, %c2_28, %c1_29, %c0_30] : memref<1x10x10x128xbf16, #tpu.memory_space<vmem>>, vector<1x8x8x128xbf16>
    %23 = vector.shape_cast %22 : vector<1x8x8x128xbf16> to vector<8x8x128xbf16>
    %24 = vector.shape_cast %23 : vector<8x8x128xbf16> to vector<64x128xbf16>
    %c0_31 = arith.constant 0 : index
    %c2_32 = arith.constant 2 : index
    %c2_33 = arith.constant 2 : index
    %c0_34 = arith.constant 0 : index
    %25 = vector.load %arg1[%c0_31, %c2_32, %c2_33, %c0_34] : memref<1x10x10x128xbf16, #tpu.memory_space<vmem>>, vector<1x8x8x128xbf16>
    %26 = vector.shape_cast %25 : vector<1x8x8x128xbf16> to vector<8x8x128xbf16>
    %27 = vector.shape_cast %26 : vector<8x8x128xbf16> to vector<64x128xbf16>
    %c0_35 = arith.constant 0 : index
    %c0_36 = arith.constant 0 : index
    %c0_37 = arith.constant 0 : index
    %28 = vector.load %arg2[%c0_35, %c0_36, %c0_37] : memref<9x128x128xbf16, #tpu.memory_space<vmem>>, vector<1x128x128xbf16>
    %29 = vector.shape_cast %28 : vector<1x128x128xbf16> to vector<128x128xbf16>
    %cst = arith.constant dense<0.000000e+00> : vector<64x128xf32>
    %30 = tpu.matmul %3, %29, %cst {dimension_numbers = #tpu.dot_dimension_numbers<[1], [0], [0], [1], [0, 0, 1, 1], [], []>} : vector<64x128xbf16>, vector<128x128xbf16>, vector<64x128xf32> -> vector<64x128xf32>
    %c1_38 = arith.constant 1 : index
    %c0_39 = arith.constant 0 : index
    %c0_40 = arith.constant 0 : index
    %31 = vector.load %arg2[%c1_38, %c0_39, %c0_40] : memref<9x128x128xbf16, #tpu.memory_space<vmem>>, vector<1x128x128xbf16>
    %32 = vector.shape_cast %31 : vector<1x128x128xbf16> to vector<128x128xbf16>
    %cst_41 = arith.constant dense<0.000000e+00> : vector<64x128xf32>
    %33 = tpu.matmul %6, %32, %cst_41 {dimension_numbers = #tpu.dot_dimension_numbers<[1], [0], [0], [1], [0, 0, 1, 1], [], []>} : vector<64x128xbf16>, vector<128x128xbf16>, vector<64x128xf32> -> vector<64x128xf32>
    %34 = arith.addf %30, %33 : vector<64x128xf32>
    %c2_42 = arith.constant 2 : index
    %c0_43 = arith.constant 0 : index
    %c0_44 = arith.constant 0 : index
    %35 = vector.load %arg2[%c2_42, %c0_43, %c0_44] : memref<9x128x128xbf16, #tpu.memory_space<vmem>>, vector<1x128x128xbf16>
    %36 = vector.shape_cast %35 : vector<1x128x128xbf16> to vector<128x128xbf16>
    %cst_45 = arith.constant dense<0.000000e+00> : vector<64x128xf32>
    %37 = tpu.matmul %9, %36, %cst_45 {dimension_numbers = #tpu.dot_dimension_numbers<[1], [0], [0], [1], [0, 0, 1, 1], [], []>} : vector<64x128xbf16>, vector<128x128xbf16>, vector<64x128xf32> -> vector<64x128xf32>
    %38 = arith.addf %34, %37 : vector<64x128xf32>
    %c3 = arith.constant 3 : index
    %c0_46 = arith.constant 0 : index
    %c0_47 = arith.constant 0 : index
    %39 = vector.load %arg2[%c3, %c0_46, %c0_47] : memref<9x128x128xbf16, #tpu.memory_space<vmem>>, vector<1x128x128xbf16>
    %40 = vector.shape_cast %39 : vector<1x128x128xbf16> to vector<128x128xbf16>
    %cst_48 = arith.constant dense<0.000000e+00> : vector<64x128xf32>
    %41 = tpu.matmul %12, %40, %cst_48 {dimension_numbers = #tpu.dot_dimension_numbers<[1], [0], [0], [1], [0, 0, 1, 1], [], []>} : vector<64x128xbf16>, vector<128x128xbf16>, vector<64x128xf32> -> vector<64x128xf32>
    %42 = arith.addf %38, %41 : vector<64x128xf32>
    %c4 = arith.constant 4 : index
    %c0_49 = arith.constant 0 : index
    %c0_50 = arith.constant 0 : index
    %43 = vector.load %arg2[%c4, %c0_49, %c0_50] : memref<9x128x128xbf16, #tpu.memory_space<vmem>>, vector<1x128x128xbf16>
    %44 = vector.shape_cast %43 : vector<1x128x128xbf16> to vector<128x128xbf16>
    %cst_51 = arith.constant dense<0.000000e+00> : vector<64x128xf32>
    %45 = tpu.matmul %15, %44, %cst_51 {dimension_numbers = #tpu.dot_dimension_numbers<[1], [0], [0], [1], [0, 0, 1, 1], [], []>} : vector<64x128xbf16>, vector<128x128xbf16>, vector<64x128xf32> -> vector<64x128xf32>
    %46 = arith.addf %42, %45 : vector<64x128xf32>
    %c5 = arith.constant 5 : index
    %c0_52 = arith.constant 0 : index
    %c0_53 = arith.constant 0 : index
    %47 = vector.load %arg2[%c5, %c0_52, %c0_53] : memref<9x128x128xbf16, #tpu.memory_space<vmem>>, vector<1x128x128xbf16>
    %48 = vector.shape_cast %47 : vector<1x128x128xbf16> to vector<128x128xbf16>
    %cst_54 = arith.constant dense<0.000000e+00> : vector<64x128xf32>
    %49 = tpu.matmul %18, %48, %cst_54 {dimension_numbers = #tpu.dot_dimension_numbers<[1], [0], [0], [1], [0, 0, 1, 1], [], []>} : vector<64x128xbf16>, vector<128x128xbf16>, vector<64x128xf32> -> vector<64x128xf32>
    %50 = arith.addf %46, %49 : vector<64x128xf32>
    %c6 = arith.constant 6 : index
    %c0_55 = arith.constant 0 : index
    %c0_56 = arith.constant 0 : index
    %51 = vector.load %arg2[%c6, %c0_55, %c0_56] : memref<9x128x128xbf16, #tpu.memory_space<vmem>>, vector<1x128x128xbf16>
    %52 = vector.shape_cast %51 : vector<1x128x128xbf16> to vector<128x128xbf16>
    %cst_57 = arith.constant dense<0.000000e+00> : vector<64x128xf32>
    %53 = tpu.matmul %21, %52, %cst_57 {dimension_numbers = #tpu.dot_dimension_numbers<[1], [0], [0], [1], [0, 0, 1, 1], [], []>} : vector<64x128xbf16>, vector<128x128xbf16>, vector<64x128xf32> -> vector<64x128xf32>
    %54 = arith.addf %50, %53 : vector<64x128xf32>
    %c7 = arith.constant 7 : index
    %c0_58 = arith.constant 0 : index
    %c0_59 = arith.constant 0 : index
    %55 = vector.load %arg2[%c7, %c0_58, %c0_59] : memref<9x128x128xbf16, #tpu.memory_space<vmem>>, vector<1x128x128xbf16>
    %56 = vector.shape_cast %55 : vector<1x128x128xbf16> to vector<128x128xbf16>
    %cst_60 = arith.constant dense<0.000000e+00> : vector<64x128xf32>
    %57 = tpu.matmul %24, %56, %cst_60 {dimension_numbers = #tpu.dot_dimension_numbers<[1], [0], [0], [1], [0, 0, 1, 1], [], []>} : vector<64x128xbf16>, vector<128x128xbf16>, vector<64x128xf32> -> vector<64x128xf32>
    %58 = arith.addf %54, %57 : vector<64x128xf32>
    %c8 = arith.constant 8 : index
    %c0_61 = arith.constant 0 : index
    %c0_62 = arith.constant 0 : index
    %59 = vector.load %arg2[%c8, %c0_61, %c0_62] : memref<9x128x128xbf16, #tpu.memory_space<vmem>>, vector<1x128x128xbf16>
    %60 = vector.shape_cast %59 : vector<1x128x128xbf16> to vector<128x128xbf16>
    %cst_63 = arith.constant dense<0.000000e+00> : vector<64x128xf32>
    %61 = tpu.matmul %27, %60, %cst_63 {dimension_numbers = #tpu.dot_dimension_numbers<[1], [0], [0], [1], [0, 0, 1, 1], [], []>} : vector<64x128xbf16>, vector<128x128xbf16>, vector<64x128xf32> -> vector<64x128xf32>
    %62 = arith.addf %58, %61 : vector<64x128xf32>
    %63 = vector.broadcast %0 : vector<1x128xf32> to vector<64x128xf32>
    %64 = arith.addf %62, %63 : vector<64x128xf32>
    %cst_64 = arith.constant 0.000000e+00 : f32
    %65 = vector.broadcast %cst_64 : f32 to vector<64x128xf32>
    %66 = arith.maximumf %64, %65 : vector<64x128xf32>
    %67 = vector.shape_cast %66 : vector<64x128xf32> to vector<8x8x128xf32>
    %68 = arith.truncf %67 : vector<8x8x128xf32> to vector<8x8x128xbf16>
    %c0_65 = arith.constant 0 : index
    %c0_66 = arith.constant 0 : index
    %c0_67 = arith.constant 0 : index
    %c0_68 = arith.constant 0 : index
    %69 = vector.load %arg4[%c0_65, %c0_66, %c0_67, %c0_68] : memref<1x8x8x128xbf16, #tpu.memory_space<vmem>>, vector<1x8x8x128xbf16>
    %70 = vector.shape_cast %69 : vector<1x8x8x128xbf16> to vector<8x8x128xbf16>
    %71 = vector.shape_cast %68 : vector<8x8x128xbf16> to vector<1x8x8x128xbf16>
    tpu.vector_store %arg4[%c0_65, %c0_66, %c0_67, %c0_68], %71 {strides = array<i32>} : memref<1x8x8x128xbf16, #tpu.memory_space<vmem>>, vector<1x8x8x128xbf16>,
    return
  }
  func.func @transform_0(%arg0: i32) -> (i32, i32, i32, i32) {
    %c0_i32 = arith.constant 0 : i32
    %c0_i32_0 = arith.constant 0 : i32
    %c0_i32_1 = arith.constant 0 : i32
    %c0_i32_2 = arith.constant 0 : i32
    return %arg0, %c0_i32, %c0_i32_0, %c0_i32_1 : i32, i32, i32, i32
  }
  func.func @transform_1(%arg0: i32) -> (i32, i32, i32) {
    %c0_i32 = arith.constant 0 : i32
    %c0_i32_0 = arith.constant 0 : i32
    %c0_i32_1 = arith.constant 0 : i32
    %c0_i32_2 = arith.constant 0 : i32
    return %c0_i32, %c0_i32_0, %c0_i32_1 : i32, i32, i32
  }
  func.func @transform_2(%arg0: i32) -> (i32, i32) {
    %c0_i32 = arith.constant 0 : i32
    %c0_i32_0 = arith.constant 0 : i32
    %c0_i32_1 = arith.constant 0 : i32
    return %c0_i32, %c0_i32_0 : i32, i32
  }
  func.func @transform_3(%arg0: i32) -> (i32, i32, i32, i32) {
    %c0_i32 = arith.constant 0 : i32
    %c0_i32_0 = arith.constant 0 : i32
    %c0_i32_1 = arith.constant 0 : i32
    %c0_i32_2 = arith.constant 0 : i32
    return %arg0, %c0_i32, %c0_i32_0, %c0_i32_1 : i32, i32, i32, i32
  }
}

module attributes {stable_mosaic.version = 11 : i64} {
  func.func @_tail_kernel(%arg0: i32, %arg1: i32, %arg2: memref<1x64x128xbf16, #tpu.memory_space<vmem>>, %arg3: memref<1x64x128xbf16, #tpu.memory_space<vmem>>, %arg4: memref<256x256xbf16, #tpu.memory_space<vmem>>, %arg5: memref<1x256xf32, #tpu.memory_space<vmem>>, %arg6: memref<1x1x256xf32, #tpu.memory_space<vmem>>, %arg7: memref<1x256xf32, #tpu.memory_space<vmem>>) attributes {dimension_semantics = [#tpu.dimension_semantics<parallel>, #tpu.dimension_semantics<arbitrary>], iteration_bounds = array<i64: 2, 1>, scalar_prefetch = 0 : i64, scratch_operands = 1 : i64, tpu.core_type = #tpu.core_type<tc>, window_params = [{transform_indices = @transform_0, window_bounds = array<i64: 1, 64, 128>}, {transform_indices = @transform_1, window_bounds = array<i64: 1, 64, 128>}, {pipeline_mode = #tpu.pipeline_mode<synchronous>, transform_indices = @transform_2, window_bounds = array<i64: 256, 256>}, {pipeline_mode = #tpu.pipeline_mode<synchronous>, transform_indices = @transform_3, window_bounds = array<i64: 1, 256>}, {transform_indices = @transform_4, window_bounds = array<i64: 1, 1, 256>}]} {
    %c0_i32 = arith.constant 0 : i32
    %0 = arith.cmpi eq, %arg1, %c0_i32 : i32
    %1 = arith.extui %0 : i1 to i32
    %c0_i32_0 = arith.constant 0 : i32
    %2 = arith.cmpi ne, %1, %c0_i32_0 : i32
    scf.if %2 {
      %cst_18 = arith.constant 0.000000e+00 : f32
      %23 = vector.broadcast %cst_18 : f32 to vector<1x256xf32>
      %c0_19 = arith.constant 0 : index
      %c0_20 = arith.constant 0 : index
      %24 = vector.load %arg7[%c0_19, %c0_20] : memref<1x256xf32, #tpu.memory_space<vmem>>, vector<1x256xf32>
      tpu.vector_store %arg7[%c0_19, %c0_20], %23 {strides = array<i32>} : memref<1x256xf32, #tpu.memory_space<vmem>>, vector<1x256xf32>,
    } else {
    }
    %c0 = arith.constant 0 : index
    %c0_1 = arith.constant 0 : index
    %c0_2 = arith.constant 0 : index
    %3 = vector.load %arg2[%c0, %c0_1, %c0_2] : memref<1x64x128xbf16, #tpu.memory_space<vmem>>, vector<1x64x128xbf16>
    %4 = vector.shape_cast %3 : vector<1x64x128xbf16> to vector<64x128xbf16>
    %c0_3 = arith.constant 0 : index
    %c0_4 = arith.constant 0 : index
    %c0_5 = arith.constant 0 : index
    %5 = vector.load %arg3[%c0_3, %c0_4, %c0_5] : memref<1x64x128xbf16, #tpu.memory_space<vmem>>, vector<1x64x128xbf16>
    %6 = vector.shape_cast %5 : vector<1x64x128xbf16> to vector<64x128xbf16>
    %7 = tpu.concatenate %4, %6 in 1 : vector<64x128xbf16>, vector<64x128xbf16> -> vector<64x256xbf16>
    %c0_6 = arith.constant 0 : index
    %c0_7 = arith.constant 0 : index
    %8 = vector.load %arg4[%c0_6, %c0_7] : memref<256x256xbf16, #tpu.memory_space<vmem>>, vector<256x256xbf16>
    %cst = arith.constant dense<0.000000e+00> : vector<64x256xf32>
    %9 = tpu.matmul %7, %8, %cst {dimension_numbers = #tpu.dot_dimension_numbers<[1], [0], [0], [1], [0, 0, 1, 1], [], []>} : vector<64x256xbf16>, vector<256x256xbf16>, vector<64x256xf32> -> vector<64x256xf32>
    %c0_8 = arith.constant 0 : index
    %c0_9 = arith.constant 0 : index
    %10 = vector.load %arg5[%c0_8, %c0_9] : memref<1x256xf32, #tpu.memory_space<vmem>>, vector<1x256xf32>
    %11 = vector.broadcast %10 : vector<1x256xf32> to vector<64x256xf32>
    %12 = arith.addf %9, %11 : vector<64x256xf32>
    %cst_10 = arith.constant 0.000000e+00 : f32
    %13 = vector.broadcast %cst_10 : f32 to vector<64x256xf32>
    %14 = arith.maximumf %12, %13 : vector<64x256xf32>
    %c0_11 = arith.constant 0 : index
    %c0_12 = arith.constant 0 : index
    %15 = vector.load %arg7[%c0_11, %c0_12] : memref<1x256xf32, #tpu.memory_space<vmem>>, vector<1x256xf32>
    %cst_13 = arith.constant dense<0.000000e+00> : vector<256xf32>
    %16 = vector.multi_reduction <add>, %14, %cst_13 [0] : vector<64x256xf32> to vector<256xf32>
    %17 = vector.shape_cast %16 : vector<256xf32> to vector<1x256xf32>
    %18 = arith.addf %15, %17 : vector<1x256xf32>
    %c0_14 = arith.constant 0 : index
    %c0_15 = arith.constant 0 : index
    %19 = vector.load %arg7[%c0_14, %c0_15] : memref<1x256xf32, #tpu.memory_space<vmem>>, vector<1x256xf32>
    tpu.vector_store %arg7[%c0_14, %c0_15], %18 {strides = array<i32>} : memref<1x256xf32, #tpu.memory_space<vmem>>, vector<1x256xf32>,
    %c0_i32_16 = arith.constant 0 : i32
    %20 = arith.cmpi eq, %arg1, %c0_i32_16 : i32
    %21 = arith.extui %20 : i1 to i32
    %c0_i32_17 = arith.constant 0 : i32
    %22 = arith.cmpi ne, %21, %c0_i32_17 : i32
    scf.if %22 {
      %c0_18 = arith.constant 0 : index
      %c0_19 = arith.constant 0 : index
      %23 = vector.load %arg7[%c0_18, %c0_19] : memref<1x256xf32, #tpu.memory_space<vmem>>, vector<1x256xf32>
      %cst_20 = arith.constant 1.562500e-02 : f32
      %24 = vector.broadcast %cst_20 : f32 to vector<1x256xf32>
      %25 = arith.mulf %23, %24 : vector<1x256xf32>
      %26 = vector.shape_cast %25 : vector<1x256xf32> to vector<1x1x256xf32>
      %c0_21 = arith.constant 0 : index
      %c0_22 = arith.constant 0 : index
      %c0_23 = arith.constant 0 : index
      %27 = vector.load %arg6[%c0_21, %c0_22, %c0_23] : memref<1x1x256xf32, #tpu.memory_space<vmem>>, vector<1x1x256xf32>
      tpu.vector_store %arg6[%c0_21, %c0_22, %c0_23], %26 {strides = array<i32>} : memref<1x1x256xf32, #tpu.memory_space<vmem>>, vector<1x1x256xf32>,
    } else {
    }
    return
  }
  func.func @transform_0(%arg0: i32, %arg1: i32) -> (i32, i32, i32) {
    %c0_i32 = arith.constant 0 : i32
    %c0_i32_0 = arith.constant 0 : i32
    return %arg0, %arg1, %c0_i32 : i32, i32, i32
  }
  func.func @transform_1(%arg0: i32, %arg1: i32) -> (i32, i32, i32) {
    %c0_i32 = arith.constant 0 : i32
    %c0_i32_0 = arith.constant 0 : i32
    return %arg0, %arg1, %c0_i32 : i32, i32, i32
  }
  func.func @transform_2(%arg0: i32, %arg1: i32) -> (i32, i32) {
    %c0_i32 = arith.constant 0 : i32
    %c0_i32_0 = arith.constant 0 : i32
    %c0_i32_1 = arith.constant 0 : i32
    return %c0_i32, %c0_i32_0 : i32, i32
  }
  func.func @transform_3(%arg0: i32, %arg1: i32) -> (i32, i32) {
    %c0_i32 = arith.constant 0 : i32
    %c0_i32_0 = arith.constant 0 : i32
    %c0_i32_1 = arith.constant 0 : i32
    return %c0_i32, %c0_i32_0 : i32, i32
  }
  func.func @transform_4(%arg0: i32, %arg1: i32) -> (i32, i32, i32) {
    %c0_i32 = arith.constant 0 : i32
    %c0_i32_0 = arith.constant 0 : i32
    %c0_i32_1 = arith.constant 0 : i32
    return %arg0, %c0_i32, %c0_i32_0 : i32, i32, i32
  }
}

</mosaic_0001>

<bundles_post_ra>
// kernel: timm_encoder_forward.4
= control target key start
LH: loop header
LB: loop body
LE: loop exit
PB: predicated region body
PF: predicated region fallthrough
CT: control target
= control target key end

     0   :  { %v1785_v0 = vmov 0   ;;  %vm450_vm0 = vcmask 154624   ;;  %vm547_vm1 = vcmask 1040384   ;;  %vm548_vm2 = vcmask 1041408   ;;  %s2226_s1 = inlined_call_operand.vmem [shape: bf16[147,128], index: 1, kind: input, shape index: {}]   ;;  %s2227_s0 = inlined_call_operand.vmem [shape: bf16[512,147], index: 0, kind: input, shape index: {}]   ;;  %s2228_s2 = inlined_call_operand.vmem [shape: f32[1,128], index: 2, kind: input, shape index: {}]   ;;  %s2229_s3 = inlined_call_operand.vmem [shape: bf16[512,128], index: 3, kind: output, shape index: {}]  }
   0x1   :  { %554 = vmatprep.subr.bf16.mxu0 %v1785_v0  ;;  %1657 = vmatprep.subr.bf16.mxu1 %v1785_v0  ;;  %v1679_v1 = vld [vmem:[%s2226_s1 + $0x38] sm:$0xff]   ;;  %v1680_v2 = vld [vmem:[%s2226_s1 + $0x30] sm:$0xff]   ;;  %v1681_v3 = vld [vmem:[%s2226_s1 + $0x28] sm:$0xff]   ;;  %v1786_v10 = vmov 65535  }
   0x2   :  { %555 = vmatpush1.bf16.msra.mxu0 %v1679_v1  ;;  %1667 = vmatpush1.bf16.msra.mxu1 %v1679_v1  ;;  %v1682_v4 = vld [vmem:[%s2226_s1 + $0x20] sm:$0xff]   ;;  %v1683_v7 = vld [vmem:[%s2226_s1 + $0x18] sm:$0xff]   ;;  %v1684_v8 = vld [vmem:[%s2226_s1 + $0x10] sm:$0xff]   ;;  %v549_v11 = vsel %vm547_vm1, 4294967295, %v1786_v10 }
   0x3   :  { %556 = vmatprep.subr.bf16.mxu0 %v1785_v0  ;;  %1658 = vmatprep.subr.bf16.mxu1 %v1785_v0  ;;  %v1691_v5 = vld [vmem:[%s2227_s0 + $0x4] ss:$8 sps:$4 sm:$0xff]   ;;  %v1687_v13 = vld [vmem:[%s2226_s1 + $0x48] ss:$0 sps:$4 sm:$0x33]   ;;  %v550_v14 = vsel %vm548_vm2, %v549_v11, 0 }
   0x4   :  { %1306 = vmatprep.mubr.msk.bf16.mxu0 %vm450_vm0, %v1691_v5  ;;  %v1694_v6 = vld [vmem:[%s2227_s0 + $0x104] ss:$8 sps:$4 sm:$0xff]   ;;  %v552_v15 = vand.u32 %v1687_v13, %v550_v14  ;;  %v1689_v17 = vld [vmem:[%s2227_s0] ss:$8 sps:$4 sm:$0xff]   ;;  %v1695_v19 = vld [vmem:[%s2227_s0 + $0x14] ss:$8 sps:$4 sm:$0xff]  }
   0x5   :  { %1322 = vmatprep.mubr.msk.bf16.mxu1 %vm450_vm0, %v1694_v6  ;;  %v1685_v9 = vld [vmem:[%s2226_s1 + $0x8] sm:$0xff]   ;;  %v1686_v12 = vld [vmem:[%s2226_s1] sm:$0xff]   ;;  %v1697_v20 = vld [vmem:[%s2227_s0 + $0x114] ss:$8 sps:$4 sm:$0xff]  }
   0x6   :  { %557 = vmatpush1.bf16.msra.mxu0 %v1680_v2  ;;  %1668 = vmatpush1.bf16.msra.mxu1 %v1680_v2  ;;  %v1688_v16 = vld [vmem:[%s2226_s1 + $0x40] sm:$0xff]   ;;  %v1699_v21 = vld [vmem:[%s2227_s0 + $0x10] ss:$8 sps:$4 sm:$0xff]   ;;  %v1707_v27 = vld [vmem:[%s2227_s0 + $0x34] ss:$8 sps:$4 sm:$0xff]  }
   0x7   :  { %558 = vmatprep.subr.bf16.mxu0 %v1785_v0  ;;  %1659 = vmatprep.subr.bf16.mxu1 %v1785_v0  ;;  %v1692_v18 = vld [vmem:[%s2227_s0 + $0x100] ss:$8 sps:$4 sm:$0xff]   ;;  %v1700_v22 = vld [vmem:[%s2227_s0 + $0x110] ss:$8 sps:$4 sm:$0xff]   ;;  %v1701_v23 = vld [vmem:[%s2227_s0 + $0x24] ss:$8 sps:$4 sm:$0xff]  }
   0x8   :  { %v1703_v24 = vld [vmem:[%s2227_s0 + $0x124] ss:$8 sps:$4 sm:$0xff]   ;;  %v1705_v25 = vld [vmem:[%s2227_s0 + $0x20] ss:$8 sps:$4 sm:$0xff]   ;;  %v1709_v28 = vld [vmem:[%s2227_s0 + $0x134] ss:$8 sps:$4 sm:$0xff]  }
   0x9   :  { %v1706_v26 = vld [vmem:[%s2227_s0 + $0x120] ss:$8 sps:$4 sm:$0xff]   ;;  %v1711_v29 = vld [vmem:[%s2227_s0 + $0x30] ss:$8 sps:$4 sm:$0xff]   ;;  %v1713_v31 = vld [vmem:[%s2227_s0 + $0x44] ss:$8 sps:$4 sm:$0xff]  }
   0xa   :  { %559 = vmatpush1.bf16.msra.mxu0 %v1681_v3  ;;  %1669 = vmatpush1.bf16.msra.mxu1 %v1681_v3  ;;  %v1712_v30 = vld [vmem:[%s2227_s0 + $0x130] ss:$8 sps:$4 sm:$0xff]   ;;  %v1715_v32 = vld [vmem:[%s2227_s0 + $0x144] ss:$8 sps:$4 sm:$0xff]   ;;  %v1717_v33 = vld [vmem:[%s2227_s0 + $0x40] ss:$8 sps:$4 sm:$0xff]  }
   0xb   :  { %560 = vmatprep.subr.bf16.mxu0 %v1785_v0  ;;  %1660 = vmatprep.subr.bf16.mxu1 %v1785_v0  ;;  %v1718_v34 = vld [vmem:[%s2227_s0 + $0x140] ss:$8 sps:$4 sm:$0xff]   ;;  %v1719_v35 = vld [vmem:[%s2227_s0 + $0x54] ss:$8 sps:$4 sm:$0xff]   ;;  %v1723_v37 = vld [vmem:[%s2227_s0 + $0x50] ss:$8 sps:$4 sm:$0xff]  }
   0xc   :  { %v1721_v36 = vld [vmem:[%s2227_s0 + $0x154] ss:$8 sps:$4 sm:$0xff]   ;;  %v1724_v38 = vld [vmem:[%s2227_s0 + $0x150] ss:$8 sps:$4 sm:$0xff]   ;;  %v1725_v39 = vld [vmem:[%s2227_s0 + $0x64] ss:$8 sps:$4 sm:$0xff]  }
   0xd   :  { %v1727_v40 = vld [vmem:[%s2227_s0 + $0x164] ss:$8 sps:$4 sm:$0xff]   ;;  %v1729_v41 = vld [vmem:[%s2227_s0 + $0x60] ss:$8 sps:$4 sm:$0xff]   ;;  %v1731_v43 = vld [vmem:[%s2227_s0 + $0x74] ss:$8 sps:$4 sm:$0xff]  }
   0xe   :  { %561 = vmatpush1.bf16.msra.mxu0 %v1682_v4  ;;  %1670 = vmatpush1.bf16.msra.mxu1 %v1682_v4  ;;  %v1730_v42 = vld [vmem:[%s2227_s0 + $0x160] ss:$8 sps:$4 sm:$0xff]   ;;  %v1733_v44 = vld [vmem:[%s2227_s0 + $0x174] ss:$8 sps:$4 sm:$0xff]   ;;  %v1735_v45 = vld [vmem:[%s2227_s0 + $0x70] ss:$8 sps:$4 sm:$0xff]  }
   0xf   :  { %562 = vmatprep.subr.bf16.mxu0 %v1785_v0  ;;  %1661 = vmatprep.subr.bf16.mxu1 %v1785_v0  ;;  %v1736_v46 = vld [vmem:[%s2227_s0 + $0x170] ss:$8 sps:$4 sm:$0xff]   ;;  %v1737_v47 = vld [vmem:[%s2227_s0 + $0x84] ss:$8 sps:$4 sm:$0xff]   ;;  %v1741_v49 = vld [vmem:[%s2227_s0 + $0x80] ss:$8 sps:$4 sm:$0xff]  }
  0x10   :  { %v1739_v48 = vld [vmem:[%s2227_s0 + $0x184] ss:$8 sps:$4 sm:$0xff]   ;;  %v1742_v50 = vld [vmem:[%s2227_s0 + $0x180] ss:$8 sps:$4 sm:$0xff]   ;;  %v1743_v51 = vld [vmem:[%s2227_s0 + $0x94] ss:$8 sps:$4 sm:$0xff]  }
  0x11   :  { %v1745_v52 = vld [vmem:[%s2227_s0 + $0x194] ss:$8 sps:$4 sm:$0xff]   ;;  %v1747_v53 = vld [vmem:[%s2227_s0 + $0x90] ss:$8 sps:$4 sm:$0xff]   ;;  %v1749_v55 = vld [vmem:[%s2227_s0 + $0xa4] ss:$8 sps:$4 sm:$0xff]  }
  0x12   :  { %563 = vmatpush1.bf16.msra.mxu0 %v1683_v7  ;;  %1671 = vmatpush1.bf16.msra.mxu1 %v1683_v7  ;;  %v1748_v54 = vld [vmem:[%s2227_s0 + $0x190] ss:$8 sps:$4 sm:$0xff]   ;;  %v1751_v56 = vld [vmem:[%s2227_s0 + $0x1a4] ss:$8 sps:$4 sm:$0xff]   ;;  %v1753_v57 = vld [vmem:[%s2227_s0 + $0xa0] ss:$8 sps:$4 sm:$0xff]  }
  0x13   :  { %564 = vmatprep.subr.bf16.mxu0 %v1785_v0  ;;  %1662 = vmatprep.subr.bf16.mxu1 %v1785_v0  ;;  %v1754_v58 = vld [vmem:[%s2227_s0 + $0x1a0] ss:$8 sps:$4 sm:$0xff]   ;;  %v1755_v59 = vld [vmem:[%s2227_s0 + $0xb4] ss:$8 sps:$4 sm:$0xff]   ;;  %v1759_v61 = vld [vmem:[%s2227_s0 + $0xb0] ss:$8 sps:$4 sm:$0xff]  }
  0x14   :  { %v1757_v60 = vld [vmem:[%s2227_s0 + $0x1b4] ss:$8 sps:$4 sm:$0xff]   ;;  %v1760_v62 = vld [vmem:[%s2227_s0 + $0x1b0] ss:$8 sps:$4 sm:$0xff]   ;;  %v1761_v63 = vld [vmem:[%s2227_s0 + $0xc4] ss:$8 sps:$4 sm:$0xff]  }
  0x15   :  { %v1765_v1 = vld [vmem:[%s2227_s0 + $0xc0] ss:$8 sps:$4 sm:$0xff]   ;;  %v1767_v3 = vld [vmem:[%s2227_s0 + $0xd4] ss:$8 sps:$4 sm:$0xff]   ;;  %v1771_v5 = vld [vmem:[%s2227_s0 + $0xd0] ss:$8 sps:$4 sm:$0xff]  }
  0x16   :  { %565 = vmatpush1.bf16.msra.mxu0 %v1684_v8  ;;  %1672 = vmatpush1.bf16.msra.mxu1 %v1684_v8  ;;  %v1766_v2 = vld [vmem:[%s2227_s0 + $0x1c0] ss:$8 sps:$4 sm:$0xff]   ;;  %v1769_v4 = vld [vmem:[%s2227_s0 + $0x1d4] ss:$8 sps:$4 sm:$0xff]   ;;  %v1772_v6 = vld [vmem:[%s2227_s0 + $0x1d0] ss:$8 sps:$4 sm:$0xff]  }
  0x17   :  { %566 = vmatprep.subr.bf16.mxu0 %v1785_v0  ;;  %1663 = vmatprep.subr.bf16.mxu1 %v1785_v0  ;;  %v1773_v7 = vld [vmem:[%s2227_s0 + $0xe4] ss:$8 sps:$4 sm:$0xff]   ;;  %v1778_v10 = vld [vmem:[%s2227_s0 + $0x1e0] ss:$8 sps:$4 sm:$0xff]   ;;  %v1779_v11 = vld [vmem:[%s2227_s0 + $0xf4] ss:$8 sps:$4 sm:$0xff]  }
  0x18   :  { %v1775_v8 = vld [vmem:[%s2227_s0 + $0x1e4] ss:$8 sps:$4 sm:$0xff]   ;;  %v1783_v13 = vld [vmem:[%s2227_s0 + $0xf0] ss:$8 sps:$4 sm:$0xff]  }
  0x19   :  { %v1784_v14 = vld [vmem:[%s2227_s0 + $0x1f0] ss:$8 sps:$4 sm:$0xff]  }
  0x1a   :  { %567 = vmatpush1.bf16.msra.mxu0 %v1685_v9  ;;  %1673 = vmatpush1.bf16.msra.mxu1 %v1685_v9  ;;  %v1777_v9 = vld [vmem:[%s2227_s0 + $0xe0] ss:$8 sps:$4 sm:$0xff]  }
  0x1b   :  { %568 = vmatprep.subr.bf16.mxu0 %v1785_v0  ;;  %1664 = vmatprep.subr.bf16.mxu1 %v1785_v0 }
  0x1e   :  { %569 = vmatpush1.bf16.msra.mxu0 %v1686_v12  ;;  %1674 = vmatpush1.bf16.msra.mxu1 %v1686_v12  ;;  %v1781_v12 = vld [vmem:[%s2227_s0 + $0x1f4] ss:$8 sps:$4 sm:$0xff]  }
  0x1f   :  { %582 = vmatprep.subr.bf16.mxu0 %v1785_v0  ;;  %1665 = vmatprep.subr.bf16.mxu1 %v1785_v0 }
  0x22   :  { %583 = vmatpush2.bf16.msra.mxu0 %v552_v15  ;;  %1675 = vmatpush2.bf16.msra.mxu1 %v552_v15  ;;  %v2064_v15 = vld [vmem:[%s2228_s2] ss:$0 sm:$0xff] }
  0x23   :  { %584 = vmatprep.subr.bf16.mxu0 %v1785_v0  ;;  %1666 = vmatprep.subr.bf16.mxu1 %v1785_v0  ;;  %v1763_v0 = vld [vmem:[%s2227_s0 + $0x1c4] ss:$8 sps:$4 sm:$0xff]  }
  0x26   :  { %585 = vmatpush2.bf16.msra.mxu0 %v1688_v16  ;;  %1676 = vmatpush2.bf16.msra.mxu1 %v1688_v16 }
  0x29   :  { %587 = vmatmul.mubr.bf16.vlgmr.msra.gmra.mxu0 %v1689_v17  ;;  %715 = vmatmul.mubr.bf16.vlgmr.msra.gmra.mxu1 %v1692_v18 }
  0x2a   :  { %1307 = vmatprep.mubr.msk.bf16.mxu0 %vm450_vm0, %v1695_v19  ;;  %1323 = vmatprep.mubr.msk.bf16.mxu1 %vm450_vm0, %v1697_v20 }
  0x31   :  { %595 = vmatmul.mubr.bf16.gmra.mxu0 %v1699_v21  ;;  %723 = vmatmul.mubr.bf16.gmra.mxu1 %v1700_v22 }
  0x32   :  { %1308 = vmatprep.mubr.msk.bf16.mxu0 %vm450_vm0, %v1701_v23  ;;  %1324 = vmatprep.mubr.msk.bf16.mxu1 %vm450_vm0, %v1703_v24 }
  0x39   :  { %603 = vmatmul.mubr.bf16.gmra.mxu0 %v1705_v25  ;;  %731 = vmatmul.mubr.bf16.gmra.mxu1 %v1706_v26 }
  0x3a   :  { %1309 = vmatprep.mubr.msk.bf16.mxu0 %vm450_vm0, %v1707_v27  ;;  %1325 = vmatprep.mubr.msk.bf16.mxu1 %vm450_vm0, %v1709_v28 }
  0x41   :  { %611 = vmatmul.mubr.bf16.gmra.mxu0 %v1711_v29  ;;  %739 = vmatmul.mubr.bf16.gmra.mxu1 %v1712_v30 }
  0x42   :  { %1310 = vmatprep.mubr.msk.bf16.mxu0 %vm450_vm0, %v1713_v31  ;;  %1326 = vmatprep.mubr.msk.bf16.mxu1 %vm450_vm0, %v1715_v32 }
  0x49   :  { %619 = vmatmul.mubr.bf16.gmra.mxu0 %v1717_v33  ;;  %747 = vmatmul.mubr.bf16.gmra.mxu1 %v1718_v34 }
  0x4a   :  { %1311 = vmatprep.mubr.msk.bf16.mxu0 %vm450_vm0, %v1719_v35  ;;  %1327 = vmatprep.mubr.msk.bf16.mxu1 %vm450_vm0, %v1721_v36 }
  0x51   :  { %627 = vmatmul.mubr.bf16.gmra.mxu0 %v1723_v37  ;;  %755 = vmatmul.mubr.bf16.gmra.mxu1 %v1724_v38 }
  0x52   :  { %1312 = vmatprep.mubr.msk.bf16.mxu0 %vm450_vm0, %v1725_v39  ;;  %1328 = vmatprep.mubr.msk.bf16.mxu1 %vm450_vm0, %v1727_v40 }
  0x59   :  { %635 = vmatmul.mubr.bf16.gmra.mxu0 %v1729_v41  ;;  %763 = vmatmul.mubr.bf16.gmra.mxu1 %v1730_v42 }
  0x5a   :  { %1313 = vmatprep.mubr.msk.bf16.mxu0 %vm450_vm0, %v1731_v43  ;;  %1329 = vmatprep.mubr.msk.bf16.mxu1 %vm450_vm0, %v1733_v44 }
  0x61   :  { %643 = vmatmul.mubr.bf16.gmra.mxu0 %v1735_v45  ;;  %771 = vmatmul.mubr.bf16.gmra.mxu1 %v1736_v46 }
  0x62   :  { %1314 = vmatprep.mubr.msk.bf16.mxu0 %vm450_vm0, %v1737_v47  ;;  %1330 = vmatprep.mubr.msk.bf16.mxu1 %vm450_vm0, %v1739_v48 }
  0x69   :  { %651 = vmatmul.mubr.bf16.gmra.mxu0 %v1741_v49  ;;  %779 = vmatmul.mubr.bf16.gmra.mxu1 %v1742_v50 }
  0x6a   :  { %1315 = vmatprep.mubr.msk.bf16.mxu0 %vm450_vm0, %v1743_v51  ;;  %1331 = vmatprep.mubr.msk.bf16.mxu1 %vm450_vm0, %v1745_v52 }
  0x71   :  { %659 = vmatmul.mubr.bf16.gmra.mxu0 %v1747_v53  ;;  %787 = vmatmul.mubr.bf16.gmra.mxu1 %v1748_v54 }
  0x72   :  { %1316 = vmatprep.mubr.msk.bf16.mxu0 %vm450_vm0, %v1749_v55  ;;  %1332 = vmatprep.mubr.msk.bf16.mxu1 %vm450_vm0, %v1751_v56 }
  0x79   :  { %667 = vmatmul.mubr.bf16.gmra.mxu0 %v1753_v57  ;;  %795 = vmatmul.mubr.bf16.gmra.mxu1 %v1754_v58 }
  0x7a   :  { %1317 = vmatprep.mubr.msk.bf16.mxu0 %vm450_vm0, %v1755_v59  ;;  %1333 = vmatprep.mubr.msk.bf16.mxu1 %vm450_vm0, %v1757_v60 }
  0x81   :  { %675 = vmatmul.mubr.bf16.gmra.mxu0 %v1759_v61  ;;  %803 = vmatmul.mubr.bf16.gmra.mxu1 %v1760_v62 }
  0x82   :  { %1318 = vmatprep.mubr.msk.bf16.mxu0 %vm450_vm0, %v1761_v63  ;;  %1334 = vmatprep.mubr.msk.bf16.mxu1 %vm450_vm0, %v1763_v0 }
  0x89   :  { %683 = vmatmul.mubr.bf16.gmra.mxu0 %v1765_v1  ;;  %811 = vmatmul.mubr.bf16.gmra.mxu1 %v1766_v2 }
  0x8a   :  { %1319 = vmatprep.mubr.msk.bf16.mxu0 %vm450_vm0, %v1767_v3  ;;  %1335 = vmatprep.mubr.msk.bf16.mxu1 %vm450_vm0, %v1769_v4 }
  0x91   :  { %691 = vmatmul.mubr.bf16.gmra.mxu0 %v1771_v5  ;;  %819 = vmatmul.mubr.bf16.gmra.mxu1 %v1772_v6 }
  0x92   :  { %1320 = vmatprep.mubr.msk.bf16.mxu0 %vm450_vm0, %v1773_v7  ;;  %1336 = vmatprep.mubr.msk.bf16.mxu1 %vm450_vm0, %v1775_v8 }
  0x99   :  { %699 = vmatmul.mubr.bf16.gmra.mxu0 %v1777_v9  ;;  %827 = vmatmul.mubr.bf16.gmra.mxu1 %v1778_v10 }
  0x9a   :  { %1321 = vmatprep.mubr.msk.bf16.mxu0 %vm450_vm0, %v1779_v11  ;;  %1337 = vmatprep.mubr.msk.bf16.mxu1 %vm450_vm0, %v1781_v12 }
  0xa1   :  { %707 = vmatmul.mubr.bf16.gmra.mxu0 %v1783_v13  ;;  %835 = vmatmul.mubr.bf16.gmra.mxu1 %v1784_v14 }
  0xe9   :  { %v588_v16 = vpop.f32.mrf.mxu0  ;;  %v716_v17 = vpop.f32.mrf.mxu1 }
  0xea   :  { %v589_v20 = vadd.f32 %v2064_v15, %v588_v16  ;;  %v717_v21 = vadd.f32 %v2064_v15, %v716_v17 }
  0xeb   :  { %v590_v18 = vpop.f32.mrf.mxu0  ;;  %v718_v19 = vpop.f32.mrf.mxu1 }
  0xec   :  { %v843_v28 = vmax.f32 %v589_v20, 0.0  ;;  %v875_v29 = vmax.f32 %v717_v21, 0.0 }
  0xed   :  { %v591_v22 = vpop.f32.mrf.mxu0  ;;  %v719_v23 = vpop.f32.mrf.mxu1 }
  0xee   :  { %v592_v24 = vadd.f32 %v2064_v15, %v591_v22  ;;  %v720_v25 = vadd.f32 %v2064_v15, %v719_v23 }
  0xef   :  { %v593_v26 = vpop.f32.mrf.mxu0  ;;  %v721_v27 = vpop.f32.mrf.mxu1 }
  0xf0   :  { %v844_v30 = vmax.f32 %v592_v24, 0.0  ;;  %v876_v31 = vmax.f32 %v720_v25, 0.0 }
  0xf1   :  { %v596_v32 = vpop.f32.mrf.mxu0  ;;  %v724_v33 = vpop.f32.mrf.mxu1 }
  0xf2   :  { %v1469_v34 = vpack.c.bf16 %v844_v30, %v843_v28  ;;  %v1549_v35 = vpack.c.bf16 %v876_v31, %v875_v29  ;;  %v597_v38 = vadd.f32 %v2064_v15, %v596_v32  ;;  %v725_v39 = vadd.f32 %v2064_v15, %v724_v33 }
  0xf3   :  { %v598_v36 = vpop.f32.mrf.mxu0  ;;  %v726_v37 = vpop.f32.mrf.mxu1 }
  0xf4   :  { %1470 = vst [vmem:[%s2229_s3] sm:$0xff] %v1469_v34   ;;  %1641 = vst [vmem:[%s2229_s3 + $0x80] sm:$0xff] %v1549_v35   ;;  %v845_v46 = vmax.f32 %v597_v38, 0.0  ;;  %v877_v47 = vmax.f32 %v725_v39, 0.0 }
  0xf5   :  { %v599_v40 = vpop.f32.mrf.mxu0  ;;  %v727_v41 = vpop.f32.mrf.mxu1 }
  0xf6   :  { %v600_v42 = vadd.f32 %v2064_v15, %v599_v40  ;;  %v728_v43 = vadd.f32 %v2064_v15, %v727_v41 }
  0xf7   :  { %v601_v44 = vpop.f32.mrf.mxu0  ;;  %v729_v45 = vpop.f32.mrf.mxu1 }
  0xf8   :  { %v846_v48 = vmax.f32 %v600_v42, 0.0  ;;  %v878_v49 = vmax.f32 %v728_v43, 0.0 }
  0xf9   :  { %v604_v50 = vpop.f32.mrf.mxu0  ;;  %v732_v51 = vpop.f32.mrf.mxu1 }
  0xfa   :  { %v1474_v52 = vpack.c.bf16 %v846_v48, %v845_v46  ;;  %v1554_v53 = vpack.c.bf16 %v878_v49, %v877_v47  ;;  %v605_v56 = vadd.f32 %v2064_v15, %v604_v50  ;;  %v733_v57 = vadd.f32 %v2064_v15, %v732_v51 }
  0xfb   :  { %v606_v54 = vpop.f32.mrf.mxu0  ;;  %v734_v55 = vpop.f32.mrf.mxu1 }
  0xfc   :  { %1626 = vst [vmem:[%s2229_s3 + $0x8] sm:$0xff] %v1474_v52   ;;  %1642 = vst [vmem:[%s2229_s3 + $0x88] sm:$0xff] %v1554_v53   ;;  %v847_v0 = vmax.f32 %v605_v56, 0.0  ;;  %v879_v1 = vmax.f32 %v733_v57, 0.0 }
  0xfd   :  { %v607_v58 = vpop.f32.mrf.mxu0  ;;  %v735_v59 = vpop.f32.mrf.mxu1 }
  0xfe   :  { %v608_v60 = vadd.f32 %v2064_v15, %v607_v58  ;;  %v736_v61 = vadd.f32 %v2064_v15, %v735_v59 }
  0xff   :  { %v609_v62 = vpop.f32.mrf.mxu0  ;;  %v737_v63 = vpop.f32.mrf.mxu1 }
 0x100   :  { %v848_v2 = vmax.f32 %v608_v60, 0.0  ;;  %v880_v3 = vmax.f32 %v736_v61, 0.0 }
 0x101   :  { %v612_v4 = vpop.f32.mrf.mxu0  ;;  %v740_v5 = vpop.f32.mrf.mxu1 }
 0x102   :  { %v1479_v6 = vpack.c.bf16 %v848_v2, %v847_v0  ;;  %v1559_v7 = vpack.c.bf16 %v880_v3, %v879_v1  ;;  %v613_v10 = vadd.f32 %v2064_v15, %v612_v4  ;;  %v741_v11 = vadd.f32 %v2064_v15, %v740_v5 }
 0x103   :  { %v614_v8 = vpop.f32.mrf.mxu0  ;;  %v742_v9 = vpop.f32.mrf.mxu1 }
 0x104   :  { %1627 = vst [vmem:[%s2229_s3 + $0x10] sm:$0xff] %v1479_v6   ;;  %1643 = vst [vmem:[%s2229_s3 + $0x90] sm:$0xff] %v1559_v7   ;;  %v849_v19 = vmax.f32 %v613_v10, 0.0  ;;  %v881_v20 = vmax.f32 %v741_v11, 0.0 }
 0x105   :  { %v615_v12 = vpop.f32.mrf.mxu0  ;;  %v743_v13 = vpop.f32.mrf.mxu1 }
 0x106   :  { %v616_v14 = vadd.f32 %v2064_v15, %v615_v12  ;;  %v744_v16 = vadd.f32 %v2064_v15, %v743_v13 }
 0x107   :  { %v617_v17 = vpop.f32.mrf.mxu0  ;;  %v745_v18 = vpop.f32.mrf.mxu1 }
 0x108   :  { %v850_v21 = vmax.f32 %v616_v14, 0.0  ;;  %v882_v22 = vmax.f32 %v744_v16, 0.0 }
 0x109   :  { %v620_v23 = vpop.f32.mrf.mxu0  ;;  %v748_v24 = vpop.f32.mrf.mxu1 }
 0x10a   :  { %v1484_v25 = vpack.c.bf16 %v850_v21, %v849_v19  ;;  %v1564_v26 = vpack.c.bf16 %v882_v22, %v881_v20  ;;  %v621_v29 = vadd.f32 %v2064_v15, %v620_v23  ;;  %v749_v30 = vadd.f32 %v2064_v15, %v748_v24 }
 0x10b   :  { %v622_v27 = vpop.f32.mrf.mxu0  ;;  %v750_v28 = vpop.f32.mrf.mxu1 }
 0x10c   :  { %1628 = vst [vmem:[%s2229_s3 + $0x18] sm:$0xff] %v1484_v25   ;;  %1644 = vst [vmem:[%s2229_s3 + $0x98] sm:$0xff] %v1564_v26   ;;  %v851_v37 = vmax.f32 %v621_v29, 0.0  ;;  %v883_v38 = vmax.f32 %v749_v30, 0.0 }
 0x10d   :  { %v623_v31 = vpop.f32.mrf.mxu0  ;;  %v751_v32 = vpop.f32.mrf.mxu1 }
 0x10e   :  { %v624_v33 = vadd.f32 %v2064_v15, %v623_v31  ;;  %v752_v34 = vadd.f32 %v2064_v15, %v751_v32 }
 0x10f   :  { %v625_v35 = vpop.f32.mrf.mxu0  ;;  %v753_v36 = vpop.f32.mrf.mxu1 }
 0x110   :  { %v852_v39 = vmax.f32 %v624_v33, 0.0  ;;  %v884_v40 = vmax.f32 %v752_v34, 0.0 }
 0x111   :  { %v628_v41 = vpop.f32.mrf.mxu0  ;;  %v756_v42 = vpop.f32.mrf.mxu1 }
 0x112   :  { %v1489_v43 = vpack.c.bf16 %v852_v39, %v851_v37  ;;  %v1569_v44 = vpack.c.bf16 %v884_v40, %v883_v38  ;;  %v629_v47 = vadd.f32 %v2064_v15, %v628_v41  ;;  %v757_v48 = vadd.f32 %v2064_v15, %v756_v42 }
 0x113   :  { %v630_v45 = vpop.f32.mrf.mxu0  ;;  %v758_v46 = vpop.f32.mrf.mxu1 }
 0x114   :  { %1629 = vst [vmem:[%s2229_s3 + $0x20] sm:$0xff] %v1489_v43   ;;  %1645 = vst [vmem:[%s2229_s3 + $0xa0] sm:$0xff] %v1569_v44   ;;  %v853_v55 = vmax.f32 %v629_v47, 0.0  ;;  %v885_v56 = vmax.f32 %v757_v48, 0.0 }
 0x115   :  { %v631_v49 = vpop.f32.mrf.mxu0  ;;  %v759_v50 = vpop.f32.mrf.mxu1 }
 0x116   :  { %v632_v51 = vadd.f32 %v2064_v15, %v631_v49  ;;  %v760_v52 = vadd.f32 %v2064_v15, %v759_v50 }
 0x117   :  { %v633_v53 = vpop.f32.mrf.mxu0  ;;  %v761_v54 = vpop.f32.mrf.mxu1 }
 0x118   :  { %v854_v57 = vmax.f32 %v632_v51, 0.0  ;;  %v886_v58 = vmax.f32 %v760_v52, 0.0 }
 0x119   :  { %v636_v59 = vpop.f32.mrf.mxu0  ;;  %v764_v60 = vpop.f32.mrf.mxu1 }
 0x11a   :  { %v1494_v61 = vpack.c.bf16 %v854_v57, %v853_v55  ;;  %v1574_v62 = vpack.c.bf16 %v886_v58, %v885_v56  ;;  %v637_v1 = vadd.f32 %v2064_v15, %v636_v59  ;;  %v765_v2 = vadd.f32 %v2064_v15, %v764_v60 }
 0x11b   :  { %v638_v63 = vpop.f32.mrf.mxu0  ;;  %v766_v0 = vpop.f32.mrf.mxu1 }
 0x11c   :  { %1630 = vst [vmem:[%s2229_s3 + $0x28] sm:$0xff] %v1494_v61   ;;  %1646 = vst [vmem:[%s2229_s3 + $0xa8] sm:$0xff] %v1574_v62   ;;  %v855_v9 = vmax.f32 %v637_v1, 0.0  ;;  %v887_v10 = vmax.f32 %v765_v2, 0.0 }
 0x11d   :  { %v639_v3 = vpop.f32.mrf.mxu0  ;;  %v767_v4 = vpop.f32.mrf.mxu1 }
 0x11e   :  { %v640_v5 = vadd.f32 %v2064_v15, %v639_v3  ;;  %v768_v6 = vadd.f32 %v2064_v15, %v767_v4 }
 0x11f   :  { %v641_v7 = vpop.f32.mrf.mxu0  ;;  %v769_v8 = vpop.f32.mrf.mxu1 }
 0x120   :  { %v856_v11 = vmax.f32 %v640_v5, 0.0  ;;  %v888_v12 = vmax.f32 %v768_v6, 0.0 }
 0x121   :  { %v644_v13 = vpop.f32.mrf.mxu0  ;;  %v772_v14 = vpop.f32.mrf.mxu1 }
 0x122   :  { %v1499_v16 = vpack.c.bf16 %v856_v11, %v855_v9  ;;  %v1579_v17 = vpack.c.bf16 %v888_v12, %v887_v10  ;;  %v645_v20 = vadd.f32 %v2064_v15, %v644_v13  ;;  %v773_v21 = vadd.f32 %v2064_v15, %v772_v14 }
 0x123   :  { %v646_v18 = vpop.f32.mrf.mxu0  ;;  %v774_v19 = vpop.f32.mrf.mxu1 }
 0x124   :  { %1631 = vst [vmem:[%s2229_s3 + $0x30] sm:$0xff] %v1499_v16   ;;  %1647 = vst [vmem:[%s2229_s3 + $0xb0] sm:$0xff] %v1579_v17   ;;  %v857_v28 = vmax.f32 %v645_v20, 0.0  ;;  %v889_v29 = vmax.f32 %v773_v21, 0.0 }
 0x125   :  { %v647_v22 = vpop.f32.mrf.mxu0  ;;  %v775_v23 = vpop.f32.mrf.mxu1 }
 0x126   :  { %v648_v24 = vadd.f32 %v2064_v15, %v647_v22  ;;  %v776_v25 = vadd.f32 %v2064_v15, %v775_v23 }
 0x127   :  { %v649_v26 = vpop.f32.mrf.mxu0  ;;  %v777_v27 = vpop.f32.mrf.mxu1 }
 0x128   :  { %v858_v30 = vmax.f32 %v648_v24, 0.0  ;;  %v890_v31 = vmax.f32 %v776_v25, 0.0 }
 0x129   :  { %v652_v32 = vpop.f32.mrf.mxu0  ;;  %v780_v33 = vpop.f32.mrf.mxu1 }
 0x12a   :  { %v1504_v34 = vpack.c.bf16 %v858_v30, %v857_v28  ;;  %v1584_v35 = vpack.c.bf16 %v890_v31, %v889_v29  ;;  %v653_v38 = vadd.f32 %v2064_v15, %v652_v32  ;;  %v781_v39 = vadd.f32 %v2064_v15, %v780_v33 }
 0x12b   :  { %v654_v36 = vpop.f32.mrf.mxu0  ;;  %v782_v37 = vpop.f32.mrf.mxu1 }
 0x12c   :  { %1632 = vst [vmem:[%s2229_s3 + $0x38] sm:$0xff] %v1504_v34   ;;  %1648 = vst [vmem:[%s2229_s3 + $0xb8] sm:$0xff] %v1584_v35   ;;  %v859_v46 = vmax.f32 %v653_v38, 0.0  ;;  %v891_v47 = vmax.f32 %v781_v39, 0.0 }
 0x12d   :  { %v655_v40 = vpop.f32.mrf.mxu0  ;;  %v783_v41 = vpop.f32.mrf.mxu1 }
 0x12e   :  { %v656_v42 = vadd.f32 %v2064_v15, %v655_v40  ;;  %v784_v43 = vadd.f32 %v2064_v15, %v783_v41 }
 0x12f   :  { %v657_v44 = vpop.f32.mrf.mxu0  ;;  %v785_v45 = vpop.f32.mrf.mxu1 }
 0x130   :  { %v860_v48 = vmax.f32 %v656_v42, 0.0  ;;  %v892_v49 = vmax.f32 %v784_v43, 0.0 }
 0x131   :  { %v660_v50 = vpop.f32.mrf.mxu0  ;;  %v788_v51 = vpop.f32.mrf.mxu1 }
 0x132   :  { %v1509_v52 = vpack.c.bf16 %v860_v48, %v859_v46  ;;  %v1589_v53 = vpack.c.bf16 %v892_v49, %v891_v47  ;;  %v661_v56 = vadd.f32 %v2064_v15, %v660_v50  ;;  %v789_v57 = vadd.f32 %v2064_v15, %v788_v51 }
 0x133   :  { %v662_v54 = vpop.f32.mrf.mxu0  ;;  %v790_v55 = vpop.f32.mrf.mxu1 }
 0x134   :  { %1633 = vst [vmem:[%s2229_s3 + $0x40] sm:$0xff] %v1509_v52   ;;  %1649 = vst [vmem:[%s2229_s3 + $0xc0] sm:$0xff] %v1589_v53   ;;  %v861_v0 = vmax.f32 %v661_v56, 0.0  ;;  %v893_v1 = vmax.f32 %v789_v57, 0.0 }
 0x135   :  { %v663_v58 = vpop.f32.mrf.mxu0  ;;  %v791_v59 = vpop.f32.mrf.mxu1 }
 0x136   :  { %v664_v60 = vadd.f32 %v2064_v15, %v663_v58  ;;  %v792_v61 = vadd.f32 %v2064_v15, %v791_v59 }
 0x137   :  { %v665_v62 = vpop.f32.mrf.mxu0  ;;  %v793_v63 = vpop.f32.mrf.mxu1 }
 0x138   :  { %v862_v2 = vmax.f32 %v664_v60, 0.0  ;;  %v894_v3 = vmax.f32 %v792_v61, 0.0 }
 0x139   :  { %v668_v4 = vpop.f32.mrf.mxu0  ;;  %v796_v5 = vpop.f32.mrf.mxu1 }
 0x13a   :  { %v1514_v6 = vpack.c.bf16 %v862_v2, %v861_v0  ;;  %v1594_v7 = vpack.c.bf16 %v894_v3, %v893_v1  ;;  %v669_v10 = vadd.f32 %v2064_v15, %v668_v4  ;;  %v797_v11 = vadd.f32 %v2064_v15, %v796_v5 }
 0x13b   :  { %v670_v8 = vpop.f32.mrf.mxu0  ;;  %v798_v9 = vpop.f32.mrf.mxu1 }
 0x13c   :  { %1634 = vst [vmem:[%s2229_s3 + $0x48] sm:$0xff] %v1514_v6   ;;  %1650 = vst [vmem:[%s2229_s3 + $0xc8] sm:$0xff] %v1594_v7   ;;  %v863_v19 = vmax.f32 %v669_v10, 0.0  ;;  %v895_v20 = vmax.f32 %v797_v11, 0.0 }
 0x13d   :  { %v671_v12 = vpop.f32.mrf.mxu0  ;;  %v799_v13 = vpop.f32.mrf.mxu1 }
 0x13e   :  { %v672_v14 = vadd.f32 %v2064_v15, %v671_v12  ;;  %v800_v16 = vadd.f32 %v2064_v15, %v799_v13 }
 0x13f   :  { %v673_v17 = vpop.f32.mrf.mxu0  ;;  %v801_v18 = vpop.f32.mrf.mxu1 }
 0x140   :  { %v864_v21 = vmax.f32 %v672_v14, 0.0  ;;  %v896_v22 = vmax.f32 %v800_v16, 0.0 }
 0x141   :  { %v676_v23 = vpop.f32.mrf.mxu0  ;;  %v804_v24 = vpop.f32.mrf.mxu1 }
 0x142   :  { %v1519_v25 = vpack.c.bf16 %v864_v21, %v863_v19  ;;  %v1599_v26 = vpack.c.bf16 %v896_v22, %v895_v20  ;;  %v677_v29 = vadd.f32 %v2064_v15, %v676_v23  ;;  %v805_v30 = vadd.f32 %v2064_v15, %v804_v24 }
 0x143   :  { %v678_v27 = vpop.f32.mrf.mxu0  ;;  %v806_v28 = vpop.f32.mrf.mxu1 }
 0x144   :  { %1635 = vst [vmem:[%s2229_s3 + $0x50] sm:$0xff] %v1519_v25   ;;  %1651 = vst [vmem:[%s2229_s3 + $0xd0] sm:$0xff] %v1599_v26   ;;  %v865_v37 = vmax.f32 %v677_v29, 0.0  ;;  %v897_v38 = vmax.f32 %v805_v30, 0.0 }
 0x145   :  { %v679_v31 = vpop.f32.mrf.mxu0  ;;  %v807_v32 = vpop.f32.mrf.mxu1 }
 0x146   :  { %v680_v33 = vadd.f32 %v2064_v15, %v679_v31  ;;  %v808_v34 = vadd.f32 %v2064_v15, %v807_v32 }
 0x147   :  { %v681_v35 = vpop.f32.mrf.mxu0  ;;  %v809_v36 = vpop.f32.mrf.mxu1 }
 0x148   :  { %v866_v39 = vmax.f32 %v680_v33, 0.0  ;;  %v898_v40 = vmax.f32 %v808_v34, 0.0 }
 0x149   :  { %v684_v41 = vpop.f32.mrf.mxu0  ;;  %v812_v42 = vpop.f32.mrf.mxu1 }
 0x14a   :  { %v1524_v43 = vpack.c.bf16 %v866_v39, %v865_v37  ;;  %v1604_v44 = vpack.c.bf16 %v898_v40, %v897_v38  ;;  %v685_v47 = vadd.f32 %v2064_v15, %v684_v41  ;;  %v813_v48 = vadd.f32 %v2064_v15, %v812_v42 }
 0x14b   :  { %v686_v45 = vpop.f32.mrf.mxu0  ;;  %v814_v46 = vpop.f32.mrf.mxu1 }
 0x14c   :  { %1636 = vst [vmem:[%s2229_s3 + $0x58] sm:$0xff] %v1524_v43   ;;  %1652 = vst [vmem:[%s2229_s3 + $0xd8] sm:$0xff] %v1604_v44   ;;  %v867_v55 = vmax.f32 %v685_v47, 0.0  ;;  %v899_v56 = vmax.f32 %v813_v48, 0.0 }
 0x14d   :  { %v687_v49 = vpop.f32.mrf.mxu0  ;;  %v815_v50 = vpop.f32.mrf.mxu1 }
 0x14e   :  { %v688_v51 = vadd.f32 %v2064_v15, %v687_v49  ;;  %v816_v52 = vadd.f32 %v2064_v15, %v815_v50 }
 0x14f   :  { %v689_v53 = vpop.f32.mrf.mxu0  ;;  %v817_v54 = vpop.f32.mrf.mxu1 }
 0x150   :  { %v868_v57 = vmax.f32 %v688_v51, 0.0  ;;  %v900_v58 = vmax.f32 %v816_v52, 0.0 }
 0x151   :  { %v692_v59 = vpop.f32.mrf.mxu0  ;;  %v820_v60 = vpop.f32.mrf.mxu1 }
 0x152   :  { %v1529_v61 = vpack.c.bf16 %v868_v57, %v867_v55  ;;  %v1609_v62 = vpack.c.bf16 %v900_v58, %v899_v56  ;;  %v693_v1 = vadd.f32 %v2064_v15, %v692_v59  ;;  %v821_v2 = vadd.f32 %v2064_v15, %v820_v60 }
 0x153   :  { %v694_v63 = vpop.f32.mrf.mxu0  ;;  %v822_v0 = vpop.f32.mrf.mxu1 }
 0x154   :  { %1637 = vst [vmem:[%s2229_s3 + $0x60] sm:$0xff] %v1529_v61   ;;  %1653 = vst [vmem:[%s2229_s3 + $0xe0] sm:$0xff] %v1609_v62   ;;  %v869_v9 = vmax.f32 %v693_v1, 0.0  ;;  %v901_v10 = vmax.f32 %v821_v2, 0.0 }
 0x155   :  { %v695_v3 = vpop.f32.mrf.mxu0  ;;  %v823_v4 = vpop.f32.mrf.mxu1 }
 0x156   :  { %v696_v5 = vadd.f32 %v2064_v15, %v695_v3  ;;  %v824_v6 = vadd.f32 %v2064_v15, %v823_v4 }
 0x157   :  { %v697_v7 = vpop.f32.mrf.mxu0  ;;  %v825_v8 = vpop.f32.mrf.mxu1 }
 0x158   :  { %v870_v11 = vmax.f32 %v696_v5, 0.0  ;;  %v902_v12 = vmax.f32 %v824_v6, 0.0 }
 0x159   :  { %v700_v13 = vpop.f32.mrf.mxu0  ;;  %v828_v14 = vpop.f32.mrf.mxu1 }
 0x15a   :  { %v1534_v16 = vpack.c.bf16 %v870_v11, %v869_v9  ;;  %v1614_v17 = vpack.c.bf16 %v902_v12, %v901_v10  ;;  %v701_v20 = vadd.f32 %v2064_v15, %v700_v13  ;;  %v829_v21 = vadd.f32 %v2064_v15, %v828_v14 }
 0x15b   :  { %v702_v18 = vpop.f32.mrf.mxu0  ;;  %v830_v19 = vpop.f32.mrf.mxu1 }
 0x15c   :  { %1638 = vst [vmem:[%s2229_s3 + $0x68] sm:$0xff] %v1534_v16   ;;  %1654 = vst [vmem:[%s2229_s3 + $0xe8] sm:$0xff] %v1614_v17   ;;  %v871_v28 = vmax.f32 %v701_v20, 0.0  ;;  %v903_v29 = vmax.f32 %v829_v21, 0.0 }
 0x15d   :  { %v703_v22 = vpop.f32.mrf.mxu0  ;;  %v831_v23 = vpop.f32.mrf.mxu1 }
 0x15e   :  { %v704_v24 = vadd.f32 %v2064_v15, %v703_v22  ;;  %v832_v25 = vadd.f32 %v2064_v15, %v831_v23 }
 0x15f   :  { %v705_v26 = vpop.f32.mrf.mxu0  ;;  %v833_v27 = vpop.f32.mrf.mxu1 }
 0x160   :  { %v872_v30 = vmax.f32 %v704_v24, 0.0  ;;  %v904_v31 = vmax.f32 %v832_v25, 0.0 }
 0x161   :  { %v708_v32 = vpop.f32.mrf.mxu0  ;;  %v836_v33 = vpop.f32.mrf.mxu1 }
 0x162   :  { %v1539_v34 = vpack.c.bf16 %v872_v30, %v871_v28  ;;  %v1619_v35 = vpack.c.bf16 %v904_v31, %v903_v29  ;;  %v709_v38 = vadd.f32 %v2064_v15, %v708_v32  ;;  %v837_v39 = vadd.f32 %v2064_v15, %v836_v33 }
 0x163   :  { %v710_v36 = vpop.f32.mrf.mxu0  ;;  %v838_v37 = vpop.f32.mrf.mxu1 }
 0x164   :  { %1639 = vst [vmem:[%s2229_s3 + $0x70] sm:$0xff] %v1539_v34   ;;  %1655 = vst [vmem:[%s2229_s3 + $0xf0] sm:$0xff] %v1619_v35   ;;  %v873_v46 = vmax.f32 %v709_v38, 0.0  ;;  %v905_v47 = vmax.f32 %v837_v39, 0.0 }
 0x165   :  { %v711_v40 = vpop.f32.mrf.mxu0  ;;  %v839_v41 = vpop.f32.mrf.mxu1 }
 0x166   :  { %v712_v42 = vadd.f32 %v2064_v15, %v711_v40  ;;  %v840_v43 = vadd.f32 %v2064_v15, %v839_v41 }
 0x167   :  { %v713_v44 = vpop.f32.mrf.mxu0  ;;  %v841_v45 = vpop.f32.mrf.mxu1 }
 0x168   :  { %v874_v48 = vmax.f32 %v712_v42, 0.0  ;;  %v906_v49 = vmax.f32 %v840_v43, 0.0 }
 0x16a   :  { %v1544_v50 = vpack.c.bf16 %v874_v48, %v873_v46  ;;  %v1624_v51 = vpack.c.bf16 %v906_v49, %v905_v47 }
 0x16c   :  { %1640 = vst [vmem:[%s2229_s3 + $0x78] sm:$0xff] %v1544_v50   ;;  %1656 = vst [vmem:[%s2229_s3 + $0xf8] sm:$0xff] %v1624_v51  }

// kernel: timm_encoder_forward.5
= control target key start
LH: loop header
LB: loop body
LE: loop exit
PB: predicated region body
PF: predicated region fallthrough
CT: control target
= control target key end

     0   :  { %s1237_s15 = smov 0   ;;  %s1513_s0 = inlined_call_operand.vmem [shape: bf16[8,9,9,128], index: 0, kind: input, shape index: {}]   ;;  %s1514_s1 = inlined_call_operand.vmem [shape: bf16[128,128], index: 1, kind: input, shape index: {}]   ;;  %s1515_s2 = inlined_call_operand.vmem [shape: f32[1,128], index: 2, kind: input, shape index: {}]   ;;  %s1516_s3 = inlined_call_operand.vmem [shape: bf16[2,8,8,128], index: 3, kind: output, shape index: {0}]   ;;  %s1517_s4 = inlined_call_operand.vmem [shape: bf16[2,8,8,128], index: 4, kind: output, shape index: {1}]  }
   0x1 LB: > { %s1243_s16 = sadd.s32 4294967295, %s1210_s15   ;;  %p1005_p0 = scmp.ge.s32.totalorder %s1210_s15, 1  ;;  %s1210_s15 = sphi %s1237_s15, %s15_s15  }
   0x2   : > { %p167_p1 = scmp.lt.s32.totalorder %s1210_s15, 3 }
   0x4   : > { %p168_p2 = pnand %p1005_p0, %p167_p1 }
   0x5   : > { %s1006_s19 = sshll.u32 (!%p168_p2), %s1243_s16, 2  ;;  %p206_p4 = scmp.lt.s32.totalorder (!%p168_p2), %s1243_s16, 1 }
   0x6   : > { %171 = sbr.rel (%p168_p2) target bundleno = 302 (0x12e), region = 32  ;;  %p200_p3 = scmp.lt.s32.totalorder (!%p168_p2), %s1006_s19, 7 }
   0xb   : > { %v1196_v0 = vld [vmem:[%s1514_s1 + $0x38] sm:$0xff]   ;;  %v1197_v1 = vld [vmem:[%s1514_s1 + $0x30] sm:$0xff]   ;;  %s1521_s19 = smov (!%p200_p3, %s1006_s19), 7  ;;  %v1198_v2 = vld [vmem:[%s1514_s1 + $0x28] sm:$0xff]   ;;  %vm250_vm0 = vsmask.f32 3328 }
   0xc   : > { %1147 = vmatprep.subr.bf16.mxu0 %v1196_v0  ;;  %1171 = vmatprep.subr.bf16.mxu1 %v1196_v0  ;;  %s1187_s24 = smul.u32 72, %s1521_s19  ;;  %v1199_v3 = vld [vmem:[%s1514_s1 + $0x20] sm:$0xff]   ;;  %v1200_v8 = vld [vmem:[%s1514_s1 + $0x18] sm:$0xff]   ;;  %vm251_vm1 = vsmask.f32 7440  ;;  %v1201_v35 = vld [vmem:[%s1514_s1 + $0x10] sm:$0xff]  }
   0xd   : > { %1148 = vmatpush3.bf16.msra.mxu0 %v1196_v0  ;;  %1179 = vmatpush3.bf16.msra.mxu1 %v1196_v0  ;;  %vm1302_vm2 = vmor %vm250_vm0, %vm251_vm1  ;;  %v1202_v55 = vld [vmem:[%s1514_s1 + $0x8] sm:$0xff]   ;;  %s1523_s16 = smov (!%p206_p4, %s1243_s16), 1 }
   0xe   : > { %1149 = vmatprep.subr.bf16.mxu0 %v1197_v1  ;;  %1172 = vmatprep.subr.bf16.mxu1 %v1197_v1  ;;  %s1260_s27 = scalar_lea.vmem %s1513_s0, %s1187_s24  ;;  %s1083_s12 = sshll.u32 %s1523_s16, 5 }
   0xf   : > { %v1266_v4 = vld [vmem:[%s1260_s27] sm:$0xf]  ;;  %v1269_v5 = vld [vmem:[%s1260_s27 + $0x8] sm:$0xf]  ;;  %v242_v6 = vld [vmem:[%s1260_s27 + $0x4] sm:$0x1]  ;;  %s1381_s17 = scalar_lea.vmem %s1516_s3, %s1083_s12  ;;  %s215_s22 = scalar_lea.vmem %s1517_s4, %s1083_s12 }
  0x10   : > { %v243_v7 = vld [vmem:[%s1260_s27 + $0xc] sm:$0x1]  ;;  %v1012_v9 = vld [vmem:[%s1260_s27 + $0x48] sm:$0xf]  ;;  %v1013_v10 = vld [vmem:[%s1260_s27 + $0x50] sm:$0xf] }
  0x11   : > { %1150 = vmatpush3.bf16.msra.mxu0 %v1197_v1  ;;  %1180 = vmatpush3.bf16.msra.mxu1 %v1197_v1  ;;  %v254_v11 = vshrl.u32 %v1266_v4, 16  ;;  %v257_v12 = vshll.u32 %v1266_v4, 16  ;;  %v263_v13 = vshll.u32 %v242_v6, 16  ;;  %v268_v14 = vshrl.u32 %v1269_v5, 16  ;;  %v1283_v16 = vld [vmem:[%s1260_s27 + $0x90] sm:$0xf] }
  0x12   : > { %1151 = vmatprep.subr.bf16.mxu0 %v1198_v2  ;;  %1173 = vmatprep.subr.bf16.mxu1 %v1198_v2  ;;  %v271_v15 = vshll.u32 %v1269_v5, 16  ;;  %v277_v18 = vshll.u32 %v243_v7, 16  ;;  %v1286_v23 = vld [vmem:[%s1260_s27 + $0x98] sm:$0xf]  ;;  %v234_v24 = vmax.bf16 %v1012_v9, %v1266_v4  ;;  %v235_v25 = vmax.bf16 %v1013_v10, %v1269_v5  ;;  %v1036_v27 = vld [vmem:[%s1260_s27 + $0x94] sm:$0x1] }
  0x13   : > { %v256_v17 = vrot.slane %v254_v11, 4  ;;  %v259_v19 = vrot.slane %v257_v12, 5  ;;  %v265_v20 = vrot.slane %v263_v13, 5  ;;  %v270_v21 = vrot.slane %v268_v14, 4  ;;  %v1037_v28 = vld [vmem:[%s1260_s27 + $0x9c] sm:$0x1] }
  0x14   : > { %v273_v22 = vrot.slane %v271_v15, 5  ;;  %v279_v26 = vrot.slane %v277_v18, 5  ;;  %v424_v29 = vshrl.u32 %v1283_v16, 16  ;;  %v427_v32 = vshll.u32 %v1283_v16, 16  ;;  %v1295_v34 = vld [vmem:[%s1260_s27 + $0x8] sm:$0xf] }
  0x15   : > { %1152 = vmatpush3.bf16.msra.mxu0 %v1198_v2  ;;  %1181 = vmatpush3.bf16.msra.mxu1 %v1198_v2  ;;  %v260_v30 = vor.u32 %v259_v19, %v256_v17  ;;  %v433_v33 = vshll.u32 %v1036_v27, 16  ;;  %v438_v38 = vshrl.u32 %v1286_v23, 16  ;;  %v441_v39 = vshll.u32 %v1286_v23, 16  ;;  %v1309_v45 = vld [vmem:[%s1260_s27 + $0x10] sm:$0xf]  ;;  %v1203_v14 = vld [vmem:[%s1514_s1] sm:$0xff]  }
  0x16   : > { %1153 = vmatprep.subr.bf16.mxu0 %v1199_v3  ;;  %1174 = vmatprep.subr.bf16.mxu1 %v1199_v3  ;;  %v274_v31 = vor.u32 %v273_v22, %v270_v21  ;;  %v426_v37 = vrot.slane %v424_v29, 4  ;;  %v447_v40 = vshll.u32 %v1037_v28, 16  ;;  %v429_v43 = vrot.slane %v427_v32, 5  ;;  %v1060_v49 = vld [vmem:[%s1260_s27 + $0xc] sm:$0x1] }
  0x17   : > { %v261_v41 = vrot.slane %v260_v30, 4  ;;  %v435_v44 = vrot.slane %v433_v33, 5  ;;  %v440_v46 = vrot.slane %v438_v38, 4  ;;  %v443_v47 = vrot.slane %v441_v39, 5  ;;  %v1028_v58 = vld [vmem:[%s1260_s27 + $0xd8] sm:$0xf] }
  0x18   : > { %v275_v42 = vrot.slane %v274_v31, 4  ;;  %v449_v48 = vrot.slane %v447_v40, 5  ;;  %v594_v50 = vshrl.u32 %v1295_v34, 16  ;;  %v430_v53 = vor.u32 %v429_v43, %v426_v37  ;;  %v1029_v59 = vld [vmem:[%s1260_s27 + $0xe0] sm:$0xf] }
  0x19   : > { %1154 = vmatpush3.bf16.msra.mxu0 %v1199_v3  ;;  %1182 = vmatpush3.bf16.msra.mxu1 %v1199_v3  ;;  %v266_v51 = vsel %vm1302_vm2, %v261_v41, %v265_v20  ;;  %v597_v54 = vshll.u32 %v1295_v34, 16  ;;  %v444_v60 = vor.u32 %v443_v47, %v440_v46  ;;  %v1061_v63 = vld [vmem:[%s1260_s27 + $0x14] sm:$0x1]  ;;  %v603_v1 = vshll.u32 %v1060_v49, 16  ;;  %v1329_v7 = vld [vmem:[%s1260_s27 + $0x68] sm:$0xf] }
  0x1a   : > { %1155 = vmatprep.subr.bf16.mxu0 %v1200_v8  ;;  %1175 = vmatprep.subr.bf16.mxu1 %v1200_v8  ;;  %v280_v52 = vsel %vm1302_vm2, %v275_v42, %v279_v26  ;;  %v373_v56 = vmax.bf16 %v266_v51, %v234_v24  ;;  %v596_v61 = vrot.slane %v594_v50, 4  ;;  %v431_v62 = vrot.slane %v430_v53, 4  ;;  %v1338_v13 = vld [vmem:[%s1260_s27 + $0x20] sm:$0xf]  ;;  %v1346_v19 = vld [vmem:[%s1260_s27 + $0x28] sm:$0xf] }
  0x1b   : > { %v374_v57 = vmax.bf16 %v280_v52, %v235_v25  ;;  %v599_v0 = vrot.slane %v597_v54, 5  ;;  %v608_v2 = vshrl.u32 %v1309_v45, 16  ;;  %v445_v5 = vrot.slane %v444_v60, 4  ;;  %v246_v20 = vld [vmem:[%s1260_s27 + $0x24] sm:$0x1] }
  0x1c   : > { %v390_v3 = vmax.bf16 %v1283_v16, %v373_v56  ;;  %v611_v6 = vshll.u32 %v1309_v45, 16  ;;  %v436_v9 = vsel %vm1302_vm2, %v431_v62, %v435_v44  ;;  %v605_v11 = vrot.slane %v603_v1, 5  ;;  %v1052_v27 = vld [vmem:[%s1260_s27 + $0x50] sm:$0xf]  ;;  %v1053_v28 = vld [vmem:[%s1260_s27 + $0x58] sm:$0xf] }
  0x1d   : > { %1156 = vmatpush3.bf16.msra.mxu0 %v1200_v8  ;;  %1183 = vmatpush3.bf16.msra.mxu1 %v1200_v8  ;;  %v391_v4 = vmax.bf16 %v1286_v23, %v374_v57  ;;  %v1332_v8 = vld [vmem:[%s1260_s27 + $0x70] sm:$0xf]  ;;  %v600_v10 = vor.u32 %v599_v0, %v596_v61  ;;  %v610_v12 = vrot.slane %v608_v2, 4  ;;  %v450_v17 = vsel %vm1302_vm2, %v445_v5, %v449_v48  ;;  %v247_v33 = vld [vmem:[%s1260_s27 + $0x2c] sm:$0x1] }
  0x1e   : > { %1157 = vmatprep.subr.bf16.mxu0 %v1201_v35  ;;  %1176 = vmatprep.subr.bf16.mxu1 %v1201_v35  ;;  %v407_v15 = vmax.bf16 %v1028_v58, %v390_v3  ;;  %v613_v18 = vrot.slane %v611_v6, 5  ;;  %v617_v22 = vshll.u32 %v1061_v63, 16  ;;  %v238_v23 = vmax.bf16 %v1329_v7, %v1338_v13  ;;  %v1024_v42 = vld [vmem:[%s1260_s27 + $0xb0] sm:$0xf]  ;;  %v1025_v54 = vld [vmem:[%s1260_s27 + $0xb8] sm:$0xf] }
  0x1f   : > { %v408_v16 = vmax.bf16 %v1029_v59, %v391_v4  ;;  %v601_v21 = vrot.slane %v600_v10, 4  ;;  %v239_v24 = vmax.bf16 %v1332_v8, %v1346_v19  ;;  %v310_v30 = vshrl.u32 %v1338_v13, 16  ;;  %v1041_v59 = vld [vmem:[%s1260_s27 + $0xbc] sm:$0x1]  ;;  %v1048_v5 = vld [vmem:[%s1260_s27 + $0x28] sm:$0xf] }
  0x20   : > { %v543_v25 = vmax.bf16 %v436_v9, %v407_v15  ;;  %v614_v29 = vor.u32 %v613_v18, %v610_v12  ;;  %v619_v32 = vrot.slane %v617_v22, 5  ;;  %v319_v37 = vshll.u32 %v246_v20, 16  ;;  %v1049_v15 = vld [vmem:[%s1260_s27 + $0x30] sm:$0xf]  ;;  %v1032_v18 = vld [vmem:[%s1260_s27 + $0xf8] sm:$0xf] }
  0x21   : > { %1158 = vmatpush3.bf16.msra.mxu0 %v1201_v35  ;;  %1184 = vmatpush3.bf16.msra.mxu1 %v1201_v35  ;;  %v544_v26 = vmax.bf16 %v450_v17, %v408_v16  ;;  %v606_v31 = vsel %vm1302_vm2, %v601_v21, %v605_v11  ;;  %v313_v35 = vshll.u32 %v1338_v13, 16  ;;  %v312_v41 = vrot.slane %v310_v30, 4  ;;  %v1064_v16 = vld [vmem:[%s1260_s27 + $0x2c] sm:$0x1] }
  0x22   : > { %1159 = vmatprep.subr.bf16.mxu0 %v1202_v55  ;;  %1177 = vmatprep.subr.bf16.mxu1 %v1202_v55  ;;  %v560_v38 = vmax.bf16 %v1295_v34, %v543_v25  ;;  %v615_v40 = vrot.slane %v614_v29, 4  ;;  %v321_v44 = vrot.slane %v319_v37, 5  ;;  %v324_v46 = vshrl.u32 %v1346_v19, 16  ;;  %v1065_v29 = vld [vmem:[%s1260_s27 + $0x34] sm:$0x1] }
  0x23   : > { %v561_v39 = vmax.bf16 %v1309_v45, %v544_v26  ;;  %v315_v43 = vrot.slane %v313_v35, 5  ;;  %v327_v47 = vshll.u32 %v1346_v19, 16  ;;  %v333_v34 = vshll.u32 %v247_v33, 16  ;;  %v1040_v45 = vld [vmem:[%s1260_s27 + $0xb4] sm:$0x1] }
  0x24   : > { %v577_v48 = vmax.bf16 %v1052_v27, %v560_v38  ;;  %v620_v50 = vsel %vm1302_vm2, %v615_v40, %v619_v32  ;;  %v326_v52 = vrot.slane %v324_v46, 4  ;;  %v483_v60 = vshll.u32 %v1024_v42, 16  ;;  %v1033_v26 = vld [vmem:[%s1260_s27 + $0x100] sm:$0xf] }
  0x25   : > { %1160 = vmatpush3.bf16.msra.mxu0 %v1202_v55  ;;  %1185 = vmatpush3.bf16.msra.mxu1 %v1202_v55  ;;  %v578_v49 = vmax.bf16 %v1053_v28, %v561_v39  ;;  %v316_v51 = vor.u32 %v315_v43, %v312_v41  ;;  %v329_v53 = vrot.slane %v327_v47, 5  ;;  %v480_v55 = vshrl.u32 %v1024_v42, 16  ;;  %v1403_v38 = vld [vmem:[%s1260_s27 + $0x60] sm:$0xf]  ;;  %v1406_v43 = vld [vmem:[%s1260_s27 + $0x10] sm:$0xf] }
  0x26   : > { %1161 = vmatprep.subr.bf16.mxu0 %v1203_v14  ;;  %1178 = vmatprep.subr.bf16.mxu1 %v1203_v14  ;;  %v713_v56 = vmax.bf16 %v606_v31, %v577_v48  ;;  %v335_v58 = vrot.slane %v333_v34, 5  ;;  %v489_v0 = vshll.u32 %v1040_v45, 16  ;;  %v485_v2 = vrot.slane %v483_v60, 5  ;;  %v1056_v34 = vld [vmem:[%s1260_s27 + $0x70] sm:$0xf] }
  0x27   : > { %v714_v57 = vmax.bf16 %v620_v50, %v578_v49  ;;  %v317_v61 = vrot.slane %v316_v51, 4  ;;  %v330_v62 = vor.u32 %v329_v53, %v326_v52  ;;  %v482_v63 = vrot.slane %v480_v55, 4  ;;  %v1411_v49 = vld [vmem:[%s1260_s27 + $0x18] sm:$0xf]  ;;  %v244_v50 = vld [vmem:[%s1260_s27 + $0x14] sm:$0x1] }
  0x28   : > { %v494_v3 = vshrl.u32 %v1025_v54, 16  ;;  %v497_v4 = vshll.u32 %v1025_v54, 16  ;;  %v491_v9 = vrot.slane %v489_v0, 5  ;;  %v503_v10 = vshll.u32 %v1041_v59, 16 }
  0x29   : > { %1162 = vmatpush3.bf16.msra.mxu0 %v1203_v14  ;;  %1186 = vmatpush3.bf16.msra.mxu1 %v1203_v14  ;;  %v1125_v1 = vcombine.low %v713_v56, %v714_v57  ;;  %v322_v6 = vsel %vm1302_vm2, %v317_v61, %v321_v44  ;;  %v331_v7 = vrot.slane %v330_v62, 4  ;;  %v486_v12 = vor.u32 %v485_v2, %v482_v63  ;;  %v245_v61 = vld [vmem:[%s1260_s27 + $0x1c] sm:$0x1] }
  0x2a   : > { %v377_v11 = vmax.bf16 %v322_v6, %v238_v23  ;;  %v496_v13 = vrot.slane %v494_v3, 4  ;;  %v499_v14 = vrot.slane %v497_v4, 5  ;;  %v505_v20 = vrot.slane %v503_v10, 5  ;;  %v1022_v4 = vld [vmem:[%s1260_s27 + $0xa0] sm:$0xf] }
  0x2b   : > { %1089 = vst [vmem:[%s1381_s17] sm:$0xff] %v1125_v1   ;;  %1163 = vmatprep.mubr.bf16.mxu0 %v1125_v1  ;;  %v336_v17 = vsel %vm1302_vm2, %v331_v7, %v335_v58  ;;  %v650_v21 = vshrl.u32 %v1048_v5, 16  ;;  %v653_v22 = vshll.u32 %v1048_v5, 16  ;;  %v487_v27 = vrot.slane %v486_v12, 4  ;;  %v1057_v58 = vld [vmem:[%s1260_s27 + $0x78] sm:$0xf] }
  0x2c   : > { %v378_v25 = vmax.bf16 %v336_v17, %v239_v24  ;;  %v394_v23 = vmax.bf16 %v1024_v42, %v377_v11  ;;  %v500_v28 = vor.u32 %v499_v14, %v496_v13  ;;  %v659_v32 = vshll.u32 %v1064_v16, 16  ;;  %v1400_v24 = vld [vmem:[%s1260_s27 + $0x58] sm:$0xf]  ;;  %v1038_v10 = vld [vmem:[%s1260_s27 + $0xa4] sm:$0x1] }
  0x2d   : > { %v652_v30 = vrot.slane %v650_v21, 4  ;;  %v655_v31 = vrot.slane %v653_v22, 5  ;;  %v664_v33 = vshrl.u32 %v1049_v15, 16  ;;  %v492_v8 = vsel %vm1302_vm2, %v487_v27, %v491_v9  ;;  %v1023_v16 = vld [vmem:[%s1260_s27 + $0xa8] sm:$0xf] }
  0x2e   : > { %v395_v35 = vmax.bf16 %v1025_v54, %v378_v25  ;;  %v411_v37 = vmax.bf16 %v1032_v18, %v394_v23  ;;  %v501_v19 = vrot.slane %v500_v28, 4  ;;  %v661_v40 = vrot.slane %v659_v32, 5  ;;  %v1039_v25 = vld [vmem:[%s1260_s27 + $0xac] sm:$0x1] }
  0x2f   : > { %v656_v39 = vor.u32 %v655_v31, %v652_v30  ;;  %v666_v41 = vrot.slane %v664_v33, 4  ;;  %v667_v42 = vshll.u32 %v1049_v15, 16  ;;  %v673_v48 = vshll.u32 %v1065_v29, 16  ;;  %v1434_v31 = vld [vmem:[%s1260_s27 + $0x18] sm:$0xf] }
  0x30   : > { %v412_v44 = vmax.bf16 %v1033_v26, %v395_v35  ;;  %v506_v46 = vsel %vm1302_vm2, %v501_v19, %v505_v20  ;;  %v547_v47 = vmax.bf16 %v492_v8, %v411_v37  ;;  %v236_v52 = vmax.bf16 %v1400_v24, %v1406_v43  ;;  %v1062_v8 = vld [vmem:[%s1260_s27 + $0x1c] sm:$0x1] }
  0x31   : > { %v657_v45 = vrot.slane %v656_v39, 4  ;;  %v669_v51 = vrot.slane %v667_v42, 5  ;;  %v237_v53 = vmax.bf16 %v1403_v38, %v1411_v49  ;;  %v675_v56 = vrot.slane %v673_v48, 5 }
  0x32   : > { %v548_v54 = vmax.bf16 %v506_v46, %v412_v44  ;;  %v564_v55 = vmax.bf16 %v1048_v5, %v547_v47  ;;  %v282_v57 = vshrl.u32 %v1406_v43, 16  ;;  %v285_v62 = vshll.u32 %v1406_v43, 16  ;;  %v1047_v43 = vld [vmem:[%s1260_s27 + $0x20] sm:$0xf]  ;;  %v1030_v47 = vld [vmem:[%s1260_s27 + $0xe8] sm:$0xf] }
  0x33   : > { %v662_v59 = vsel %vm1302_vm2, %v657_v45, %v661_v40  ;;  %v670_v60 = vor.u32 %v669_v51, %v666_v41  ;;  %v291_v63 = vshll.u32 %v244_v50, 16  ;;  %v296_v3 = vshrl.u32 %v1411_v49, 16  ;;  %v1031_v51 = vld [vmem:[%s1260_s27 + $0xf0] sm:$0xf] }
  0x34   : > { %v565_v0 = vmax.bf16 %v1049_v15, %v548_v54  ;;  %v581_v1 = vmax.bf16 %v1056_v34, %v564_v55  ;;  %v284_v2 = vrot.slane %v282_v57, 4  ;;  %v287_v6 = vrot.slane %v285_v62, 5  ;;  %v1063_v55 = vld [vmem:[%s1260_s27 + $0x24] sm:$0x1] }
  0x35   : > { %v671_v5 = vrot.slane %v670_v60, 4  ;;  %v293_v7 = vrot.slane %v291_v63, 5  ;;  %v299_v9 = vshll.u32 %v1411_v49, 16  ;;  %v298_v13 = vrot.slane %v296_v3, 4  ;;  %v1449_v60 = vld [vmem:[%s1260_s27 + $0x78] sm:$0xf] }
  0x36   : > { %v582_v11 = vmax.bf16 %v1057_v58, %v565_v0  ;;  %v717_v12 = vmax.bf16 %v662_v59, %v581_v1  ;;  %v305_v14 = vshll.u32 %v245_v61, 16  ;;  %v288_v17 = vor.u32 %v287_v6, %v284_v2  ;;  %v1454_v0 = vld [vmem:[%s1260_s27 + $0x80] sm:$0xf] }
  0x37   : > { %v676_v15 = vsel %vm1302_vm2, %v671_v5, %v675_v56  ;;  %v301_v18 = vrot.slane %v299_v9, 5  ;;  %v452_v20 = vshrl.u32 %v1022_v4, 16  ;;  %v455_v23 = vshll.u32 %v1022_v4, 16  ;;  %v223_v5 = vld [vmem:[%s1260_s27 + $0x30] sm:$0xf] }
  0x38   : > { %v718_v21 = vmax.bf16 %v676_v15, %v582_v11  ;;  %v307_v22 = vrot.slane %v305_v14, 5  ;;  %v461_v26 = vshll.u32 %v1038_v10, 16  ;;  %v289_v27 = vrot.slane %v288_v17, 4  ;;  %v1460_v10 = vld [vmem:[%s1260_s27 + $0x38] sm:$0xf] }
  0x39   : > { %v302_v28 = vor.u32 %v301_v18, %v298_v13  ;;  %v454_v29 = vrot.slane %v452_v20, 4  ;;  %v466_v30 = vshrl.u32 %v1023_v16, 16  ;;  %v457_v33 = vrot.slane %v455_v23, 5  ;;  %v1054_v13 = vld [vmem:[%s1260_s27 + $0x60] sm:$0xf] }
  0x3a   : > { %v1128_v32 = vcombine.low %v717_v12, %v718_v21  ;;  %v463_v35 = vrot.slane %v461_v26, 5  ;;  %v469_v37 = vshll.u32 %v1023_v16, 16  ;;  %v294_v19 = vsel %vm1302_vm2, %v289_v27, %v293_v7  ;;  %v248_v12 = vld [vmem:[%s1260_s27 + $0x34] sm:$0x1]  ;;  %v249_v27 = vld [vmem:[%s1260_s27 + $0x3c] sm:$0x1] }
  0x3b   : > { %v303_v24 = vrot.slane %v302_v28, 4  ;;  %v468_v38 = vrot.slane %v466_v30, 4  ;;  %v475_v39 = vshll.u32 %v1039_v25, 16  ;;  %v375_v40 = vmax.bf16 %v294_v19, %v236_v52  ;;  %v1055_v25 = vld [vmem:[%s1260_s27 + $0x68] sm:$0xf] }
  0x3c   : > { %1129 = vst [vmem:[%s1381_s17 + $0x10] sm:$0xff] %v1128_v32   ;;  %1167 = vmatprep.mubr.bf16.mxu1 %v1128_v32  ;;  %v458_v41 = vor.u32 %v457_v33, %v454_v29  ;;  %v471_v42 = vrot.slane %v469_v37, 5  ;;  %v622_v44 = vshrl.u32 %v1434_v31, 16  ;;  %v625_v49 = vshll.u32 %v1434_v31, 16  ;;  %v1026_v37 = vld [vmem:[%s1260_s27 + $0xc0] sm:$0xf] }
  0x3d   : > { %v308_v46 = vsel %vm1302_vm2, %v303_v24, %v307_v22  ;;  %v477_v48 = vrot.slane %v475_v39, 5  ;;  %v631_v50 = vshll.u32 %v1062_v8, 16  ;;  %v392_v45 = vmax.bf16 %v1022_v4, %v375_v40 }
  0x3e   : > { %v376_v34 = vmax.bf16 %v308_v46, %v237_v53  ;;  %v459_v54 = vrot.slane %v458_v41, 4  ;;  %v472_v52 = vor.u32 %v471_v42, %v468_v38  ;;  %v624_v56 = vrot.slane %v622_v44, 4  ;;  %v1042_v38 = vld [vmem:[%s1260_s27 + $0xc4] sm:$0x1]  ;;  %v1027_v44 = vld [vmem:[%s1260_s27 + $0xc8] sm:$0xf] }
  0x3f   : > { %v627_v57 = vrot.slane %v625_v49, 5  ;;  %v633_v58 = vrot.slane %v631_v50, 5  ;;  %v636_v59 = vshrl.u32 %v1047_v43, 16  ;;  %v409_v62 = vmax.bf16 %v1030_v47, %v392_v45  ;;  %v1043_v45 = vld [vmem:[%s1260_s27 + $0xcc] sm:$0x1] }
  0x40   : > { %v393_v61 = vmax.bf16 %v1023_v16, %v376_v34  ;;  %v464_v53 = vsel %vm1302_vm2, %v459_v54, %v463_v35  ;;  %v473_v63 = vrot.slane %v472_v52, 4  ;;  %v639_v3 = vshll.u32 %v1047_v43, 16 }
  0x41   : > { %v628_v1 = vor.u32 %v627_v57, %v624_v56  ;;  %v638_v2 = vrot.slane %v636_v59, 4  ;;  %v645_v4 = vshll.u32 %v1063_v55, 16  ;;  %v545_v9 = vmax.bf16 %v464_v53, %v409_v62  ;;  %v1050_v57 = vld [vmem:[%s1260_s27 + $0x38] sm:$0xf]  ;;  %v1066_v62 = vld [vmem:[%s1260_s27 + $0x3c] sm:$0x1] }
  0x42   : > { %v410_v6 = vmax.bf16 %v1031_v51, %v393_v61  ;;  %v478_v7 = vsel %vm1302_vm2, %v473_v63, %v477_v48  ;;  %v240_v11 = vmax.bf16 %v1449_v60, %v223_v5  ;;  %v641_v16 = vrot.slane %v639_v3, 5 }
  0x43   : > { %v629_v14 = vrot.slane %v628_v1, 4  ;;  %v647_v15 = vrot.slane %v645_v4, 5  ;;  %v241_v17 = vmax.bf16 %v1454_v0, %v1460_v10  ;;  %v562_v20 = vmax.bf16 %v1434_v31, %v545_v9 }
  0x44   : > { %v546_v18 = vmax.bf16 %v478_v7, %v410_v6  ;;  %v338_v21 = vshrl.u32 %v223_v5, 16  ;;  %v341_v22 = vshll.u32 %v223_v5, 16  ;;  %v642_v26 = vor.u32 %v641_v16, %v638_v2  ;;  %v1034_v2 = vld [vmem:[%s1260_s27 + $0x108] sm:$0xf] }
  0x45   : > { %v634_v23 = vsel %vm1302_vm2, %v629_v14, %v633_v58  ;;  %v347_v28 = vshll.u32 %v248_v12, 16  ;;  %v352_v29 = vshrl.u32 %v1460_v10, 16  ;;  %v579_v32 = vmax.bf16 %v1054_v13, %v562_v20  ;;  %v1051_v12 = vld [vmem:[%s1260_s27 + $0x40] sm:$0xf]  ;;  %v1035_v20 = vld [vmem:[%s1260_s27 + $0x110] sm:$0xf] }
  0x46   : > { %v563_v30 = vmax.bf16 %v1047_v43, %v546_v18  ;;  %v340_v33 = vrot.slane %v338_v21, 4  ;;  %v343_v35 = vrot.slane %v341_v22, 5  ;;  %v643_v8 = vrot.slane %v642_v26, 4 }
  0x47   : > { %v349_v31 = vrot.slane %v347_v28, 5  ;;  %v354_v19 = vrot.slane %v352_v29, 4  ;;  %v355_v24 = vshll.u32 %v1460_v10, 16  ;;  %v715_v40 = vmax.bf16 %v634_v23, %v579_v32 }
  0x48   : > { %v580_v39 = vmax.bf16 %v1055_v25, %v563_v30  ;;  %v344_v41 = vor.u32 %v343_v35, %v340_v33  ;;  %v361_v42 = vshll.u32 %v249_v27, 16  ;;  %v648_v43 = vsel %vm1302_vm2, %v643_v8, %v647_v15  ;;  %v1067_v15 = vld [vmem:[%s1260_s27 + $0x44] sm:$0x1] }
  0x49   : > { %v357_v46 = vrot.slane %v355_v24, 5  ;;  %v508_v47 = vshrl.u32 %v1026_v37, 16  ;;  %v511_v48 = vshll.u32 %v1026_v37, 16  ;;  %v517_v51 = vshll.u32 %v1042_v38, 16 }
  0x4a   : > { %v716_v49 = vmax.bf16 %v648_v43, %v580_v39  ;;  %v345_v50 = vrot.slane %v344_v41, 4  ;;  %v363_v34 = vrot.slane %v361_v42, 5  ;;  %v522_v56 = vshrl.u32 %v1027_v44, 16  ;;  %v1059_v41 = vld [vmem:[%s1260_s27 + $0x88] sm:$0xf] }
  0x4b   : > { %v358_v54 = vor.u32 %v357_v46, %v354_v19  ;;  %v510_v52 = vrot.slane %v508_v47, 4  ;;  %v513_v55 = vrot.slane %v511_v48, 5  ;;  %v519_v60 = vrot.slane %v517_v51, 5  ;;  %v1068_v51 = vld [vmem:[%s1515_s2] ss:$0 sm:$0xff] }
  0x4c   : > { %v1126_v58 = vcombine.low %v715_v40, %v716_v49  ;;  %v350_v59 = vsel %vm1302_vm2, %v345_v50, %v349_v31  ;;  %v525_v61 = vshll.u32 %v1027_v44, 16  ;;  %v524_v1 = vrot.slane %v522_v56, 4 }
  0x4d   : > { %v359_v53 = vrot.slane %v358_v54, 4  ;;  %v379_v63 = vmax.bf16 %v350_v59, %v240_v11  ;;  %v514_v0 = vor.u32 %v513_v55, %v510_v52  ;;  %v531_v4 = vshll.u32 %v1043_v45, 16 }
  0x4e   : > { %1127 = vst [vmem:[%s1381_s17 + $0x8] sm:$0xff] %v1126_v58   ;;  %1164 = vmatmul.mubr.bf16.vlgmr.msra.gmra.mxu0 %v1126_v58  ;;  %v527_v3 = vrot.slane %v525_v61, 5  ;;  %v678_v5 = vshrl.u32 %v1050_v57, 16  ;;  %v681_v6 = vshll.u32 %v1050_v57, 16  ;;  %v687_v13 = vshll.u32 %v1066_v62, 16 }
  0x4f   : > { %v364_v7 = vsel %vm1302_vm2, %v359_v53, %v363_v34  ;;  %v396_v9 = vmax.bf16 %v1026_v37, %v379_v63  ;;  %v515_v10 = vrot.slane %v514_v0, 4  ;;  %v533_v16 = vrot.slane %v531_v4, 5  ;;  %v1058_v37 = vld [vmem:[%s1260_s27 + $0x80] sm:$0xf] }
  0x50   : > { %v380_v14 = vmax.bf16 %v364_v7, %v241_v17  ;;  %v528_v11 = vor.u32 %v527_v3, %v524_v1  ;;  %v680_v18 = vrot.slane %v678_v5, 4  ;;  %v683_v25 = vrot.slane %v681_v6, 5 }
  0x51   : > { %v413_v21 = vmax.bf16 %v1034_v2, %v396_v9  ;;  %v520_v22 = vsel %vm1302_vm2, %v515_v10, %v519_v60  ;;  %v692_v27 = vshrl.u32 %v1051_v12, 16  ;;  %v695_v28 = vshll.u32 %v1051_v12, 16 }
  0x52   : > { %v397_v23 = vmax.bf16 %v1027_v44, %v380_v14  ;;  %v529_v26 = vrot.slane %v528_v11, 4  ;;  %v684_v30 = vor.u32 %v683_v25, %v680_v18  ;;  %v689_v32 = vrot.slane %v687_v13, 5 }
  0x53   : > { %v549_v29 = vmax.bf16 %v520_v22, %v413_v21  ;;  %v701_v17 = vshll.u32 %v1067_v15, 16  ;;  %v694_v8 = vrot.slane %v692_v27, 4  ;;  %v697_v31 = vrot.slane %v695_v28, 5 }
  0x54   : > { %v414_v33 = vmax.bf16 %v1035_v20, %v397_v23  ;;  %v534_v35 = vsel %vm1302_vm2, %v529_v26, %v533_v16  ;;  %v685_v24 = vrot.slane %v684_v30, 4 }
  0x55   : > { %v566_v19 = vmax.bf16 %v1050_v57, %v549_v29  ;;  %v698_v39 = vor.u32 %v697_v31, %v694_v8  ;;  %v703_v40 = vrot.slane %v701_v17, 5 }
  0x56   : > { %v550_v38 = vmax.bf16 %v534_v35, %v414_v33  ;;  %v690_v44 = vsel %vm1302_vm2, %v685_v24, %v689_v32 }
  0x57   : > { %v583_v42 = vmax.bf16 %v1058_v37, %v566_v19  ;;  %v699_v46 = vrot.slane %v698_v39, 4 }
  0x58   : > { %v567_v43 = vmax.bf16 %v1051_v12, %v550_v38 }
  0x59   : > { %v704_v48 = vsel %vm1302_vm2, %v699_v46, %v703_v40  ;;  %v719_v49 = vmax.bf16 %v690_v44, %v583_v42 }
  0x5a   : > { %v584_v47 = vmax.bf16 %v1059_v41, %v567_v43 }
  0x5c   : > { %v720_v50 = vmax.bf16 %v704_v48, %v584_v47 }
  0x5e   : > { %v1130_v34 = vcombine.low %v719_v49, %v720_v50 }
  0x60   : > { %1131 = vst [vmem:[%s1381_s17 + $0x18] sm:$0xff] %v1130_v34   ;;  %1168 = vmatmul.mubr.bf16.vlgmr.msra.gmra.mxu1 %v1130_v34 }
 0x10e   : > { %v1165_v45 = vpop.f32.mrf.mxu0 }
 0x10f   : > { %v867_v52 = vadd.f32 %v1165_v45, %v1068_v51 }
 0x110   : > { %v858_v54 = vpop.f32.mrf.mxu0 }
 0x111   : > { %v859_v56 = vadd.f32 %v1068_v51, %v858_v54  ;;  %v891_v59 = vmax.f32 %v867_v52, 0.0 }
 0x112   : > { %v1166_v55 = vpop.f32.mrf.mxu0 }
 0x113   : > { %v870_v57 = vadd.f32 %v1166_v55, %v1068_v51  ;;  %v889_v61 = vmax.f32 %v859_v56, 0.0 }
 0x114   : > { %v861_v58 = vpop.f32.mrf.mxu0 }
 0x115   : > { %v892_v36 = vmax.f32 %v870_v57, 0.0  ;;  %v862_v60 = vadd.f32 %v1068_v51, %v861_v58 }
 0x117   : > { %v1113_v62 = vpack.c.bf16 %v892_v36, %v891_v59  ;;  %v890_v53 = vmax.f32 %v862_v60, 0.0 }
 0x119   : > { %1132 = vst [vmem:[%s215_s22 + $0x8] sm:$0xff] %v1113_v62   ;;  %v1108_v63 = vpack.c.bf16 %v890_v53, %v889_v61 }
 0x11b   : > { %1109 = vst [vmem:[%s215_s22] sm:$0xff] %v1108_v63  }
 0x120   : > { %v1169_v0 = vpop.f32.mrf.mxu1 }
 0x121   : > { %v883_v2 = vadd.f32 %v1169_v0, %v1068_v51 }
 0x122   : > { %v874_v1 = vpop.f32.mrf.mxu1 }
 0x123   : > { %v875_v4 = vadd.f32 %v1068_v51, %v874_v1  ;;  %v895_v7 = vmax.f32 %v883_v2, 0.0 }
 0x124   : > { %v1170_v3 = vpop.f32.mrf.mxu1 }
 0x125   : > { %v886_v5 = vadd.f32 %v1170_v3, %v1068_v51  ;;  %v893_v12 = vmax.f32 %v875_v4, 0.0 }
 0x126   : > { %v877_v6 = vpop.f32.mrf.mxu1 }
 0x127   : > { %v896_v9 = vmax.f32 %v886_v5, 0.0  ;;  %v878_v10 = vadd.f32 %v1068_v51, %v877_v6 }
 0x129   : > { %v1123_v13 = vpack.c.bf16 %v896_v9, %v895_v7  ;;  %v894_v14 = vmax.f32 %v878_v10, 0.0 }
 0x12b   : > { %1134 = vst [vmem:[%s215_s22 + $0x18] sm:$0xff] %v1123_v13   ;;  %v1118_v11 = vpack.c.bf16 %v894_v14, %v893_v12 }
 0x12d   : > { %1133 = vst [vmem:[%s215_s22 + $0x10] sm:$0xff] %v1118_v11  }
 0x12e PF: > { %s15_s15 = sadd.s32 1, %s1210_s15  }
 0x12f   : > { %p12_p5 = scmp.ge.s32.totalorder %s15_s15, 4  }
 0x131   :  { %14 = sbr.rel (!%p12_p5) target bundleno = 1 (0x1), region = 79 }

// kernel: timm_encoder_forward.7
= control target key start
LH: loop header
LB: loop body
LE: loop exit
PB: predicated region body
PF: predicated region fallthrough
CT: control target
= control target key end

     0   :  { %s987_s15 = smov 0   ;;  %s989_s16 = smov 0   ;;  %s1157_s0 = inlined_call_operand.vmem [shape: bf16[2,64,128], index: 0, kind: input, shape index: {}]   ;;  %s1158_s1 = inlined_call_operand.vmem [shape: bf16[2,64,128], index: 1, kind: input, shape index: {}]   ;;  %s1159_s2 = inlined_call_operand.vmem [shape: bf16[256,256], index: 2, kind: input, shape index: {}]   ;;  %s1160_s3 = inlined_call_operand.vmem [shape: f32[1,256], index: 3, kind: input, shape index: {}]   ;;  %s1161_s4 = inlined_call_operand.vmem [shape: f32[2,1,256], index: 4, kind: output, shape index: {}]  }
   0x1   :  { %s991_s17 = smov 0  }
   0x2 LB: > { %s26_s18 = sadd.s32 1, %s954_s16  ;;  %p772_p0 = scmp.ge.s32.totalorder %s958_s17, 1  ;;  %s958_s17 = sphi %s991_s17, %s14_s17   ;;  %s954_s16 = sphi %s989_s16, %s1165_s16   ;;  %s950_s15 = sphi %s987_s15, %s1164_s15  }
   0x3   : > { %p28_p1 = scmp.ge.s32.totalorder %s26_s18, 2  ;;  %p198_p2 = scmp.lt.s32.totalorder %s958_s17, 3 }
   0x5   : > { %s1167_s18 = smov (%p28_p1, %s26_s18), 0  ;;  %p199_p3 = pnand %p772_p0, %p198_p2 }
   0x6   : > { %p237_p4 = scmp.lt.s32.totalorder (!%p199_p3), %s950_s15, 1 }
   0x7   : > { %202 = sbr.rel (%p199_p3) target bundleno = 329 (0x149), region = 36 }
   0xc   : > { %v880_v0 = vld [vmem:[%s1159_s2 + $0x74] ss:$8 sps:$4 sm:$0xff]   ;;  %v882_v1 = vld [vmem:[%s1159_s2 + $0x70] ss:$8 sps:$4 sm:$0xff]   ;;  %v883_v2 = vld [vmem:[%s1159_s2 + $0x64] ss:$8 sps:$4 sm:$0xff]   ;;  %v264_v40 = vlaneseq }
   0xd   : > { %537 = vmatprep.subr.bf16.mxu0 %v880_v0  ;;  %822 = vmatprep.subr.bf16.mxu1 %v880_v0  ;;  %v885_v3 = vld [vmem:[%s1159_s2 + $0x60] ss:$8 sps:$4 sm:$0xff]   ;;  %v886_v4 = vld [vmem:[%s1159_s2 + $0x54] ss:$8 sps:$4 sm:$0xff]   ;;  %v888_v5 = vld [vmem:[%s1159_s2 + $0x50] ss:$8 sps:$4 sm:$0xff]  }
   0xe   : > { %538 = vmatpush1.bf16.msra.mxu0 %v882_v1  ;;  %838 = vmatpush1.bf16.msra.mxu1 %v882_v1  ;;  %v889_v6 = vld [vmem:[%s1159_s2 + $0x44] ss:$8 sps:$4 sm:$0xff]   ;;  %v891_v7 = vld [vmem:[%s1159_s2 + $0x40] ss:$8 sps:$4 sm:$0xff]   ;;  %v892_v8 = vld [vmem:[%s1159_s2 + $0x34] ss:$8 sps:$4 sm:$0xff]  }
   0xf   : > { %539 = vmatprep.subr.bf16.mxu0 %v883_v2  ;;  %823 = vmatprep.subr.bf16.mxu1 %v883_v2  ;;  %s1169_s15 = smov (!%p237_p4, %s950_s15), 1  ;;  %v894_v9 = vld [vmem:[%s1159_s2 + $0x30] ss:$8 sps:$4 sm:$0xff]   ;;  %v895_v10 = vld [vmem:[%s1159_s2 + $0x24] ss:$8 sps:$4 sm:$0xff]   ;;  %vm1126_vm0 = vcmp.lt.s32.totalorder %v264_v40, 256 }
  0x10   : > { %s820_s19 = sshll.u32 %s1169_s15, 5  ;;  %v897_v11 = vld [vmem:[%s1159_s2 + $0x20] ss:$8 sps:$4 sm:$0xff]   ;;  %v898_v12 = vld [vmem:[%s1159_s2 + $0x14] ss:$8 sps:$4 sm:$0xff]   ;;  %v960_v42 = vmov 0.0  }
  0x11   : > { %s1051_s24 = scalar_lea.vmem %s1158_s1, %s820_s19  ;;  %v900_v13 = vld [vmem:[%s1159_s2 + $0x10] ss:$8 sps:$4 sm:$0xff]   ;;  %s1062_s5 = scalar_lea.vmem %s1157_s0, %s820_s19  ;;  %v901_v15 = vld [vmem:[%s1159_s2 + $0x4] ss:$8 sps:$4 sm:$0xff]   ;;  %v903_v17 = vld [vmem:[%s1159_s2] ss:$8 sps:$4 sm:$0xff]  }
  0x12   : > { %540 = vmatpush1.bf16.msra.mxu0 %v885_v3  ;;  %839 = vmatpush1.bf16.msra.mxu1 %v885_v3  ;;  %v928_v14 = vld [vmem:[%s1051_s24] sm:$0xff]   ;;  %v930_v16 = vld [vmem:[%s1051_s24 + $0x10] sm:$0xff]   ;;  %v932_v36 = vld [vmem:[%s1051_s24 + $0x8] sm:$0xff]   ;;  %268 = vst.msk [vmem:[#allocation2] sm:$0x3] %vm1126_vm0, %v960_v42  ;;  %v1132_v43 = vshrl.u32 %v264_v40, 7 }
  0x13   : > { %541 = vmatprep.subr.bf16.mxu0 %v886_v4  ;;  %824 = vmatprep.subr.bf16.mxu1 %v886_v4  ;;  %v904_v18 = vld [vmem:[%s1159_s2 + $0xf4] ss:$8 sps:$4 sm:$0xff]   ;;  %v906_v19 = vld [vmem:[%s1159_s2 + $0xf0] ss:$8 sps:$4 sm:$0xff]   ;;  %v907_v20 = vld [vmem:[%s1159_s2 + $0xe4] ss:$8 sps:$4 sm:$0xff]  }
  0x14   : > { %569 = vmatprep.mubr.bf16.mxu0 %v928_v14  ;;  %589 = vmatprep.mubr.bf16.mxu1 %v930_v16  ;;  %v909_v21 = vld [vmem:[%s1159_s2 + $0xe0] ss:$8 sps:$4 sm:$0xff]   ;;  %v910_v22 = vld [vmem:[%s1159_s2 + $0xd4] ss:$8 sps:$4 sm:$0xff]   ;;  %v912_v23 = vld [vmem:[%s1159_s2 + $0xd0] ss:$8 sps:$4 sm:$0xff]  }
  0x15   : > { %v913_v24 = vld [vmem:[%s1159_s2 + $0xc4] ss:$8 sps:$4 sm:$0xff]   ;;  %v915_v25 = vld [vmem:[%s1159_s2 + $0xc0] ss:$8 sps:$4 sm:$0xff]   ;;  %v916_v26 = vld [vmem:[%s1159_s2 + $0xb4] ss:$8 sps:$4 sm:$0xff]  }
  0x16   : > { %542 = vmatpush1.bf16.msra.mxu0 %v888_v5  ;;  %840 = vmatpush1.bf16.msra.mxu1 %v888_v5  ;;  %v918_v27 = vld [vmem:[%s1159_s2 + $0xb0] ss:$8 sps:$4 sm:$0xff]   ;;  %v919_v28 = vld [vmem:[%s1159_s2 + $0xa4] ss:$8 sps:$4 sm:$0xff]   ;;  %v921_v29 = vld [vmem:[%s1159_s2 + $0xa0] ss:$8 sps:$4 sm:$0xff]  }
  0x17   : > { %543 = vmatprep.subr.bf16.mxu0 %v889_v6  ;;  %825 = vmatprep.subr.bf16.mxu1 %v889_v6  ;;  %v922_v30 = vld [vmem:[%s1159_s2 + $0x94] ss:$8 sps:$4 sm:$0xff]   ;;  %v924_v31 = vld [vmem:[%s1159_s2 + $0x90] ss:$8 sps:$4 sm:$0xff]   ;;  %v925_v32 = vld [vmem:[%s1159_s2 + $0x84] ss:$8 sps:$4 sm:$0xff]  }
  0x18   : > { %v927_v33 = vld [vmem:[%s1159_s2 + $0x80] ss:$8 sps:$4 sm:$0xff]   ;;  %v931_v35 = vld [vmem:[%s1062_s5 + $0x10] sm:$0xff]   ;;  %v934_v37 = vld [vmem:[%s1051_s24 + $0x18] sm:$0xff]   ;;  %v369_v44 = vsub.s32 0, %v1132_v43  ;;  %v373_v48 = vsub.s32 1, %v1132_v43 }
  0x19   : > { %v929_v34 = vld [vmem:[%s1062_s5] sm:$0xff]   ;;  %v933_v38 = vld [vmem:[%s1062_s5 + $0x8] sm:$0xff]   ;;  %v935_v39 = vld [vmem:[%s1062_s5 + $0x18] sm:$0xff]   ;;  %s777_s5 = sshll.u32 %s1169_s15, 1 }
  0x1a   : > { %544 = vmatpush1.bf16.msra.mxu0 %v891_v7  ;;  %841 = vmatpush1.bf16.msra.mxu1 %v891_v7  ;;  %v365_v45 = vld [vmem:[%s1160_s3] sm:$0x3]  ;;  %s259_s30 = scalar_lea.vmem %s1161_s4, %s777_s5 }
  0x1b   : > { %545 = vmatprep.subr.bf16.mxu0 %v892_v8  ;;  %826 = vmatprep.subr.bf16.mxu1 %v892_v8  ;;  %v370_v51 = vrot.slane %v365_v45, %v369_v44  ;;  %v374_v54 = vrot.slane %v365_v45, %v373_v48 }
  0x1e   : > { %546 = vmatpush1.bf16.msra.mxu0 %v894_v9  ;;  %842 = vmatpush1.bf16.msra.mxu1 %v894_v9 }
  0x1f   : > { %547 = vmatprep.subr.bf16.mxu0 %v895_v10  ;;  %827 = vmatprep.subr.bf16.mxu1 %v895_v10 }
  0x22   : > { %548 = vmatpush1.bf16.msra.mxu0 %v897_v11  ;;  %843 = vmatpush1.bf16.msra.mxu1 %v897_v11 }
  0x23   : > { %549 = vmatprep.subr.bf16.mxu0 %v898_v12  ;;  %828 = vmatprep.subr.bf16.mxu1 %v898_v12 }
  0x26   : > { %550 = vmatpush1.bf16.msra.mxu0 %v900_v13  ;;  %844 = vmatpush1.bf16.msra.mxu1 %v900_v13 }
  0x27   : > { %551 = vmatprep.subr.bf16.mxu0 %v901_v15  ;;  %829 = vmatprep.subr.bf16.mxu1 %v901_v15 }
  0x2a   : > { %552 = vmatpush1.bf16.msra.mxu0 %v903_v17  ;;  %845 = vmatpush1.bf16.msra.mxu1 %v903_v17 }
  0x2b   : > { %553 = vmatprep.subr.bf16.mxu0 %v904_v18  ;;  %830 = vmatprep.subr.bf16.mxu1 %v904_v18 }
  0x2e   : > { %554 = vmatpush2.bf16.msra.mxu0 %v906_v19  ;;  %846 = vmatpush2.bf16.msra.mxu1 %v906_v19 }
  0x2f   : > { %555 = vmatprep.subr.bf16.mxu0 %v907_v20  ;;  %831 = vmatprep.subr.bf16.mxu1 %v907_v20 }
  0x32   : > { %556 = vmatpush2.bf16.msra.mxu0 %v909_v21  ;;  %847 = vmatpush2.bf16.msra.mxu1 %v909_v21 }
  0x33   : > { %557 = vmatprep.subr.bf16.mxu0 %v910_v22  ;;  %832 = vmatprep.subr.bf16.mxu1 %v910_v22 }
  0x36   : > { %558 = vmatpush2.bf16.msra.mxu0 %v912_v23  ;;  %848 = vmatpush2.bf16.msra.mxu1 %v912_v23 }
  0x37   : > { %559 = vmatprep.subr.bf16.mxu0 %v913_v24  ;;  %833 = vmatprep.subr.bf16.mxu1 %v913_v24 }
  0x3a   : > { %560 = vmatpush2.bf16.msra.mxu0 %v915_v25  ;;  %849 = vmatpush2.bf16.msra.mxu1 %v915_v25 }
  0x3b   : > { %561 = vmatprep.subr.bf16.mxu0 %v916_v26  ;;  %834 = vmatprep.subr.bf16.mxu1 %v916_v26 }
  0x3e   : > { %562 = vmatpush2.bf16.msra.mxu0 %v918_v27  ;;  %850 = vmatpush2.bf16.msra.mxu1 %v918_v27 }
  0x3f   : > { %563 = vmatprep.subr.bf16.mxu0 %v919_v28  ;;  %835 = vmatprep.subr.bf16.mxu1 %v919_v28 }
  0x42   : > { %564 = vmatpush2.bf16.msra.mxu0 %v921_v29  ;;  %851 = vmatpush2.bf16.msra.mxu1 %v921_v29 }
  0x43   : > { %565 = vmatprep.subr.bf16.mxu0 %v922_v30  ;;  %836 = vmatprep.subr.bf16.mxu1 %v922_v30 }
  0x46   : > { %566 = vmatpush2.bf16.msra.mxu0 %v924_v31  ;;  %852 = vmatpush2.bf16.msra.mxu1 %v924_v31 }
  0x47   : > { %567 = vmatprep.subr.bf16.mxu0 %v925_v32  ;;  %837 = vmatprep.subr.bf16.mxu1 %v925_v32 }
  0x4a   : > { %568 = vmatpush2.bf16.msra.mxu0 %v927_v33  ;;  %853 = vmatpush2.bf16.msra.mxu1 %v927_v33 }
  0x4d   : > { %570 = vmatmul.mubr.bf16.vlgmr.msra.gmra.mxu0 %v929_v34  ;;  %590 = vmatmul.mubr.bf16.vlgmr.msra.gmra.mxu1 %v931_v35 }
  0x4e   : > { %579 = vmatprep.mubr.bf16.mxu0 %v932_v36  ;;  %599 = vmatprep.mubr.bf16.mxu1 %v934_v37 }
  0x55   : > { %580 = vmatmul.mubr.bf16.gmra.mxu0 %v933_v38  ;;  %600 = vmatmul.mubr.bf16.gmra.mxu1 %v935_v39 }
 0x10d   : > { %v571_v46 = vpop.f32.mrf.mxu0  ;;  %v591_v47 = vpop.f32.mrf.mxu1 }
 0x10e   : > { %v572_v58 = vadd.f32 %v571_v46, %v370_v51  ;;  %v592_v7 = vadd.f32 %v591_v47, %v370_v51 }
 0x10f   : > { %v573_v49 = vpop.f32.mrf.mxu0  ;;  %v593_v50 = vpop.f32.mrf.mxu1 }
 0x110   : > { %v574_v62 = vadd.f32 %v573_v49, %v374_v54  ;;  %v610_v3 = vmax.f32 %v572_v58, 0.0  ;;  %v594_v13 = vadd.f32 %v593_v50, %v374_v54  ;;  %v618_v21 = vmax.f32 %v592_v7, 0.0 }
 0x111   : > { %v575_v52 = vpop.f32.mrf.mxu0  ;;  %v595_v53 = vpop.f32.mrf.mxu1 }
 0x112   : > { %v576_v55 = vadd.f32 %v575_v52, %v370_v51  ;;  %v611_v9 = vmax.f32 %v574_v62, 0.0  ;;  %v596_v14 = vadd.f32 %v595_v53, %v370_v51  ;;  %v619_v27 = vmax.f32 %v594_v13, 0.0 }
 0x113   : > { %v577_v56 = vpop.f32.mrf.mxu0  ;;  %v597_v57 = vpop.f32.mrf.mxu1 }
 0x114   : > { %v578_v59 = vadd.f32 %v577_v56, %v374_v54  ;;  %v612_v63 = vmax.f32 %v576_v55, 0.0  ;;  %v598_v22 = vadd.f32 %v597_v57, %v374_v54  ;;  %v620_v28 = vmax.f32 %v596_v14, 0.0 }
 0x115   : > { %v581_v60 = vpop.f32.mrf.mxu0  ;;  %v601_v61 = vpop.f32.mrf.mxu1  ;;  %v961_v56 = vmov 1966171168  }
 0x116   : > { %v582_v0 = vadd.f32 %v581_v60, %v370_v51  ;;  %v613_v4 = vmax.f32 %v578_v59, 0.0  ;;  %v627_v10 = vadd.f32 %v612_v63, %v610_v3  ;;  %v602_v24 = vadd.f32 %v601_v61, %v370_v51  ;;  %v626_v3 = vld [vmem:[#allocation2] sm:$0x3] }
 0x117   : > { %v583_v1 = vpop.f32.mrf.mxu0  ;;  %v603_v2 = vpop.f32.mrf.mxu1  ;;  %v621_v34 = vmax.f32 %v598_v22, 0.0 }
 0x118   : > { %v614_v5 = vmax.f32 %v582_v0, 0.0  ;;  %v584_v6 = vadd.f32 %v583_v1, %v374_v54  ;;  %v640_v17 = vadd.f32 %v613_v4, %v611_v9  ;;  %v604_v31 = vadd.f32 %v603_v2, %v374_v54 }
 0x119   : > { %v585_v8 = vpop.f32.mrf.mxu0  ;;  %v605_v16 = vpop.f32.mrf.mxu1  ;;  %v622_v35 = vmax.f32 %v602_v24, 0.0 }
 0x11a   : > { %v615_v11 = vmax.f32 %v584_v6, 0.0  ;;  %v586_v12 = vadd.f32 %v585_v8, %v370_v51  ;;  %v628_v18 = vadd.f32 %v627_v10, %v614_v5  ;;  %v606_v33 = vadd.f32 %v605_v16, %v370_v51 }
 0x11b   : > { %v587_v15 = vpop.f32.mrf.mxu0  ;;  %v607_v29 = vpop.f32.mrf.mxu1  ;;  %v623_v39 = vmax.f32 %v604_v31, 0.0  ;;  %v657_v51 = vunpack.c.l.s4 %v961_v56 }
 0x11c   : > { %v616_v19 = vmax.f32 %v586_v12, 0.0  ;;  %v588_v20 = vadd.f32 %v587_v15, %v374_v54  ;;  %v641_v23 = vadd.f32 %v640_v17, %v615_v11  ;;  %v608_v38 = vadd.f32 %v607_v29, %v374_v54 }
 0x11d   : > { %v624_v40 = vmax.f32 %v606_v33, 0.0  ;;  %v658_v60 = vunpack.c.0.s8 %v657_v51 }
 0x11e   : > { %v629_v25 = vadd.f32 %v628_v18, %v616_v19  ;;  %v617_v26 = vmax.f32 %v588_v20, 0.0  ;;  %v625_v46 = vmax.f32 %v608_v38, 0.0 }
 0x11f   : > { %v661_v0 = vsub.s32 %v658_v60, %v1132_v43 }
 0x120   : > { %v630_v30 = vadd.f32 %v629_v25, %v618_v21  ;;  %v642_v32 = vadd.f32 %v641_v23, %v617_v26 }
 0x122   : > { %v643_v36 = vadd.f32 %v642_v32, %v619_v27  ;;  %v631_v37 = vadd.f32 %v630_v30, %v620_v28 }
 0x124   : > { %v632_v42 = vadd.f32 %v631_v37, %v622_v35  ;;  %v644_v44 = vadd.f32 %v643_v36, %v621_v34 }
 0x126   : > { %v633_v45 = vadd.f32 %v632_v42, %v624_v40  ;;  %v645_v47 = vadd.f32 %v644_v44, %v623_v39 }
 0x128   : > { %v634_v48 = vrot.slane %v633_v45, 4  ;;  %v646_v49 = vadd.f32 %v645_v47, %v625_v46 }
 0x12a   : > { %v635_v50 = vadd.f32 %v634_v48, %v633_v45  ;;  %v647_v52 = vrot.slane %v646_v49, 4 }
 0x12c   : > { %v636_v53 = vrot.slane %v635_v50, 2  ;;  %v648_v55 = vadd.f32 %v647_v52, %v646_v49 }
 0x12e   : > { %v637_v57 = vadd.f32 %v636_v53, %v635_v50  ;;  %v649_v58 = vrot.slane %v648_v55, 2 }
 0x130   : > { %v638_v59 = vrot.slane %v637_v57, 1  ;;  %v650_v54 = vadd.f32 %v649_v58, %v648_v55 }
 0x132   : > { %v651_v61 = vrot.slane %v650_v54, 1  ;;  %v639_v62 = vadd.f32 %v638_v59, %v637_v57 }
 0x134   : > { %v652_v63 = vadd.f32 %v651_v61, %v650_v54 }
 0x136   : > { %v655_v1 = vcombine.low %v639_v62, %v652_v63 }
 0x138   : > { %v662_v2 = vrot.slane %v655_v1, %v661_v0 }
 0x13a   : > { %v669_v4 = vrot.slane %v662_v2, %v661_v0 }
 0x13c   : > { %v671_v5 = vadd.f32 %v669_v4, %v626_v3 }
 0x13e   : > { %676 = vst.msk [vmem:[#allocation2] sm:$0x3] %vm1126_vm0, %v671_v5 }
 0x145   : > { %v680_v6 = vld [vmem:[#allocation2] sm:$0x3] }
 0x146   : > { %v681_v7 = vmul.f32 0.015625, %v680_v6 }
 0x148   : > { %682 = vst.msk [vmem:[%s259_s30] sm:$0x3] %vm1126_vm0, %v681_v7 }
 0x149 PF: > { %s14_s17 = sadd.s32 1, %s958_s17   ;;  %s1164_s15 = smov %s954_s16 }
 0x14a   : > { %p11_p5 = scmp.ge.s32.totalorder %s14_s17, 4   ;;  %s1165_s16 = smov %s1167_s18 }
 0x14c   :  { %13 = sbr.rel (!%p11_p5) target bundleno = 2 (0x2), region = 77 }

// kernel: timm_encoder_forward.6
= control target key start
LH: loop header
LB: loop body
LE: loop exit
PB: predicated region body
PF: predicated region fallthrough
CT: control target
= control target key end

     0   :  { %s3023_s12 = smov 0   ;;  %s3641_s0 = inlined_call_operand.vmem [shape: bf16[2,10,10,128], index: 0, kind: input, shape index: {}]   ;;  %s3642_s1 = inlined_call_operand.vmem [shape: bf16[9,128,128], index: 1, kind: input, shape index: {}]   ;;  %s3643_s2 = inlined_call_operand.vmem [shape: f32[1,128], index: 2, kind: input, shape index: {}]   ;;  %s3644_s3 = inlined_call_operand.vmem [shape: bf16[2,8,8,128], index: 3, kind: output, shape index: {}]  }
   0x1 LB: > { %s2219_s13 = sadd.s32 4294967295, %s3001_s12   ;;  %p2223_p0 = scmp.ge.s32.totalorder %s3001_s12, 1  ;;  %s3001_s12 = sphi %s3023_s12, %s13_s12  }
   0x2   : > { %p137_p1 = scmp.lt.s32.totalorder %s3001_s12, 3 }
   0x4   : > { %p138_p2 = pnand %p2223_p0, %p137_p1 }
   0x6   : > { %141 = sbr.rel (%p138_p2) target bundleno = 381 (0x17d), region = 32 }
   0xb   : > { %v2911_v0 = vld [vmem:[%s3642_s1 + $0x78] sm:$0xff]   ;;  %p161_p3 = scmp.lt.s32.totalorder %s2219_s13, 1  ;;  %v2913_v2 = vld [vmem:[%s3642_s1 + $0x70] sm:$0xff]   ;;  %v2915_v4 = vld [vmem:[%s3642_s1 + $0x68] sm:$0xff]   ;;  %vm189_vm0 = vsmask.f32 3328 }
   0xc   : > { %v2912_v1 = vld [vmem:[%s3642_s1 + $0x38] sm:$0xff]   ;;  %2670 = vmatprep.subr.bf16.mxu0 %v2911_v0  ;;  %v2914_v3 = vld [vmem:[%s3642_s1 + $0x30] sm:$0xff]   ;;  %v2916_v5 = vld [vmem:[%s3642_s1 + $0x28] sm:$0xff]   ;;  %vm190_vm1 = vsmask.f32 7440  ;;  %vm328_vm3 = vcmask 1042432  }
   0xd   : > { %2694 = vmatprep.subr.bf16.mxu1 %v2912_v1  ;;  %2671 = vmatpush3.bf16.msra.mxu0 %v2911_v0  ;;  %s3656_s13 = smov (!%p161_p3, %s2219_s13), 1  ;;  %v2917_v6 = vld [vmem:[%s3642_s1 + $0x60] sm:$0xff]   ;;  %v2919_v8 = vld [vmem:[%s3642_s1 + $0x58] sm:$0xff]   ;;  %v2921_v10 = vld [vmem:[%s3642_s1 + $0x50] sm:$0xff]   ;;  %vm329_vm4 = vcmask 1046532  }
   0xe   : > { %2695 = vmatpush3.bf16.msra.mxu1 %v2912_v1  ;;  %2672 = vmatprep.subr.bf16.mxu0 %v2913_v2  ;;  %v2918_v7 = vld [vmem:[%s3642_s1 + $0x20] sm:$0xff]   ;;  %s2902_s30 = smul.u32 80, %s3656_s13  ;;  %v2920_v9 = vld [vmem:[%s3642_s1 + $0x18] sm:$0xff]   ;;  %v2922_v14 = vld [vmem:[%s3642_s1 + $0x10] sm:$0xff]   ;;  %s2538_s18 = sshll.u32 %s3656_s13, 5 }
   0xf   : > { %2696 = vmatprep.subr.bf16.mxu1 %v2914_v3  ;;  %v2923_v17 = vld [vmem:[%s3642_s1 + $0x48] sm:$0xff]   ;;  %vm3110_vm2 = vmor %vm189_vm0, %vm190_vm1  ;;  %v2925_v46 = vld [vmem:[%s3642_s1 + $0x40] sm:$0xff]   ;;  %s170_s21 = scalar_lea.vmem %s3644_s3, %s2538_s18 }
  0x10   : > { %s3067_s10 = scalar_lea.vmem %s3641_s0, %s2902_s30  ;;  %v2924_v23 = vld [vmem:[%s3642_s1 + $0x8] sm:$0xff]   ;;  %v2926_v50 = vld [vmem:[%s3642_s1] sm:$0xff]   ;;  %v2929_v59 = vld [vmem:[%s3642_s1 + $0xb8] sm:$0xff]  }
  0x11   : > { %2673 = vmatpush3.bf16.msra.mxu0 %v2913_v2  ;;  %v173_v11 = vld [vmem:[%s3067_s10] sm:$0xf]  ;;  %v174_v12 = vld [vmem:[%s3067_s10 + $0x8] sm:$0xf]  ;;  %v3075_v13 = vld [vmem:[%s3067_s10 + $0x4] sm:$0x1] }
  0x12   : > { %2697 = vmatpush3.bf16.msra.mxu1 %v2914_v3  ;;  %2674 = vmatprep.subr.bf16.mxu0 %v2915_v4  ;;  %v3081_v15 = vld [vmem:[%s3067_s10 + $0xc] sm:$0x1]  ;;  %v2327_v16 = vcombine.low %v173_v11, %v174_v12  ;;  %v193_v18 = vshrl.u32 %v173_v11, 16  ;;  %v196_v19 = vshll.u32 %v173_v11, 16  ;;  %v202_v20 = vshll.u32 %v3075_v13, 16  ;;  %v2930_v62 = vld [vmem:[%s3642_s1 + $0xf8] sm:$0xff]   ;;  %vm3193_vm5 = vmor %vm328_vm3, %vm329_vm4 }
  0x13   : > { %2698 = vmatprep.subr.bf16.mxu1 %v2916_v5  ;;  %v207_v21 = vshrl.u32 %v174_v12, 16  ;;  %v3088_v22 = vld [vmem:[%s3067_s10 + $0x10] sm:$0xf]  ;;  %v210_v24 = vshll.u32 %v174_v12, 16  ;;  %v216_v25 = vshll.u32 %v3081_v15, 16  ;;  %v2934_v11 = vld [vmem:[%s3642_s1 + $0xe8] sm:$0xff]  }
  0x14   : > { %2710 = vmatprep.mubr.bf16.mxu1 %v2327_v16  ;;  %v3095_v26 = vld [vmem:[%s3067_s10 + $0x18] sm:$0xf]  ;;  %v195_v27 = vrot.slane %v193_v18, 4  ;;  %v198_v28 = vrot.slane %v196_v19, 5  ;;  %v204_v29 = vrot.slane %v202_v20, 5  ;;  %v221_v35 = vshrl.u32 %v3088_v22, 16 }
  0x15   : > { %2675 = vmatpush3.bf16.msra.mxu0 %v2915_v4  ;;  %v209_v30 = vrot.slane %v207_v21, 4  ;;  %v3098_v31 = vld [vmem:[%s3067_s10 + $0x14] sm:$0x1]  ;;  %v212_v32 = vrot.slane %v210_v24, 5  ;;  %v218_v33 = vrot.slane %v216_v25, 5  ;;  %v224_v36 = vshll.u32 %v3088_v22, 16 }
  0x16   : > { %2699 = vmatpush3.bf16.msra.mxu1 %v2916_v5  ;;  %2676 = vmatprep.subr.bf16.mxu0 %v2917_v6  ;;  %v3101_v34 = vld [vmem:[%s3067_s10 + $0x1c] sm:$0x1]  ;;  %v199_v37 = vor.u32 %v198_v28, %v195_v27  ;;  %v230_v38 = vshll.u32 %v3098_v31, 16  ;;  %v235_v39 = vshrl.u32 %v3095_v26, 16  ;;  %v238_v40 = vshll.u32 %v3095_v26, 16  ;;  %v2931_v3 = vld [vmem:[%s3642_s1 + $0xb0] sm:$0xff]  }
  0x17   : > { %2700 = vmatprep.subr.bf16.mxu1 %v2918_v7  ;;  %v213_v42 = vor.u32 %v212_v32, %v209_v30  ;;  %v223_v43 = vrot.slane %v221_v35, 4  ;;  %v226_v44 = vrot.slane %v224_v36, 5  ;;  %v244_v45 = vshll.u32 %v3101_v34, 16  ;;  %v2932_v5 = vld [vmem:[%s3642_s1 + $0xf0] sm:$0xff]   ;;  %v3166_v28 = vld [vmem:[%s3067_s10 + $0x3c] sm:$0x1] }
  0x18   : > { %v200_v47 = vrot.slane %v199_v37, 4  ;;  %v237_v48 = vrot.slane %v235_v39, 4  ;;  %v240_v49 = vrot.slane %v238_v40, 5  ;;  %v232_v53 = vrot.slane %v230_v38, 5  ;;  %v179_v18 = vld [vmem:[%s3067_s10 + $0x30] sm:$0xf] }
  0x19   : > { %2677 = vmatpush3.bf16.msra.mxu0 %v2917_v6  ;;  %v214_v51 = vrot.slane %v213_v42, 4  ;;  %v227_v52 = vor.u32 %v226_v44, %v223_v43  ;;  %v246_v56 = vrot.slane %v244_v45, 5  ;;  %v2328_v2 = vcombine.low %v3088_v22, %v3095_v26  ;;  %v177_v6 = vld [vmem:[%s3067_s10 + $0x20] sm:$0xf]  ;;  %v180_v22 = vld [vmem:[%s3067_s10 + $0x38] sm:$0xf] }
  0x1a   : > { %2701 = vmatpush3.bf16.msra.mxu1 %v2918_v7  ;;  %2678 = vmatprep.subr.bf16.mxu0 %v2919_v8  ;;  %v205_v54 = vsel %vm3110_vm2, %v200_v47, %v204_v29  ;;  %v241_v55 = vor.u32 %v240_v49, %v237_v48  ;;  %v333_v4 = vrot.slane %v3075_v13, 5  ;;  %v2933_v7 = vld [vmem:[%s3642_s1 + $0xa8] sm:$0xff]   ;;  %v249_v12 = vshrl.u32 %v177_v6, 16  ;;  %v2935_v39 = vld [vmem:[%s3642_s1 + $0xa0] sm:$0xff]  }
  0x1b   : > { %2702 = vmatprep.subr.bf16.mxu1 %v2920_v9  ;;  %v219_v57 = vsel %vm3110_vm2, %v214_v51, %v218_v33  ;;  %v228_v58 = vrot.slane %v227_v52, 4  ;;  %v277_v32 = vshrl.u32 %v179_v18, 16  ;;  %v280_v33 = vshll.u32 %v179_v18, 16  ;;  %v2936_v45 = vld [vmem:[%s3642_s1 + $0xe0] sm:$0xff]   ;;  %v2943_v13 = vld [vmem:[%s3642_s1 + $0x88] sm:$0xff]  }
  0x1c   : > { %v2315_v60 = vcombine.low %v205_v54, %v219_v57  ;;  %v242_v61 = vrot.slane %v241_v55, 4  ;;  %v251_v24 = vrot.slane %v249_v12, 4  ;;  %v291_v37 = vshrl.u32 %v180_v22, 16  ;;  %v2937_v57 = vld [vmem:[%s3642_s1 + $0x98] sm:$0xff]   ;;  %v2942_v12 = vld [vmem:[%s3642_s1 + $0xd0] sm:$0xff]  }
  0x1d   : > { %2679 = vmatpush3.bf16.msra.mxu0 %v2919_v8  ;;  %v233_v63 = vsel %vm3110_vm2, %v228_v58, %v232_v53  ;;  %v178_v8 = vld [vmem:[%s3067_s10 + $0x28] sm:$0xf]  ;;  %v294_v38 = vshll.u32 %v180_v22, 16  ;;  %v279_v42 = vrot.slane %v277_v32, 4  ;;  %v282_v43 = vrot.slane %v280_v33, 5 }
  0x1e   : > { %2703 = vmatpush3.bf16.msra.mxu1 %v2920_v9  ;;  %2680 = vmatprep.subr.bf16.mxu0 %v2921_v10  ;;  %v247_v0 = vsel %vm3110_vm2, %v242_v61, %v246_v56  ;;  %v3150_v9 = vld [vmem:[%s3067_s10 + $0x24] sm:$0x1]  ;;  %v266_v19 = vshll.u32 %v178_v8, 16  ;;  %v2329_v21 = vcombine.low %v177_v6, %v178_v8  ;;  %v300_v44 = vshll.u32 %v3166_v28, 16  ;;  %v308_v33 = vld [vmem:[%s3067_s10 + $0x20] sm:$0xe] }
  0x1f   : > { %2704 = vmatprep.subr.bf16.mxu1 %v2922_v14  ;;  %2686 = vmatprep.mubr.bf16.mxu0 %v2315_v60  ;;  %v2316_v1 = vcombine.low %v233_v63, %v247_v0  ;;  %v258_v16 = vshll.u32 %v3150_v9, 16  ;;  %v293_v47 = vrot.slane %v291_v37, 4  ;;  %v296_v48 = vrot.slane %v294_v38, 5  ;;  %v304_v63 = vld [vmem:[%s3067_s10] sm:$0xe] }
  0x20   : > { %v268_v29 = vrot.slane %v266_v19, 5  ;;  %v2330_v52 = vcombine.low %v179_v18, %v180_v22  ;;  %v337_v53 = vrot.slane %v3081_v15, 5  ;;  %v302_v56 = vrot.slane %v300_v44, 5  ;;  %v2938_v15 = vld [vmem:[%s3642_s1 + $0xd8] sm:$0xff]   ;;  %v305_v0 = vld [vmem:[%s3067_s10 + $0x8] sm:$0xe] }
  0x21   : > { %2681 = vmatpush3.bf16.msra.mxu0 %v2921_v10  ;;  %v3153_v10 = vld [vmem:[%s3067_s10 + $0x2c] sm:$0x1]  ;;  %v260_v26 = vrot.slane %v258_v16, 5  ;;  %v297_v55 = vor.u32 %v296_v48, %v293_v47  ;;  %v341_v18 = vrot.slane %v3098_v31, 5  ;;  %v345_v19 = vrot.slane %v3101_v34, 5  ;;  %v2949_v44 = vld [vmem:[%s3642_s1 + $0x138] sm:$0xff]  }
  0x22   : > { %2705 = vmatpush3.bf16.msra.mxu1 %v2922_v14  ;;  %2682 = vmatprep.subr.bf16.mxu0 %v2923_v17  ;;  %v252_v14 = vshll.u32 %v177_v6, 16  ;;  %v272_v20 = vshll.u32 %v3153_v10, 16  ;;  %v2235_v6 = vld [vmem:[%s3067_s10 + $0x8] sm:$0xf]  ;;  %v307_v22 = vld [vmem:[%s3067_s10 + $0x18] sm:$0xe] }
  0x23   : > { %2706 = vmatprep.subr.bf16.mxu1 %v2924_v23  ;;  %v298_v61 = vrot.slane %v297_v55, 4  ;;  %v349_v31 = vrot.slane %v3150_v9, 5  ;;  %v353_v34 = vrot.slane %v3153_v10, 5  ;;  %v2230_v32 = vrot.slane %v307_v22, 9  ;;  %v2946_v9 = vld [vmem:[%s3642_s1 + $0xc0] sm:$0xff]  }
  0x24   : > { %v254_v25 = vrot.slane %v252_v14, 5  ;;  %v274_v30 = vrot.slane %v272_v20, 5  ;;  %v2237_v10 = vld [vmem:[%s3067_s10 + $0x18] sm:$0xf]  ;;  %v2238_v38 = vld [vmem:[%s3067_s10 + $0x20] sm:$0xf] }
  0x25   : > { %2683 = vmatpush3.bf16.msra.mxu0 %v2923_v17  ;;  %v263_v17 = vshrl.u32 %v178_v8, 16  ;;  %v310_v47 = vld [vmem:[%s3067_s10 + $0x30] sm:$0xe]  ;;  %v2384_v55 = vcombine.low %v2237_v10, %v2238_v38 }
  0x26   : > { %2707 = vmatpush3.bf16.msra.mxu1 %v2924_v23  ;;  %2684 = vmatprep.subr.bf16.mxu0 %v2925_v46  ;;  %v3163_v23 = vld [vmem:[%s3067_s10 + $0x34] sm:$0x1]  ;;  %v255_v35 = vor.u32 %v254_v25, %v251_v24  ;;  %v381_v24 = vshrl.u32 %v2235_v6, 16  ;;  %v384_v25 = vshll.u32 %v2235_v6, 16 }
  0x27   : > { %2708 = vmatprep.subr.bf16.mxu1 %v2926_v50  ;;  %v265_v27 = vrot.slane %v263_v17, 4  ;;  %v286_v36 = vshll.u32 %v3163_v23, 16 }
  0x28   : > { %v3236_v37 = vrot.slane %v384_v25, 5 }
  0x29   : > { %2685 = vmatpush3.bf16.msra.mxu0 %v2925_v46  ;;  %v269_v40 = vor.u32 %v268_v29, %v265_v27  ;;  %v256_v46 = vrot.slane %v255_v35, 4  ;;  %v288_v51 = vrot.slane %v286_v36, 5  ;;  %v309_v35 = vld [vmem:[%s3067_s10 + $0x28] sm:$0xe]  ;;  %v3234_v36 = vrot.slane %v381_v24, 4 }
  0x2a   : > { %2709 = vmatpush3.bf16.msra.mxu1 %v2926_v50  ;;  %2718 = vmatprep.subr.bf16.mxu0 %v2929_v59  ;;  %v283_v50 = vor.u32 %v282_v43, %v279_v42  ;;  %v346_v43 = vsel %vm3193_vm5, %v2230_v32, %v345_v19 }
  0x2b   : > { %2742 = vmatprep.subr.bf16.mxu1 %v2930_v62  ;;  %v270_v49 = vrot.slane %v269_v40, 4  ;;  %v261_v54 = vsel %vm3110_vm2, %v256_v46, %v260_v26  ;;  %v2945_v26 = vld [vmem:[%s3642_s1 + $0x80] sm:$0xff]   ;;  %v412_v40 = vshll.u32 %v2237_v10, 16  ;;  %v2232_v46 = vrot.slane %v309_v35, 9  ;;  %v2243_v35 = vld [vmem:[%s3067_s10 + $0xc] sm:$0x1] }
  0x2c   : > { %2687 = vmatmul.mubr.bf16.vlgmr.msra.gmra.mxu0 %v2316_v1  ;;  %v387_v24 = vor.u32 %v3236_v37, %v3234_v36  ;;  %v2244_v36 = vld [vmem:[%s3067_s10 + $0x14] sm:$0x1] }
  0x2d   : > { %2711 = vmatmul.mubr.bf16.vlgmr.msra.gmra.mxu1 %v2328_v2  ;;  %2719 = vmatpush3.bf16.msra.mxu0 %v2929_v59  ;;  %v275_v58 = vsel %vm3110_vm2, %v270_v49, %v274_v30  ;;  %v284_v59 = vrot.slane %v283_v50, 4  ;;  %v303_v2 = vsel %vm3110_vm2, %v298_v61, %v302_v56  ;;  %v423_v50 = vshrl.u32 %v2238_v38, 16  ;;  %v2950_v56 = vld [vmem:[%s3642_s1 + $0x178] sm:$0xff]  }
  0x2e   : > { %2743 = vmatpush3.bf16.msra.mxu1 %v2930_v62  ;;  %2720 = vmatprep.subr.bf16.mxu0 %v2931_v3  ;;  %v2317_v60 = vcombine.low %v261_v54, %v275_v58  ;;  %v3258_v58 = vrot.slane %v412_v40, 5  ;;  %v2233_v61 = vrot.slane %v310_v47, 9  ;;  %v388_v37 = vrot.slane %v387_v24, 4 }
  0x2f   : > { %2744 = vmatprep.subr.bf16.mxu1 %v2932_v5  ;;  %2714 = vmatprep.mubr.bf16.mxu1 %v2329_v21  ;;  %v289_v62 = vsel %vm3110_vm2, %v284_v59, %v288_v51  ;;  %v306_v21 = vld [vmem:[%s3067_s10 + $0x10] sm:$0xe]  ;;  %v426_v51 = vshll.u32 %v2238_v38, 16  ;;  %v404_v40 = vshll.u32 %v2244_v36, 16  ;;  %v518_v47 = vrot.slane %v2243_v35, 5 }
  0x30   : > { %2690 = vmatprep.mubr.bf16.mxu0 %v2317_v60  ;;  %v2318_v8 = vcombine.low %v289_v62, %v303_v2  ;;  %v2229_v30 = vrot.slane %v306_v21, 9  ;;  %v2951_v59 = vld [vmem:[%s3642_s1 + $0x130] sm:$0xff]   ;;  %v354_v60 = vsel %vm3193_vm5, %v2232_v46, %v353_v34  ;;  %v2239_v62 = vld [vmem:[%s3067_s10 + $0x28] sm:$0xf] }
  0x31   : > { %2721 = vmatpush3.bf16.msra.mxu0 %v2931_v3  ;;  %v2227_v3 = vrot.slane %v304_v63, 9  ;;  %v2240_v2 = vld [vmem:[%s3067_s10 + $0x30] sm:$0xf] }
  0x32   : > { %2745 = vmatpush3.bf16.msra.mxu1 %v2932_v5  ;;  %2722 = vmatprep.subr.bf16.mxu0 %v2933_v7  ;;  %v2228_v5 = vrot.slane %v305_v0, 9  ;;  %v342_v42 = vsel %vm3193_vm5, %v2229_v30, %v341_v18  ;;  %v361_v0 = vrot.slane %v3166_v28, 5  ;;  %v2953_v28 = vld [vmem:[%s3642_s1 + $0x128] sm:$0xff]  }
  0x33   : > { %2746 = vmatprep.subr.bf16.mxu1 %v2934_v11  ;;  %v334_v14 = vsel %vm3193_vm5, %v2227_v3, %v333_v4  ;;  %v2944_v4 = vld [vmem:[%s3642_s1 + $0xc8] sm:$0xff]   ;;  %v437_v3 = vshrl.u32 %v2239_v62, 16 }
  0x34   : > { %v338_v16 = vsel %vm3193_vm5, %v2228_v5, %v337_v53  ;;  %2691 = vmatmul.mubr.bf16.gmra.mxu0 %v2318_v8  ;;  %v2356_v53 = vcombine.low %v342_v42, %v346_v43  ;;  %v440_v5 = vshll.u32 %v2239_v62, 16  ;;  %v2251_v42 = vld [vmem:[%s3067_s10 + $0x8] sm:$0xe]  ;;  %v2252_v43 = vld [vmem:[%s3067_s10 + $0x10] sm:$0xe] }
  0x35   : > { %2723 = vmatpush3.bf16.msra.mxu0 %v2933_v7  ;;  %2715 = vmatmul.mubr.bf16.gmra.mxu1 %v2330_v52  ;;  %v2236_v7 = vld [vmem:[%s3067_s10 + $0x10] sm:$0xf]  ;;  %v2355_v20 = vcombine.low %v334_v14, %v338_v16  ;;  %v311_v52 = vld [vmem:[%s3067_s10 + $0x38] sm:$0xe]  ;;  %v2385_v16 = vcombine.low %v2239_v62, %v2240_v2  ;;  %v3289_v21 = vrot.slane %v437_v3, 4  ;;  %v2259_v46 = vrot.slane %v2251_v42, 9 }
  0x36   : > { %2747 = vmatpush3.bf16.msra.mxu1 %v2934_v11  ;;  %2724 = vmatprep.subr.bf16.mxu0 %v2935_v39  ;;  %v2941_v11 = vld [vmem:[%s3642_s1 + $0x90] sm:$0xff]   ;;  %v2383_v17 = vcombine.low %v2235_v6, %v2236_v7  ;;  %v395_v27 = vshrl.u32 %v2236_v7, 16  ;;  %v398_v29 = vshll.u32 %v2236_v7, 16  ;;  %v2234_v63 = vrot.slane %v311_v52, 9  ;;  %v2241_v14 = vld [vmem:[%s3067_s10 + $0x38] sm:$0xf] }
  0x37   : > { %2748 = vmatprep.subr.bf16.mxu1 %v2936_v45  ;;  %2734 = vmatprep.mubr.bf16.mxu0 %v2355_v20  ;;  %v3273_v6 = vrot.slane %v423_v50, 4  ;;  %v3275_v7 = vrot.slane %v426_v51, 5  ;;  %v2954_v20 = vld [vmem:[%s3642_s1 + $0x168] sm:$0xff]   ;;  %v3291_v22 = vrot.slane %v440_v5, 5  ;;  %v406_v51 = vrot.slane %v404_v40, 5 }
  0x38   : > { %2758 = vmatprep.mubr.bf16.mxu1 %v2383_v17  ;;  %v3247_v48 = vrot.slane %v395_v27, 4  ;;  %v3249_v49 = vrot.slane %v398_v29, 5  ;;  %v2242_v17 = vld [vmem:[%s3067_s10 + $0x40] sm:$0xf]  ;;  %v362_v19 = vsel %vm3193_vm5, %v2234_v63, %v361_v0  ;;  %v3321_v52 = vld [vmem:[%s3067_s10 + $0x1c] sm:$0x1] }
  0x39   : > { %2725 = vmatpush3.bf16.msra.mxu0 %v2935_v39  ;;  %v409_v39 = vshrl.u32 %v2237_v10, 16  ;;  %v479_v27 = vshrl.u32 %v2242_v17, 16  ;;  %v2957_v29 = vld [vmem:[%s3642_s1 + $0x120] sm:$0xff]   ;;  %v482_v30 = vshll.u32 %v2242_v17, 16  ;;  %v2386_v32 = vcombine.low %v2241_v14, %v2242_v17  ;;  %v2961_v63 = vld [vmem:[%s3642_s1 + $0x110] sm:$0xff]  }
  0x3a   : > { %2749 = vmatpush3.bf16.msra.mxu1 %v2936_v45  ;;  %2726 = vmatprep.subr.bf16.mxu0 %v2937_v57  ;;  %v2231_v45 = vrot.slane %v308_v33, 9  ;;  %v401_v25 = vor.u32 %v3249_v49, %v3247_v48  ;;  %v2260_v48 = vrot.slane %v2252_v43, 9  ;;  %v522_v49 = vrot.slane %v2244_v36, 5  ;;  %v2256_v36 = vld [vmem:[%s3067_s10 + $0x30] sm:$0xe] }
  0x3b   : > { %2750 = vmatprep.subr.bf16.mxu1 %v2938_v15  ;;  %v3252_v54 = vrot.slane %v409_v39, 4  ;;  %v390_v39 = vshll.u32 %v2243_v35, 16  ;;  %v418_v3 = vshll.u32 %v3321_v52, 16 }
  0x3c   : > { %v402_v38 = vrot.slane %v401_v25, 4  ;;  %v526_v25 = vrot.slane %v3321_v52, 5 }
  0x3d   : > { %2727 = vmatpush3.bf16.msra.mxu0 %v2937_v57  ;;  %v357_v57 = vrot.slane %v3163_v23, 5  ;;  %v2952_v23 = vld [vmem:[%s3642_s1 + $0x170] sm:$0xff]   ;;  %v392_v50 = vrot.slane %v390_v39, 5  ;;  %v420_v17 = vrot.slane %v418_v3, 5 }
  0x3e   : > { %2751 = vmatpush3.bf16.msra.mxu1 %v2938_v15  ;;  %2728 = vmatprep.subr.bf16.mxu0 %v2941_v11  ;;  %v350_v15 = vsel %vm3193_vm5, %v2231_v45, %v349_v31  ;;  %v2959_v45 = vld [vmem:[%s3642_s1 + $0x118] sm:$0xff]  }
  0x3f   : > { %2752 = vmatprep.subr.bf16.mxu1 %v2942_v12  ;;  %v2357_v8 = vcombine.low %v350_v15, %v354_v60  ;;  %v358_v18 = vsel %vm3193_vm5, %v2233_v61, %v357_v57  ;;  %v484_v57 = vrot.slane %v482_v30, 5  ;;  %v523_v15 = vsel %vm3193_vm5, %v2260_v48, %v522_v49  ;;  %v2966_v30 = vld [vmem:[%s3642_s1 + $0x140] sm:$0xff]   ;;  %v2968_v48 = vld [vmem:[%s3642_s1 + $0x1f8] sm:$0xff]  }
  0x40   : > { %v393_v60 = vsel %vm3110_vm2, %v388_v37, %v392_v50  ;;  %v407_v61 = vsel %vm3110_vm2, %v402_v38, %v406_v51  ;;  %v2264_v49 = vrot.slane %v2256_v36, 9  ;;  %v2258_v51 = vld [vmem:[%s3067_s10 + $0x40] sm:$0xe] }
  0x41   : > { %2729 = vmatpush3.bf16.msra.mxu0 %v2941_v11  ;;  %v451_v11 = vshrl.u32 %v2240_v2, 16  ;;  %v2411_v0 = vcombine.low %v393_v60, %v407_v61  ;;  %v2266_v61 = vrot.slane %v2258_v51, 9  ;;  %v2976_v51 = vld [vmem:[%s3642_s1 + $0x1d8] sm:$0xff]  }
  0x42   : > { %2753 = vmatpush3.bf16.msra.mxu1 %v2942_v12  ;;  %2730 = vmatprep.subr.bf16.mxu0 %v2943_v13  ;;  %v454_v12 = vshll.u32 %v2240_v2, 16 }
  0x43   : > { %2754 = vmatprep.subr.bf16.mxu1 %v2944_v4  ;;  %v3293_v31 = vrot.slane %v451_v11, 4  ;;  %v3357_v11 = vld [vmem:[%s3067_s10 + $0x2c] sm:$0x1] }
  0x44   : > { %v3295_v34 = vrot.slane %v454_v12, 5  ;;  %v3360_v12 = vld [vmem:[%s3067_s10 + $0x34] sm:$0x1] }
  0x45   : > { %2731 = vmatpush3.bf16.msra.mxu0 %v2943_v13  ;;  %v465_v13 = vshrl.u32 %v2241_v14, 16  ;;  %v538_v50 = vrot.slane %v3360_v12, 5 }
  0x46   : > { %2755 = vmatpush3.bf16.msra.mxu1 %v2944_v4  ;;  %2732 = vmatprep.subr.bf16.mxu0 %v2945_v26  ;;  %v468_v4 = vshll.u32 %v2241_v14, 16 }
  0x47   : > { %2756 = vmatprep.subr.bf16.mxu1 %v2946_v9  ;;  %v3307_v10 = vrot.slane %v465_v13, 4  ;;  %v446_v13 = vshll.u32 %v3357_v11, 16  ;;  %v539_v60 = vsel %vm3193_vm5, %v2264_v49, %v538_v50  ;;  %v3487_v50 = vld [vmem:[%s3067_s10 + $0x38] sm:$0xf] }
  0x48   : > { %v3309_v33 = vrot.slane %v468_v4, 5  ;;  %v460_v4 = vshll.u32 %v3360_v12, 16  ;;  %v2267_v12 = vld [vmem:[%s3067_s10 + $0x10] sm:$0xf] }
  0x49   : > { %2733 = vmatpush3.bf16.msra.mxu0 %v2945_v26  ;;  %v2358_v26 = vcombine.low %v358_v18, %v362_v19  ;;  %v2253_v19 = vld [vmem:[%s3067_s10 + $0x18] sm:$0xe]  ;;  %v448_v39 = vrot.slane %v446_v13, 5 }
  0x4a   : > { %2757 = vmatpush3.bf16.msra.mxu1 %v2946_v9  ;;  %2766 = vmatprep.subr.bf16.mxu0 %v2949_v44  ;;  %v2958_v9 = vld [vmem:[%s3642_s1 + $0x160] sm:$0xff]   ;;  %v2261_v24 = vrot.slane %v2253_v19, 9  ;;  %v462_v40 = vrot.slane %v460_v4, 5 }
  0x4b   : > { %2790 = vmatprep.subr.bf16.mxu1 %v2950_v56  ;;  %v3461_v4 = vld [vmem:[%s3067_s10 + $0x20] sm:$0xf] }
  0x4c   : > { %2735 = vmatmul.mubr.bf16.vlgmr.msra.gmra.mxu0 %v2356_v53  ;;  %v3324_v53 = vld [vmem:[%s3067_s10 + $0x24] sm:$0x1]  ;;  %v527_v42 = vsel %vm3193_vm5, %v2261_v24, %v526_v25 }
  0x4d   : > { %2759 = vmatmul.mubr.bf16.vlgmr.msra.gmra.mxu1 %v2384_v55  ;;  %2767 = vmatpush3.bf16.msra.mxu0 %v2949_v44  ;;  %v415_v44 = vor.u32 %v3258_v58, %v3252_v54  ;;  %v429_v54 = vor.u32 %v3275_v7, %v3273_v6  ;;  %v443_v55 = vor.u32 %v3291_v22, %v3289_v21  ;;  %v2960_v58 = vld [vmem:[%s3642_s1 + $0x158] sm:$0xff]   ;;  %v432_v5 = vshll.u32 %v3324_v53, 16  ;;  %v2962_v6 = vld [vmem:[%s3642_s1 + $0x150] sm:$0xff]  }
  0x4e   : > { %2791 = vmatpush3.bf16.msra.mxu1 %v2950_v56  ;;  %2768 = vmatprep.subr.bf16.mxu0 %v2951_v59  ;;  %v481_v56 = vrot.slane %v479_v27, 4  ;;  %v471_v21 = vor.u32 %v3309_v33, %v3307_v10  ;;  %v530_v27 = vrot.slane %v3324_v53, 5  ;;  %v2255_v10 = vld [vmem:[%s3067_s10 + $0x28] sm:$0xe] }
  0x4f   : > { %2792 = vmatprep.subr.bf16.mxu1 %v2952_v23  ;;  %2738 = vmatprep.mubr.bf16.mxu0 %v2357_v8  ;;  %v3346_v2 = vrot.slane %v415_v44, 4  ;;  %v430_v7 = vrot.slane %v429_v54, 4  ;;  %v2963_v8 = vld [vmem:[%s3642_s1 + $0x108] sm:$0xff]   ;;  %v3362_v14 = vrot.slane %v443_v55, 4  ;;  %v434_v18 = vrot.slane %v432_v5, 5  ;;  %v2967_v44 = vld [vmem:[%s3642_s1 + $0x1b8] sm:$0xff]  }
  0x50   : > { %2762 = vmatprep.mubr.bf16.mxu1 %v2385_v16  ;;  %v2964_v16 = vld [vmem:[%s3642_s1 + $0x148] sm:$0xff]   ;;  %v485_v22 = vor.u32 %v484_v57, %v481_v56 }
  0x51   : > { %2769 = vmatpush3.bf16.msra.mxu0 %v2951_v59  ;;  %v519_v59 = vsel %vm3193_vm5, %v2259_v46, %v518_v47  ;;  %v421_v37 = vsel %vm3110_vm2, %v3346_v2, %v420_v17  ;;  %v435_v38 = vsel %vm3110_vm2, %v430_v7, %v434_v18  ;;  %v534_v46 = vrot.slane %v3357_v11, 5  ;;  %v2257_v47 = vld [vmem:[%s3067_s10 + $0x38] sm:$0xe]  ;;  %v2971_v5 = vld [vmem:[%s3642_s1 + $0x1a8] sm:$0xff]  }
  0x52   : > { %2793 = vmatpush3.bf16.msra.mxu1 %v2952_v23  ;;  %2770 = vmatprep.subr.bf16.mxu0 %v2953_v28  ;;  %v2439_v62 = vcombine.low %v519_v59, %v523_v15  ;;  %v457_v23 = vor.u32 %v3295_v34, %v3293_v31  ;;  %v3376_v31 = vld [vmem:[%s3067_s10 + $0x3c] sm:$0x1]  ;;  %v3379_v34 = vld [vmem:[%s3067_s10 + $0x44] sm:$0x1]  ;;  %v2412_v52 = vcombine.low %v421_v37, %v435_v38  ;;  %v2972_v7 = vld [vmem:[%s3642_s1 + $0x1e8] sm:$0xff]   ;;  %v569_v17 = vshll.u32 %v2267_v12, 16 }
  0x53   : > { %2794 = vmatprep.subr.bf16.mxu1 %v2954_v20  ;;  %v474_v33 = vshll.u32 %v3376_v31, 16  ;;  %v488_v35 = vshll.u32 %v3379_v34, 16  ;;  %v449_v56 = vsel %vm3110_vm2, %v3362_v14, %v448_v39  ;;  %v542_v59 = vrot.slane %v3376_v31, 5  ;;  %v2268_v14 = vld [vmem:[%s3067_s10 + $0x18] sm:$0xf]  ;;  %v2974_v37 = vld [vmem:[%s3642_s1 + $0x1e0] sm:$0xff]  }
  0x54   : > { %2739 = vmatmul.mubr.bf16.gmra.mxu0 %v2358_v26  ;;  %v580_v18 = vshrl.u32 %v2268_v14, 16  ;;  %v583_v19 = vshll.u32 %v2268_v14, 16  ;;  %v3464_v31 = vld [vmem:[%s3067_s10 + $0x28] sm:$0xf]  ;;  %v571_v24 = vrot.slane %v569_v17, 5  ;;  %v2467_v38 = vcombine.low %v2267_v12, %v2268_v14 }
  0x55   : > { %2771 = vmatpush3.bf16.msra.mxu0 %v2953_v28  ;;  %2763 = vmatmul.mubr.bf16.gmra.mxu1 %v2386_v32  ;;  %v3364_v28 = vrot.slane %v457_v23, 4  ;;  %v3389_v32 = vrot.slane %v471_v21, 4  ;;  %v476_v54 = vrot.slane %v474_v33, 5  ;;  %v490_v55 = vrot.slane %v488_v35, 5  ;;  %v2969_v23 = vld [vmem:[%s3642_s1 + $0x1b0] sm:$0xff]  }
  0x56   : > { %2795 = vmatpush3.bf16.msra.mxu1 %v2954_v20  ;;  %2772 = vmatprep.subr.bf16.mxu0 %v2957_v29  ;;  %v2254_v20 = vld [vmem:[%s3067_s10 + $0x20] sm:$0xe]  ;;  %v582_v25 = vrot.slane %v580_v18, 4  ;;  %v597_v35 = vshll.u32 %v3461_v4, 16  ;;  %v608_v36 = vshrl.u32 %v3464_v31, 16  ;;  %v611_v39 = vshll.u32 %v3464_v31, 16 }
  0x57   : > { %2796 = vmatprep.subr.bf16.mxu1 %v2958_v9  ;;  %2782 = vmatprep.mubr.bf16.mxu0 %v2411_v0  ;;  %v2262_v26 = vrot.slane %v2254_v20, 9  ;;  %v463_v57 = vsel %vm3110_vm2, %v3364_v28, %v462_v40  ;;  %v477_v2 = vsel %vm3110_vm2, %v3389_v32, %v476_v54  ;;  %v3453_v28 = vld [vmem:[%s3067_s10 + $0x14] sm:$0x1]  ;;  %v3456_v20 = vld [vmem:[%s3067_s10 + $0x1c] sm:$0x1]  ;;  %v2979_v18 = vld [vmem:[%s3642_s1 + $0x188] sm:$0xff]  }
  0x58   : > { %2806 = vmatprep.mubr.bf16.mxu1 %v2439_v62  ;;  %v546_v62 = vrot.slane %v3379_v34, 5  ;;  %v2413_v0 = vcombine.low %v449_v56, %v463_v57  ;;  %v589_v13 = vshll.u32 %v3456_v20, 16  ;;  %v610_v49 = vrot.slane %v608_v36, 4  ;;  %v3493_v54 = vld [vmem:[%s3067_s10 + $0x24] sm:$0x1] }
  0x59   : > { %2773 = vmatpush3.bf16.msra.mxu0 %v2957_v29  ;;  %v2965_v29 = vld [vmem:[%s3642_s1 + $0x100] sm:$0xff]   ;;  %v531_v43 = vsel %vm3193_vm5, %v2262_v26, %v530_v27  ;;  %v585_v26 = vrot.slane %v583_v19, 5  ;;  %v3498_v57 = vld [vmem:[%s3067_s10 + $0x2c] sm:$0x1]  ;;  %v3524_v17 = vld [vmem:[%s3067_s10 + $0x3c] sm:$0x1] }
  0x5a   : > { %2797 = vmatpush3.bf16.msra.mxu1 %v2958_v9  ;;  %2774 = vmatprep.subr.bf16.mxu0 %v2959_v45  ;;  %v3391_v9 = vrot.slane %v485_v22, 4  ;;  %v2440_v53 = vcombine.low %v527_v42, %v531_v43  ;;  %v547_v11 = vsel %vm3193_vm5, %v2266_v61, %v546_v62  ;;  %v575_v22 = vshll.u32 %v3453_v28, 16  ;;  %v2980_v19 = vld [vmem:[%s3642_s1 + $0x1c8] sm:$0xff]  }
  0x5b   : > { %2798 = vmatprep.subr.bf16.mxu1 %v2960_v58  ;;  %v591_v32 = vrot.slane %v589_v13, 5  ;;  %v586_v33 = vor.u32 %v585_v26, %v582_v25  ;;  %v603_v62 = vshll.u32 %v3493_v54, 16  ;;  %v3544_v36 = vld [vmem:[%s3067_s10 + $0x4c] sm:$0x1] }
  0x5c   : > { %v491_v3 = vsel %vm3110_vm2, %v3391_v9, %v490_v55  ;;  %v594_v9 = vshrl.u32 %v3461_v4, 16 }
  0x5d   : > { %2775 = vmatpush3.bf16.msra.mxu0 %v2959_v45  ;;  %v2263_v45 = vrot.slane %v2255_v10, 9  ;;  %v2414_v21 = vcombine.low %v477_v2, %v491_v3  ;;  %v587_v42 = vrot.slane %v586_v33, 4  ;;  %v617_v2 = vshll.u32 %v3498_v57, 16 }
  0x5e   : > { %2799 = vmatpush3.bf16.msra.mxu1 %v2960_v58  ;;  %2776 = vmatprep.subr.bf16.mxu0 %v2961_v63  ;;  %v2265_v58 = vrot.slane %v2257_v47, 9  ;;  %v596_v43 = vrot.slane %v594_v9, 4 }
  0x5f   : > { %2800 = vmatprep.subr.bf16.mxu1 %v2962_v6  ;;  %v535_v15 = vsel %vm3193_vm5, %v2263_v45, %v534_v46  ;;  %v2975_v45 = vld [vmem:[%s3642_s1 + $0x198] sm:$0xff]   ;;  %v592_v47 = vsel %vm3110_vm2, %v587_v42, %v591_v32 }
  0x61   : > { %2777 = vmatpush3.bf16.msra.mxu0 %v2961_v63  ;;  %v2970_v63 = vld [vmem:[%s3642_s1 + $0x1f0] sm:$0xff]  }
  0x62   : > { %2801 = vmatpush3.bf16.msra.mxu1 %v2962_v6  ;;  %2778 = vmatprep.subr.bf16.mxu0 %v2963_v8  ;;  %v2441_v6 = vcombine.low %v535_v15, %v539_v60  ;;  %v3503_v15 = vld [vmem:[%s3067_s10 + $0x40] sm:$0xf]  ;;  %v2977_v60 = vld [vmem:[%s3642_s1 + $0x190] sm:$0xff]  }
  0x63   : > { %2802 = vmatprep.subr.bf16.mxu1 %v2964_v16 }
  0x65   : > { %2779 = vmatpush3.bf16.msra.mxu0 %v2963_v8  ;;  %v543_v8 = vsel %vm3193_vm5, %v2265_v58, %v542_v59  ;;  %v636_v58 = vshrl.u32 %v3487_v50, 16  ;;  %v639_v59 = vshll.u32 %v3487_v50, 16 }
  0x66   : > { %2803 = vmatpush3.bf16.msra.mxu1 %v2964_v16  ;;  %2780 = vmatprep.subr.bf16.mxu0 %v2965_v29  ;;  %v566_v16 = vshrl.u32 %v2267_v12, 16  ;;  %v2442_v27 = vcombine.low %v543_v8, %v547_v11  ;;  %v650_v11 = vshrl.u32 %v3503_v15, 16  ;;  %v653_v12 = vshll.u32 %v3503_v15, 16 }
  0x67   : > { %2804 = vmatprep.subr.bf16.mxu1 %v2966_v30  ;;  %v641_v8 = vrot.slane %v639_v59, 5 }
  0x68   : > { %v568_v34 = vrot.slane %v566_v16, 4  ;;  %v652_v32 = vrot.slane %v650_v11, 4  ;;  %v655_v9 = vrot.slane %v653_v12, 5 }
  0x69   : > { %2781 = vmatpush3.bf16.msra.mxu0 %v2965_v29  ;;  %v2973_v29 = vld [vmem:[%s3642_s1 + $0x1a0] sm:$0xff]  }
  0x6a   : > { %2805 = vmatpush3.bf16.msra.mxu1 %v2966_v30  ;;  %2814 = vmatprep.subr.bf16.mxu0 %v2967_v44  ;;  %v577_v30 = vrot.slane %v575_v22, 5  ;;  %v572_v10 = vor.u32 %v571_v24, %v568_v34  ;;  %v605_v22 = vrot.slane %v603_v62, 5  ;;  %v619_v34 = vrot.slane %v617_v2, 5  ;;  %v2981_v24 = vld [vmem:[%s3642_s1 + $0x180] sm:$0xff]  }
  0x6b   : > { %2838 = vmatprep.subr.bf16.mxu1 %v2968_v48  ;;  %v656_v42 = vor.u32 %v655_v9, %v652_v32  ;;  %v711_v32 = vrot.slane %v3493_v54, 5 }
  0x6c   : > { %2783 = vmatmul.mubr.bf16.vlgmr.msra.gmra.mxu0 %v2412_v52  ;;  %v573_v40 = vrot.slane %v572_v10, 4 }
  0x6d   : > { %2807 = vmatmul.mubr.bf16.vlgmr.msra.gmra.mxu1 %v2440_v53  ;;  %2815 = vmatpush3.bf16.msra.mxu0 %v2967_v44  ;;  %v3477_v44 = vld [vmem:[%s3067_s10 + $0x30] sm:$0xf]  ;;  %v613_v53 = vrot.slane %v611_v39, 5 }
  0x6e   : > { %2839 = vmatpush3.bf16.msra.mxu1 %v2968_v48  ;;  %2816 = vmatprep.subr.bf16.mxu0 %v2969_v23  ;;  %v578_v46 = vsel %vm3110_vm2, %v573_v40, %v577_v30  ;;  %v599_v48 = vrot.slane %v597_v35, 5  ;;  %v622_v55 = vshrl.u32 %v3477_v44, 16  ;;  %v625_v56 = vshll.u32 %v3477_v44, 16  ;;  %v3538_v30 = vld [vmem:[%s3067_s10 + $0x44] sm:$0x1] }
  0x6f   : > { %2840 = vmatprep.subr.bf16.mxu1 %v2970_v63  ;;  %2786 = vmatprep.mubr.bf16.mxu0 %v2413_v0  ;;  %v2495_v52 = vcombine.low %v578_v46, %v592_v47  ;;  %v614_v0 = vor.u32 %v613_v53, %v610_v49  ;;  %v2982_v35 = vld [vmem:[%s3642_s1 + $0x1c0] sm:$0xff]   ;;  %v2985_v47 = vld [vmem:[%s3642_s1 + $0x238] sm:$0xff]   ;;  %v673_v49 = vshll.u32 %v3544_v36, 16 }
  0x70   : > { %2810 = vmatprep.mubr.bf16.mxu1 %v2441_v6  ;;  %v600_v61 = vor.u32 %v599_v48, %v596_v43  ;;  %v624_v3 = vrot.slane %v622_v55, 4  ;;  %v3517_v6 = vld [vmem:[%s3067_s10 + $0x34] sm:$0x1]  ;;  %v659_v43 = vshll.u32 %v3538_v30, 16 }
  0x71   : > { %2817 = vmatpush3.bf16.msra.mxu0 %v2969_v23  ;;  %v3510_v23 = vld [vmem:[%s3067_s10 + $0x48] sm:$0xf]  ;;  %v615_v13 = vrot.slane %v614_v0, 4  ;;  %v631_v26 = vshll.u32 %v3517_v6, 16  ;;  %v2469_v0 = vcombine.low %v3477_v44, %v3487_v50  ;;  %v719_v12 = vrot.slane %v3517_v6, 5 }
  0x72   : > { %2841 = vmatpush3.bf16.msra.mxu1 %v2970_v63  ;;  %2818 = vmatprep.subr.bf16.mxu0 %v2971_v5  ;;  %v2978_v63 = vld [vmem:[%s3642_s1 + $0x1d0] sm:$0xff]   ;;  %v664_v14 = vshrl.u32 %v3510_v23, 16  ;;  %v667_v16 = vshll.u32 %v3510_v23, 16  ;;  %v661_v59 = vrot.slane %v659_v43, 5  ;;  %v2989_v44 = vld [vmem:[%s3642_s1 + $0x228] sm:$0xff]   ;;  %v2470_v50 = vcombine.low %v3503_v15, %v3510_v23  ;;  %v2990_v15 = vld [vmem:[%s3642_s1 + $0x220] sm:$0xff]  }
  0x73   : > { %2842 = vmatprep.subr.bf16.mxu1 %v2972_v7  ;;  %v620_v46 = vsel %vm3110_vm2, %v615_v13, %v619_v34  ;;  %v2992_v13 = vld [vmem:[%s3642_s1 + $0x210] sm:$0xff]   ;;  %v2993_v34 = vld [vmem:[%s3642_s1 + $0x208] sm:$0xff]  }
  0x74   : > { %2787 = vmatmul.mubr.bf16.gmra.mxu0 %v2414_v21  ;;  %v601_v21 = vrot.slane %v600_v61, 4  ;;  %v666_v10 = vrot.slane %v664_v14, 4  ;;  %v669_v33 = vrot.slane %v667_v16, 5  ;;  %v2284_v61 = vld [vmem:[%s3067_s10 + $0x18] sm:$0xe]  ;;  %v723_v16 = vrot.slane %v3524_v17, 5 }
  0x75   : > { %2819 = vmatpush3.bf16.msra.mxu0 %v2971_v5  ;;  %2811 = vmatmul.mubr.bf16.gmra.mxu1 %v2442_v27  ;;  %v627_v5 = vrot.slane %v625_v56, 5 }
  0x76   : > { %2843 = vmatpush3.bf16.msra.mxu1 %v2972_v7  ;;  %2820 = vmatprep.subr.bf16.mxu0 %v2973_v29  ;;  %v638_v7 = vrot.slane %v636_v58, 4  ;;  %v670_v48 = vor.u32 %v669_v33, %v666_v10  ;;  %v657_v58 = vrot.slane %v656_v42, 4  ;;  %v715_v10 = vrot.slane %v3498_v57, 5 }
  0x77   : > { %2844 = vmatprep.subr.bf16.mxu1 %v2974_v37  ;;  %2830 = vmatprep.mubr.bf16.mxu0 %v2467_v38  ;;  %v628_v25 = vor.u32 %v627_v5, %v624_v3  ;;  %v633_v38 = vrot.slane %v631_v26, 5  ;;  %v703_v5 = vrot.slane %v3453_v28, 5  ;;  %v2289_v26 = vld [vmem:[%s3067_s10 + $0x40] sm:$0xe]  ;;  %v727_v33 = vrot.slane %v3538_v30, 5 }
  0x78   : > { %2854 = vmatprep.mubr.bf16.mxu1 %v2495_v52  ;;  %v642_v27 = vor.u32 %v641_v8, %v638_v7  ;;  %v2986_v52 = vld [vmem:[%s3642_s1 + $0x230] sm:$0xff]   ;;  %v671_v62 = vrot.slane %v670_v48, 4  ;;  %v2292_v7 = vrot.slane %v2284_v61, 9  ;;  %v707_v8 = vrot.slane %v3456_v20, 5 }
  0x79   : > { %2821 = vmatpush3.bf16.msra.mxu0 %v2973_v29  ;;  %v645_v29 = vshll.u32 %v3524_v17, 16  ;;  %v662_v28 = vsel %vm3110_vm2, %v657_v58, %v661_v59 }
  0x7a   : > { %2845 = vmatpush3.bf16.msra.mxu1 %v2974_v37  ;;  %2822 = vmatprep.subr.bf16.mxu0 %v2975_v45  ;;  %v629_v37 = vrot.slane %v628_v25, 4  ;;  %v643_v39 = vrot.slane %v642_v27, 4  ;;  %v708_v17 = vsel %vm3193_vm5, %v2292_v7, %v707_v8  ;;  %v2286_v25 = vld [vmem:[%s3067_s10 + $0x28] sm:$0xe] }
  0x7b   : > { %2846 = vmatprep.subr.bf16.mxu1 %v2976_v51  ;;  %v647_v40 = vrot.slane %v645_v29, 5  ;;  %v2290_v27 = vld [vmem:[%s3067_s10 + $0x48] sm:$0xe]  ;;  %v2294_v9 = vrot.slane %v2286_v25, 9 }
  0x7c   : > { %v634_v53 = vsel %vm3110_vm2, %v629_v37, %v633_v38  ;;  %v2994_v37 = vld [vmem:[%s3642_s1 + $0x200] sm:$0xff]   ;;  %v2297_v38 = vrot.slane %v2289_v26, 9 }
  0x7d   : > { %2823 = vmatpush3.bf16.msra.mxu0 %v2975_v45  ;;  %v606_v45 = vsel %vm3110_vm2, %v601_v21, %v605_v22  ;;  %v648_v55 = vsel %vm3110_vm2, %v643_v39, %v647_v40  ;;  %v2991_v22 = vld [vmem:[%s3642_s1 + $0x218] sm:$0xff]   ;;  %v2298_v39 = vrot.slane %v2290_v27, 9  ;;  %v716_v57 = vsel %vm3193_vm5, %v2294_v9, %v715_v10 }
  0x7e   : > { %2847 = vmatpush3.bf16.msra.mxu1 %v2976_v51  ;;  %2824 = vmatprep.subr.bf16.mxu0 %v2977_v60  ;;  %v2468_v51 = vcombine.low %v3461_v4, %v3464_v31  ;;  %v2496_v56 = vcombine.low %v606_v45, %v620_v46  ;;  %v675_v4 = vrot.slane %v673_v49, 5  ;;  %v2287_v31 = vld [vmem:[%s3067_s10 + $0x30] sm:$0xe]  ;;  %v2497_v2 = vcombine.low %v634_v53, %v648_v55 }
  0x7f   : > { %2848 = vmatprep.subr.bf16.mxu1 %v2978_v63  ;;  %v2295_v11 = vrot.slane %v2287_v31, 9  ;;  %v728_v30 = vsel %vm3193_vm5, %v2297_v38, %v727_v33 }
  0x80   : > { %v676_v20 = vsel %vm3110_vm2, %v671_v62, %v675_v4 }
  0x81   : > { %2825 = vmatpush3.bf16.msra.mxu0 %v2977_v60  ;;  %v2283_v60 = vld [vmem:[%s3067_s10 + $0x10] sm:$0xe] }
  0x82   : > { %2849 = vmatpush3.bf16.msra.mxu1 %v2978_v63  ;;  %2826 = vmatprep.subr.bf16.mxu0 %v2979_v18  ;;  %v2288_v63 = vld [vmem:[%s3067_s10 + $0x38] sm:$0xe]  ;;  %v2291_v3 = vrot.slane %v2283_v60, 9 }
  0x83   : > { %2850 = vmatprep.subr.bf16.mxu1 %v2980_v19  ;;  %v2296_v14 = vrot.slane %v2288_v63, 9 }
  0x84   : > { %v704_v6 = vsel %vm3193_vm5, %v2291_v3, %v703_v5 }
  0x85   : > { %2827 = vmatpush3.bf16.msra.mxu0 %v2979_v18  ;;  %v2498_v18 = vcombine.low %v662_v28, %v676_v20  ;;  %v724_v41 = vsel %vm3193_vm5, %v2296_v14, %v723_v16  ;;  %v2523_v23 = vcombine.low %v704_v6, %v708_v17 }
  0x86   : > { %2851 = vmatpush3.bf16.msra.mxu1 %v2980_v19  ;;  %2828 = vmatprep.subr.bf16.mxu0 %v2981_v24  ;;  %v720_v19 = vsel %vm3193_vm5, %v2295_v11, %v719_v12 }
  0x87   : > { %2852 = vmatprep.subr.bf16.mxu1 %v2982_v35  ;;  %v2525_v21 = vcombine.low %v720_v19, %v724_v41 }
  0x89   : > { %2829 = vmatpush3.bf16.msra.mxu0 %v2981_v24  ;;  %v2285_v24 = vld [vmem:[%s3067_s10 + $0x20] sm:$0xe] }
  0x8a   : > { %2853 = vmatpush3.bf16.msra.mxu1 %v2982_v35  ;;  %2862 = vmatprep.subr.bf16.mxu0 %v2985_v47  ;;  %v2293_v29 = vrot.slane %v2285_v24, 9  ;;  %v731_v35 = vrot.slane %v3544_v36, 5 }
  0x8b   : > { %2886 = vmatprep.subr.bf16.mxu1 %v2985_v47 }
  0x8c   : > { %2831 = vmatmul.mubr.bf16.vlgmr.msra.gmra.mxu0 %v2468_v51  ;;  %v712_v54 = vsel %vm3193_vm5, %v2293_v29, %v711_v32  ;;  %v732_v36 = vsel %vm3193_vm5, %v2298_v39, %v731_v35 }
  0x8d   : > { %2855 = vmatmul.mubr.bf16.vlgmr.msra.gmra.mxu1 %v2496_v56  ;;  %2863 = vmatpush3.bf16.msra.mxu0 %v2985_v47  ;;  %v2524_v40 = vcombine.low %v712_v54, %v716_v57  ;;  %v2526_v42 = vcombine.low %v728_v30, %v732_v36 }
  0x8e   : > { %2894 = vmatpush3.bf16.msra.mxu1 %v2985_v47  ;;  %2864 = vmatprep.subr.bf16.mxu0 %v2986_v52 }
  0x8f   : > { %2887 = vmatprep.subr.bf16.mxu1 %v2986_v52  ;;  %2834 = vmatprep.mubr.bf16.mxu0 %v2469_v0 }
  0x90   : > { %2858 = vmatprep.mubr.bf16.mxu1 %v2497_v2 }
  0x91   : > { %2865 = vmatpush3.bf16.msra.mxu0 %v2986_v52 }
  0x92   : > { %2895 = vmatpush3.bf16.msra.mxu1 %v2986_v52  ;;  %2866 = vmatprep.subr.bf16.mxu0 %v2989_v44 }
  0x93   : > { %2888 = vmatprep.subr.bf16.mxu1 %v2989_v44 }
  0x94   : > { %2835 = vmatmul.mubr.bf16.gmra.mxu0 %v2470_v50 }
  0x95   : > { %2867 = vmatpush3.bf16.msra.mxu0 %v2989_v44  ;;  %2859 = vmatmul.mubr.bf16.gmra.mxu1 %v2498_v18 }
  0x96   : > { %2896 = vmatpush3.bf16.msra.mxu1 %v2989_v44  ;;  %2868 = vmatprep.subr.bf16.mxu0 %v2990_v15 }
  0x97   : > { %2889 = vmatprep.subr.bf16.mxu1 %v2990_v15  ;;  %2878 = vmatprep.mubr.bf16.mxu0 %v2523_v23 }
  0x98   : > { %2882 = vmatprep.mubr.bf16.mxu1 %v2525_v21 }
  0x99   : > { %2869 = vmatpush3.bf16.msra.mxu0 %v2990_v15 }
  0x9a   : > { %2897 = vmatpush3.bf16.msra.mxu1 %v2990_v15  ;;  %2870 = vmatprep.subr.bf16.mxu0 %v2991_v22 }
  0x9b   : > { %2890 = vmatprep.subr.bf16.mxu1 %v2991_v22 }
  0x9d   : > { %2871 = vmatpush3.bf16.msra.mxu0 %v2991_v22 }
  0x9e   : > { %2898 = vmatpush3.bf16.msra.mxu1 %v2991_v22  ;;  %2872 = vmatprep.subr.bf16.mxu0 %v2992_v13 }
  0x9f   : > { %2891 = vmatprep.subr.bf16.mxu1 %v2992_v13 }
  0xa1   : > { %2873 = vmatpush3.bf16.msra.mxu0 %v2992_v13 }
  0xa2   : > { %2899 = vmatpush3.bf16.msra.mxu1 %v2992_v13  ;;  %2874 = vmatprep.subr.bf16.mxu0 %v2993_v34 }
  0xa3   : > { %2892 = vmatprep.subr.bf16.mxu1 %v2993_v34 }
  0xa5   : > { %2875 = vmatpush3.bf16.msra.mxu0 %v2993_v34 }
  0xa6   : > { %2900 = vmatpush3.bf16.msra.mxu1 %v2993_v34  ;;  %2876 = vmatprep.subr.bf16.mxu0 %v2994_v37 }
  0xa7   : > { %2893 = vmatprep.subr.bf16.mxu1 %v2994_v37 }
  0xa9   : > { %2877 = vmatpush3.bf16.msra.mxu0 %v2994_v37 }
  0xaa   : > { %2901 = vmatpush3.bf16.msra.mxu1 %v2994_v37 }
  0xac   : > { %2879 = vmatmul.mubr.bf16.vlgmr.msra.gmra.mxu0 %v2524_v40 }
  0xad   : > { %2883 = vmatmul.mubr.bf16.vlgmr.msra.gmra.mxu1 %v2526_v42 }
  0xec   : > { %v2688_v43 = vpop.f32.mrf.mxu0 }
  0xed   : > { %v2712_v46 = vpop.f32.mrf.mxu1 }
  0xee   : > { %v864_v45 = vpop.f32.mrf.mxu0  ;;  %v1010_v33 = vadd.f32 %v2712_v46, %v2688_v43 }
  0xef   : > { %v1001_v48 = vpop.f32.mrf.mxu1 }
  0xf0   : > { %v2689_v47 = vpop.f32.mrf.mxu0  ;;  %v1002_v39 = vadd.f32 %v1001_v48, %v864_v45 }
  0xf1   : > { %v2713_v52 = vpop.f32.mrf.mxu1 }
  0xf2   : > { %v867_v49 = vpop.f32.mrf.mxu0  ;;  %v1013_v36 = vadd.f32 %v2713_v52, %v2689_v47 }
  0xf3   : > { %v1004_v55 = vpop.f32.mrf.mxu1 }
  0xf4   : > { %v2692_v51 = vpop.f32.mrf.mxu0 }
  0xf5   : > { %v2716_v56 = vpop.f32.mrf.mxu1 }
  0xf6   : > { %v880_v53 = vpop.f32.mrf.mxu0  ;;  %v1026_v37 = vadd.f32 %v2716_v56, %v2692_v51 }
  0xf7   : > { %v1017_v58 = vpop.f32.mrf.mxu1 }
  0xf8   : > { %v2693_v1 = vpop.f32.mrf.mxu0  ;;  %v1018_v57 = vadd.f32 %v1017_v58, %v880_v53 }
  0xf9   : > { %v2717_v61 = vpop.f32.mrf.mxu1 }
  0xfa   : > { %v883_v59 = vpop.f32.mrf.mxu0 }
  0xfb   : > { %v1020_v4 = vpop.f32.mrf.mxu1 }
  0xfc   : > { %v1021_v48 = vadd.f32 %v1020_v4, %v883_v59 }
 0x10c   : > { %v2736_v60 = vpop.f32.mrf.mxu0 }
 0x10d   : > { %v2760_v31 = vpop.f32.mrf.mxu1  ;;  %v1180_v54 = vadd.f32 %v2736_v60, %v1010_v33 }
 0x10e   : > { %v1147_v62 = vpop.f32.mrf.mxu0 }
 0x10f   : > { %v1309_v0 = vpop.f32.mrf.mxu1  ;;  %v1178_v40 = vadd.f32 %v1147_v62, %v1002_v39  ;;  %v1342_v51 = vadd.f32 %v2760_v31, %v1180_v54 }
 0x110   : > { %v2737_v63 = vpop.f32.mrf.mxu0 }
 0x111   : > { %v2761_v3 = vpop.f32.mrf.mxu1  ;;  %v1181_v56 = vadd.f32 %v2737_v63, %v1013_v36  ;;  %v1340_v53 = vadd.f32 %v1309_v0, %v1178_v40 }
 0x112   : > { %v1150_v2 = vpop.f32.mrf.mxu0 }
 0x113   : > { %v1312_v7 = vpop.f32.mrf.mxu1  ;;  %v1343_v62 = vadd.f32 %v2761_v3, %v1181_v56 }
 0x114   : > { %v2740_v5 = vpop.f32.mrf.mxu0 }
 0x115   : > { %v2764_v11 = vpop.f32.mrf.mxu1  ;;  %v1184_v30 = vadd.f32 %v2740_v5, %v1026_v37 }
 0x116   : > { %v1163_v8 = vpop.f32.mrf.mxu0 }
 0x117   : > { %v1325_v14 = vpop.f32.mrf.mxu1  ;;  %v1182_v43 = vadd.f32 %v1163_v8, %v1018_v57  ;;  %v1346_v33 = vadd.f32 %v2764_v11, %v1184_v30 }
 0x118   : > { %v2741_v12 = vpop.f32.mrf.mxu0 }
 0x119   : > { %v2765_v44 = vpop.f32.mrf.mxu1  ;;  %v1344_v37 = vadd.f32 %v1325_v14, %v1182_v43 }
 0x11a   : > { %v1166_v16 = vpop.f32.mrf.mxu0 }
 0x11b   : > { %v1328_v20 = vpop.f32.mrf.mxu1  ;;  %v1183_v47 = vadd.f32 %v1166_v16, %v1021_v48 }
 0x11d   : > { %v1345_v31 = vadd.f32 %v1328_v20, %v1183_v47 }
 0x12c   : > { %v2784_v28 = vpop.f32.mrf.mxu0 }
 0x12d   : > { %v2808_v6 = vpop.f32.mrf.mxu1  ;;  %v1496_v5 = vadd.f32 %v2784_v28, %v1342_v51 }
 0x12e   : > { %v1463_v50 = vpop.f32.mrf.mxu0 }
 0x12f   : > { %v1617_v18 = vpop.f32.mrf.mxu1 }
 0x130   : > { %v2785_v17 = vpop.f32.mrf.mxu0 }
 0x131   : > { %v2809_v41 = vpop.f32.mrf.mxu1 }
 0x132   : > { %v1466_v19 = vpop.f32.mrf.mxu0 }
 0x133   : > { %v3622_v23 = vpop.f32.mrf.mxu1 }
 0x134   : > { %v2788_v15 = vpop.f32.mrf.mxu0  ;;  %3649 = vst [vmem:[#allocation2_spill] sm:$0xff] %v3622_v23  ;;  %v1029_v23 = vadd.f32 %v2717_v61, %v2693_v1 }
 0x135   : > { %v2812_v21 = vpop.f32.mrf.mxu1  ;;  %v1500_v52 = vadd.f32 %v2788_v15, %v1346_v33 }
 0x136   : > { %v1479_v22 = vpop.f32.mrf.mxu0  ;;  %v1185_v60 = vadd.f32 %v2741_v12, %v1029_v23 }
 0x137   : > { %v1633_v13 = vpop.f32.mrf.mxu1  ;;  %v1498_v8 = vadd.f32 %v1479_v22, %v1344_v37  ;;  %v1654_v63 = vadd.f32 %v2812_v21, %v1500_v52 }
 0x138   : > { %v2789_v34 = vpop.f32.mrf.mxu0  ;;  %v1347_v61 = vadd.f32 %v2765_v44, %v1185_v60 }
 0x139   : > { %v2813_v24 = vpop.f32.mrf.mxu1  ;;  %v1652_v14 = vadd.f32 %v1633_v13, %v1498_v8 }
 0x13a   : > { %v1482_v25 = vpop.f32.mrf.mxu0  ;;  %v1501_v59 = vadd.f32 %v2789_v34, %v1347_v61 }
 0x13b   : > { %v1636_v27 = vpop.f32.mrf.mxu1  ;;  %v1499_v16 = vadd.f32 %v1482_v25, %v1345_v31  ;;  %v3652_v22 = vld [vmem:[#allocation2_spill] sm:$0xff] }
 0x13d   : > { %v1653_v21 = vadd.f32 %v1636_v27, %v1499_v16 }
 0x14c   : > { %v2832_v26 = vpop.f32.mrf.mxu0 }
 0x14d   : > { %v2856_v29 = vpop.f32.mrf.mxu1 }
 0x14e   : > { %v1779_v32 = vpop.f32.mrf.mxu0 }
 0x14f   : > { %v1933_v9 = vpop.f32.mrf.mxu1 }
 0x150   : > { %v2833_v10 = vpop.f32.mrf.mxu0 }
 0x151   : > { %v3624_v35 = vpop.f32.mrf.mxu1 }
 0x152   : > { %3650 = vst [vmem:[#allocation3_spill] sm:$0xff] %v3624_v35  ;;  %v1782_v38 = vpop.f32.mrf.mxu0  ;;  %v1005_v35 = vadd.f32 %v1004_v55, %v867_v49  ;;  %v1650_v49 = vadd.f32 %v2808_v6, %v1496_v5  ;;  %v1497_v55 = vadd.f32 %v2785_v17, %v1343_v62 }
 0x153   : > { %v3626_v42 = vpop.f32.mrf.mxu1 }
 0x154   : > { %3651 = vst [vmem:[#allocation4_spill] sm:$0xff] %v3626_v42  ;;  %v2836_v46 = vpop.f32.mrf.mxu0  ;;  %v1179_v58 = vadd.f32 %v1150_v2, %v1005_v35  ;;  %v1494_v42 = vadd.f32 %v1463_v50, %v1340_v53  ;;  %v1812_v2 = vadd.f32 %v2832_v26, %v1650_v49  ;;  %v1651_v15 = vadd.f32 %v2809_v41, %v1497_v55  ;;  %v2535_v41 = vld [vmem:[%s3643_s2] ss:$0 sm:$0xff] }
 0x155   : > { %v2860_v45 = vpop.f32.mrf.mxu1  ;;  %v1816_v28 = vadd.f32 %v2836_v46, %v1654_v63  ;;  %v1655_v50 = vadd.f32 %v2813_v24, %v1501_v59 }
 0x156   : > { %v1795_v39 = vpop.f32.mrf.mxu0  ;;  %v1341_v57 = vadd.f32 %v1312_v7, %v1179_v58  ;;  %v1648_v11 = vadd.f32 %v1617_v18, %v1494_v42  ;;  %v1966_v6 = vadd.f32 %v2856_v29, %v1812_v2  ;;  %v1813_v17 = vadd.f32 %v2833_v10, %v1651_v15 }
 0x157   : > { %v1949_v1 = vpop.f32.mrf.mxu1  ;;  %v1814_v23 = vadd.f32 %v1795_v39, %v1652_v14  ;;  %v1970_v34 = vadd.f32 %v2860_v45, %v1816_v28 }
 0x158   : > { %v2837_v4 = vpop.f32.mrf.mxu0  ;;  %v1495_v0 = vadd.f32 %v1466_v19, %v1341_v57  ;;  %v1810_v3 = vadd.f32 %v1779_v32, %v1648_v11 }
 0x159   : > { %v2861_v12 = vpop.f32.mrf.mxu1  ;;  %v1817_v35 = vadd.f32 %v2837_v4, %v1655_v50  ;;  %v1968_v25 = vadd.f32 %v1949_v1, %v1814_v23  ;;  %v3653_v36 = vld [vmem:[#allocation3_spill] sm:$0xff] }
 0x15a   : > { %v1798_v44 = vpop.f32.mrf.mxu0  ;;  %v1649_v7 = vadd.f32 %v3652_v22, %v1495_v0  ;;  %v1964_v19 = vadd.f32 %v1933_v9, %v1810_v3  ;;  %v1967_v29 = vadd.f32 %v3653_v36, %v1813_v17 }
 0x15b   : > { %v1952_v20 = vpop.f32.mrf.mxu1  ;;  %v1815_v30 = vadd.f32 %v1798_v44, %v1653_v21  ;;  %v1971_v40 = vadd.f32 %v2861_v12, %v1817_v35  ;;  %v3654_v9 = vld [vmem:[#allocation4_spill] sm:$0xff] }
 0x15c   : > { %v1811_v26 = vadd.f32 %v1782_v38, %v1649_v7 }
 0x15d   : > { %v1969_v45 = vadd.f32 %v1952_v20, %v1815_v30 }
 0x15e   : > { %v1965_v38 = vadd.f32 %v3654_v9, %v1811_v26 }
 0x16c   : > { %v2880_v18 = vpop.f32.mrf.mxu0 }
 0x16d   : > { %v2120_v54 = vadd.f32 %v2880_v18, %v1966_v6  ;;  %v2884_v13 = vpop.f32.mrf.mxu1 }
 0x16e   : > { %v2124_v24 = vadd.f32 %v2884_v13, %v1970_v34  ;;  %v2087_v32 = vpop.f32.mrf.mxu0 }
 0x16f   : > { %v2118_v10 = vadd.f32 %v2087_v32, %v1964_v19  ;;  %v2103_v27 = vpop.f32.mrf.mxu1  ;;  %v2134_v46 = vadd.f32 %v2535_v41, %v2120_v54 }
 0x170   : > { %v2122_v42 = vadd.f32 %v2103_v27, %v1968_v25  ;;  %v2881_v43 = vpop.f32.mrf.mxu0  ;;  %v2138_v48 = vadd.f32 %v2535_v41, %v2124_v24 }
 0x171   : > { %v2121_v51 = vadd.f32 %v2881_v43, %v1967_v29  ;;  %v2885_v56 = vpop.f32.mrf.mxu1  ;;  %v2132_v53 = vadd.f32 %v2535_v41, %v2118_v10  ;;  %v2142_v62 = vmax.f32 %v2134_v46, 0.0 }
 0x172   : > { %v2125_v33 = vadd.f32 %v2885_v56, %v1971_v40  ;;  %v2090_v60 = vpop.f32.mrf.mxu0  ;;  %v2136_v47 = vadd.f32 %v2535_v41, %v2122_v42  ;;  %v2146_v8 = vmax.f32 %v2138_v48, 0.0 }
 0x173   : > { %v2135_v58 = vadd.f32 %v2535_v41, %v2121_v51  ;;  %v2119_v5 = vadd.f32 %v2090_v60, %v1965_v38  ;;  %v2106_v37 = vpop.f32.mrf.mxu1  ;;  %v2140_v55 = vmax.f32 %v2132_v53, 0.0 }
 0x174   : > { %v2139_v52 = vadd.f32 %v2535_v41, %v2125_v33  ;;  %v2123_v39 = vadd.f32 %v2106_v37, %v1969_v45  ;;  %v2144_v59 = vmax.f32 %v2136_v47, 0.0 }
 0x175   : > { %v2143_v1 = vmax.f32 %v2135_v58, 0.0  ;;  %v2133_v61 = vadd.f32 %v2535_v41, %v2119_v5 }
 0x176   : > { %v2147_v57 = vmax.f32 %v2139_v52, 0.0  ;;  %v2137_v49 = vadd.f32 %v2535_v41, %v2123_v39 }
 0x177   : > { %v2547_v31 = vpack.c.bf16 %v2143_v1, %v2142_v62  ;;  %v2141_v63 = vmax.f32 %v2133_v61, 0.0 }
 0x178   : > { %v2557_v4 = vpack.c.bf16 %v2147_v57, %v2146_v8  ;;  %v2145_v11 = vmax.f32 %v2137_v49, 0.0 }
 0x179   : > { %2559 = vst [vmem:[%s170_s21 + $0x8] sm:$0xff] %v2547_v31   ;;  %v2542_v0 = vpack.c.bf16 %v2141_v63, %v2140_v55 }
 0x17a   : > { %2561 = vst [vmem:[%s170_s21 + $0x18] sm:$0xff] %v2557_v4   ;;  %v2552_v2 = vpack.c.bf16 %v2145_v11, %v2144_v59 }
 0x17b   : > { %2543 = vst [vmem:[%s170_s21] sm:$0xff] %v2542_v0  }
 0x17c   : > { %2560 = vst [vmem:[%s170_s21 + $0x10] sm:$0xff] %v2552_v2  }
 0x17d PF: > { %s13_s12 = sadd.s32 1, %s3001_s12  }
 0x17e   : > { %p10_p4 = scmp.ge.s32.totalorder %s13_s12, 4  }
 0x180   :  { %12 = sbr.rel (!%p10_p4) target bundleno = 1 (0x1), region = 72 }

</bundles_post_ra>
